<compile_context>
chip_gen: v6e
topology: v6e:2x2x1
jax: 0.10.0
libtpu: 0.0.40
codegen_flags: <defaults>
</compile_context>

<pallas_src>
import functools
import math

import jax
import jax.numpy as jnp
from jax.experimental import pallas as pl
from jax.experimental.pallas import tpu as pltpu


# Row-tile sizes (mem-bound kernels; chosen to stay inside v7x's 32 MiB scoped-VMEM default
# even with resident weights — v5e/v6e have headroom to spare).
LINEAR_TM = 512
FFN_TM = 256
LN_TM = 1024
ATTN_TQ = 128
LN_EPS = 1e-5


# ----------------------------- Pallas kernels ------------------------------

def _layernorm_f32(x, g, b, eps):
    mean = jnp.mean(x, axis=-1, keepdims=True)
    xc = x - mean
    var = jnp.mean(xc * xc, axis=-1, keepdims=True)
    return xc * jax.lax.rsqrt(var + eps) * g + b


def _linear_kernel(x_ref, w_ref, b_ref, o_ref):
    x = x_ref[...].astype(jnp.bfloat16)
    acc = jnp.dot(x, w_ref[...], preferred_element_type=jnp.float32)
    acc = acc + b_ref[...].astype(jnp.float32)
    o_ref[...] = acc.astype(o_ref.dtype)


def pallas_linear(x, w, b, tm=LINEAR_TM):
    """x: (M, K) bf16, w: (K, N) bf16, b: (N,) f32 -> (M, N) bf16.
    Grid over M only: W/b blocks are full-N with a constant index_map, so the weight is fetched
    once (not re-streamed per M tile)."""
    M, K = x.shape
    N = w.shape[1]
    tm = min(tm, M)
    return pl.pallas_call(
        _linear_kernel,
        out_shape=jax.ShapeDtypeStruct((M, N), jnp.bfloat16),
        grid=(pl.cdiv(M, tm),),
        in_specs=[
            pl.BlockSpec((tm, K), lambda i: (i, 0)),
            pl.BlockSpec((K, N), lambda i: (0, 0)),
            pl.BlockSpec((1, N), lambda i: (0, 0)),
        ],
        out_specs=pl.BlockSpec((tm, N), lambda i: (i, 0)),
        compiler_params=pltpu.CompilerParams(dimension_semantics=("parallel",)),
    )(x, w, b.reshape(1, N))


def _ln_linear_kernel(x_ref, r_ref, g_ref, b_ref, w_ref, bias_ref, n_ref, y_ref, *, eps):
    x = x_ref[...].astype(jnp.float32) + r_ref[...].astype(jnp.float32)   # fused residual add
    nrm = _layernorm_f32(x, g_ref[...], b_ref[...], eps)
    n_ref[...] = nrm.astype(n_ref.dtype)                                  # normalized activation out
    acc = jnp.dot(nrm.astype(jnp.bfloat16), w_ref[...],
                  preferred_element_type=jnp.float32)
    y_ref[...] = (acc + bias_ref[...].astype(jnp.float32)).astype(y_ref.dtype)


def pallas_ln_linear(x, res, gamma, beta, w, b, tm=LINEAR_TM, eps=LN_EPS):
    """normed = LayerNorm(x + res); y = normed @ w + b. Returns (normed, y), both bf16."""
    M, E = x.shape
    N = w.shape[1]
    tm = min(tm, M)
    return pl.pallas_call(
        functools.partial(_ln_linear_kernel, eps=eps),
        out_shape=(jax.ShapeDtypeStruct((M, E), jnp.bfloat16),
                   jax.ShapeDtypeStruct((M, N), jnp.bfloat16)),
        grid=(pl.cdiv(M, tm),),
        in_specs=[
            pl.BlockSpec((tm, E), lambda i: (i, 0)),
            pl.BlockSpec((tm, E), lambda i: (i, 0)),
            pl.BlockSpec((1, E), lambda i: (0, 0)),
            pl.BlockSpec((1, E), lambda i: (0, 0)),
            pl.BlockSpec((E, N), lambda i: (0, 0)),
            pl.BlockSpec((1, N), lambda i: (0, 0)),
        ],
        out_specs=[
            pl.BlockSpec((tm, E), lambda i: (i, 0)),
            pl.BlockSpec((tm, N), lambda i: (i, 0)),
        ],
        compiler_params=pltpu.CompilerParams(dimension_semantics=("parallel",)),
    )(x, res, gamma.reshape(1, E), beta.reshape(1, E), w, b.reshape(1, N))


def _ln_ffn_kernel(x_ref, r_ref, g_ref, b_ref, w1_ref, b1_ref, w2_ref, b2_ref,
                   n_ref, y_ref, *, eps):
    x = x_ref[...].astype(jnp.float32) + r_ref[...].astype(jnp.float32)
    nrm = _layernorm_f32(x, g_ref[...], b_ref[...], eps)
    n_ref[...] = nrm.astype(n_ref.dtype)
    h = jnp.dot(nrm.astype(jnp.bfloat16), w1_ref[...], preferred_element_type=jnp.float32)
    h = jnp.maximum(h + b1_ref[...].astype(jnp.float32), 0.0)
    y = jnp.dot(h.astype(jnp.bfloat16), w2_ref[...], preferred_element_type=jnp.float32)
    y_ref[...] = (y + b2_ref[...].astype(jnp.float32)).astype(y_ref.dtype)


def pallas_ln_ffn(x, res, gamma, beta, w1, b1, w2, b2, tm=FFN_TM, eps=LN_EPS):
    """normed = LayerNorm(x + res); y = ReLU(normed@w1+b1)@w2+b2. Returns (normed, y), bf16."""
    M, E = x.shape
    dff = w1.shape[1]
    tm = min(tm, M)
    return pl.pallas_call(
        functools.partial(_ln_ffn_kernel, eps=eps),
        out_shape=(jax.ShapeDtypeStruct((M, E), jnp.bfloat16),
                   jax.ShapeDtypeStruct((M, E), jnp.bfloat16)),
        grid=(pl.cdiv(M, tm),),
        in_specs=[
            pl.BlockSpec((tm, E), lambda i: (i, 0)),
            pl.BlockSpec((tm, E), lambda i: (i, 0)),
            pl.BlockSpec((1, E), lambda i: (0, 0)),
            pl.BlockSpec((1, E), lambda i: (0, 0)),
            pl.BlockSpec((E, dff), lambda i: (0, 0)),
            pl.BlockSpec((1, dff), lambda i: (0, 0)),
            pl.BlockSpec((dff, E), lambda i: (0, 0)),
            pl.BlockSpec((1, E), lambda i: (0, 0)),
        ],
        out_specs=[
            pl.BlockSpec((tm, E), lambda i: (i, 0)),
            pl.BlockSpec((tm, E), lambda i: (i, 0)),
        ],
        compiler_params=pltpu.CompilerParams(dimension_semantics=("parallel",)),
    )(x, res, gamma.reshape(1, E), beta.reshape(1, E),
      w1, b1.reshape(1, dff), w2, b2.reshape(1, E))


def _add_layernorm_kernel(x_ref, r_ref, g_ref, b_ref, o_ref, *, eps):
    x = x_ref[...].astype(jnp.float32) + r_ref[...].astype(jnp.float32)
    o_ref[...] = _layernorm_f32(x, g_ref[...], b_ref[...], eps).astype(o_ref.dtype)


def pallas_add_layernorm(x, res, gamma, beta, eps=LN_EPS, tm=LN_TM):
    M, E = x.shape
    tm = min(tm, M)
    return pl.pallas_call(
        functools.partial(_add_layernorm_kernel, eps=eps),
        out_shape=jax.ShapeDtypeStruct((M, E), jnp.bfloat16),
        grid=(pl.cdiv(M, tm),),
        in_specs=[
            pl.BlockSpec((tm, E), lambda i: (i, 0)),
            pl.BlockSpec((tm, E), lambda i: (i, 0)),
            pl.BlockSpec((1, E), lambda i: (0, 0)),
            pl.BlockSpec((1, E), lambda i: (0, 0)),
        ],
        out_specs=pl.BlockSpec((tm, E), lambda i: (i, 0)),
        compiler_params=pltpu.CompilerParams(dimension_semantics=("parallel",)),
    )(x, res, gamma.reshape(1, E), beta.reshape(1, E))


def _layernorm_kernel(x_ref, g_ref, b_ref, o_ref, *, eps):
    x = x_ref[...].astype(jnp.float32)
    o_ref[...] = _layernorm_f32(x, g_ref[...], b_ref[...], eps).astype(o_ref.dtype)


def pallas_layernorm(x, gamma, beta, eps=LN_EPS, tm=LN_TM):
    M, E = x.shape
    tm = min(tm, M)
    return pl.pallas_call(
        functools.partial(_layernorm_kernel, eps=eps),
        out_shape=jax.ShapeDtypeStruct((M, E), jnp.bfloat16),
        grid=(pl.cdiv(M, tm),),
        in_specs=[
            pl.BlockSpec((tm, E), lambda i: (i, 0)),
            pl.BlockSpec((1, E), lambda i: (0, 0)),
            pl.BlockSpec((1, E), lambda i: (0, 0)),
        ],
        out_specs=pl.BlockSpec((tm, E), lambda i: (i, 0)),
        compiler_params=pltpu.CompilerParams(dimension_semantics=("parallel",)),
    )(x, gamma.reshape(1, E), beta.reshape(1, E))


# ------------------------------- attention ---------------------------------

def _attn_kernel(q_ref, k_ref, v_ref, o_ref, *, dh, scale):
    # q_ref: (1, tq, G) block of a head-group (G lanes = G//dh heads, 128-lane aligned)
    # k_ref / v_ref: (1, Sk, G) blocks of the same head-group
    q = q_ref[0].astype(jnp.float32) * scale           # fold scale into q (tq*G work, not tq*Sk)
    k = k_ref[0]
    v = v_ref[0]
    G = q.shape[-1]
    outs = []
    for h in range(G // dh):
        sl = slice(h * dh, (h + 1) * dh)
        qh = q[:, sl].astype(jnp.bfloat16)
        kh = k[:, sl].astype(jnp.bfloat16)
        vh = v[:, sl].astype(jnp.bfloat16)
        # contract dh directly (trans_b semantics) -- no materialized k.T
        s = jax.lax.dot_general(qh, kh, (((1,), (1,)), ((), ())),
                                preferred_element_type=jnp.float32)
        m = jnp.max(s, axis=-1, keepdims=True)
        p = jnp.exp(s - m)
        l = jnp.sum(p, axis=-1, keepdims=True)
        oh = jnp.dot(p.astype(jnp.bfloat16), vh, preferred_element_type=jnp.float32)
        outs.append(oh * pl.reciprocal(l, approx=True))   # EUP recip; approx=False to bit-validate
    o_ref[0] = jnp.concatenate(outs, axis=-1).astype(o_ref.dtype)


def _attn_group_width(E, nhead):
    dh = E // nhead
    if E % 128 == 0 and 128 % dh == 0:
        return 128            # 128-lane-aligned head groups (e.g. 2 heads of dh=64)
    return E                  # fallback: all heads in one program


def _pick_tq(S):
    return ATTN_TQ if S % ATTN_TQ == 0 else S


def pallas_self_attention(qkv, nhead):
    """qkv: (B, S, 3E) bf16 -> (B, S, E) bf16. Grid (B, head_group, S//tq); Q/K/V blocks are
    128-lane-aligned slabs sliced straight out of the fused QKV tensor via lane-block offsets."""
    B, S, E3 = qkv.shape
    E = E3 // 3
    dh = E // nhead
    scale = 1.0 / math.sqrt(dh)
    G = _attn_group_width(E, nhead)
    ngroups = E // G
    k_off = E // G
    v_off = 2 * E // G
    tq = _pick_tq(S)
    return pl.pallas_call(
        functools.partial(_attn_kernel, dh=dh, scale=scale),
        out_shape=jax.ShapeDtypeStruct((B, S, E), jnp.bfloat16),
        grid=(B, ngroups, S // tq),
        in_specs=[
            pl.BlockSpec((1, tq, G), lambda b, g, qi: (b, qi, g)),
            pl.BlockSpec((1, S, G), lambda b, g, qi: (b, 0, k_off + g)),
            pl.BlockSpec((1, S, G), lambda b, g, qi: (b, 0, v_off + g)),
        ],
        out_specs=pl.BlockSpec((1, tq, G), lambda b, g, qi: (b, qi, g)),
        compiler_params=pltpu.CompilerParams(
            dimension_semantics=("parallel", "parallel", "parallel")),
    )(qkv, qkv, qkv)


def pallas_cross_attention(q, kv, nhead):
    """q: (B, Sq, E) bf16, kv: (B, Sk, 2E) bf16 -> (B, Sq, E) bf16."""
    B, Sq, E = q.shape
    Sk = kv.shape[1]
    dh = E // nhead
    scale = 1.0 / math.sqrt(dh)
    G = _attn_group_width(E, nhead)
    ngroups = E // G
    v_off = E // G
    tq = _pick_tq(Sq)
    return pl.pallas_call(
        functools.partial(_attn_kernel, dh=dh, scale=scale),
        out_shape=jax.ShapeDtypeStruct((B, Sq, E), jnp.bfloat16),
        grid=(B, ngroups, Sq // tq),
        in_specs=[
            pl.BlockSpec((1, tq, G), lambda b, g, qi: (b, qi, g)),
            pl.BlockSpec((1, Sk, G), lambda b, g, qi: (b, 0, g)),
            pl.BlockSpec((1, Sk, G), lambda b, g, qi: (b, 0, v_off + g)),
        ],
        out_specs=pl.BlockSpec((1, tq, G), lambda b, g, qi: (b, qi, g)),
        compiler_params=pltpu.CompilerParams(
            dimension_semantics=("parallel", "parallel", "parallel")),
    )(q, kv, kv)


# ------------------------- model built from kernels -------------------------
# Post-LN layers carry a "pending" (x, h, gamma, beta) pair: the layer's final LN is fused into the
# NEXT consumer matmul (QKV projection / Q projection / FFN) via pallas_ln_linear / pallas_ln_ffn,
# so the normalized activation never round-trips HBM before it feeds the MXU.

def encoder_layer(x_first, pending, p, nhead, B, S):
    sa = p["self_attn"]
    if pending is None:                             # first layer: input = embedding
        layer_in = x_first
        qkv = pallas_linear(layer_in, sa["w_qkv"], sa["b_qkv"])
    else:                                           # fuse previous norm2 into this QKV projection
        xp, hp, g, b = pending
        layer_in, qkv = pallas_ln_linear(xp, hp, g, b, sa["w_qkv"], sa["b_qkv"])
    E = layer_in.shape[-1]
    attn = pallas_self_attention(qkv.reshape(B, S, 3 * E), nhead)
    a = pallas_linear(attn.reshape(-1, E), sa["wo"], sa["bo"])
    # norm1 fused into the FFN
    x1, h = pallas_ln_ffn(layer_in, a, p["norm1_g"], p["norm1_b"],
                          p["w1"], p["b1"], p["w2"], p["b2"])
    return (x1, h, p["norm2_g"], p["norm2_b"])      # pending norm2


def decoder_layer(x_first, pending, memory, p, nhead, B, S, Sk):
    sa, ca = p["self_attn"], p["cross_attn"]
    if pending is None:
        layer_in = x_first
        qkv = pallas_linear(layer_in, sa["w_qkv"], sa["b_qkv"])
    else:                                           # fuse previous norm3 into this QKV projection
        xp, hp, g, b = pending
        layer_in, qkv = pallas_ln_linear(xp, hp, g, b, sa["w_qkv"], sa["b_qkv"])
    E = layer_in.shape[-1]
    attn = pallas_self_attention(qkv.reshape(B, S, 3 * E), nhead)
    a = pallas_linear(attn.reshape(-1, E), sa["wo"], sa["bo"])
    # norm1 fused into the cross-attention Q projection
    x1, q = pallas_ln_linear(layer_in, a, p["norm1_g"], p["norm1_b"], ca["wq"], ca["bq"])
    kv = pallas_linear(memory, ca["w_kv"], ca["b_kv"])           # fused K|V projection of memory
    c_attn = pallas_cross_attention(q.reshape(B, S, E), kv.reshape(B, Sk, 2 * E), nhead)
    c = pallas_linear(c_attn.reshape(-1, E), ca["wo"], ca["bo"])
    # norm2 fused into the FFN
    x2, h = pallas_ln_ffn(x1, c, p["norm2_g"], p["norm2_b"],
                          p["w1"], p["b1"], p["w2"], p["b2"])
    return (x2, h, p["norm3_g"], p["norm3_b"])      # pending norm3


def transformer_model_forward(params, tokens, nhead, output_dim):
    """tokens: (S, B) int32 -> (S*B*output_dim, 2) f32 (matches x.view(-1, 2) in the head)."""
    S, B = tokens.shape
    tok_bs = tokens.T                                            # batch-major internally
    emb = params["embedding"][tok_bs].astype(jnp.bfloat16)       # (B, S, E) -- glue gather
    E = emb.shape[-1]
    emb_flat = emb.reshape(-1, E)

    # encoder stack (src = embedded x)
    pending = None
    for lp in params["enc_layers"]:
        pending = encoder_layer(emb_flat, pending, lp, nhead, B, S)
    xp, hp, g, b = pending
    memory = pallas_add_layernorm(xp, hp, g, b)                  # last layer norm2
    memory = pallas_layernorm(memory, params["enc_norm_g"], params["enc_norm_b"])

    # decoder stack (tgt = embedded x; see NOTE at top)
    pending = None
    for lp in params["dec_layers"]:
        pending = decoder_layer(emb_flat, pending, memory, lp, nhead, B, S, S)
    xp, hp, g, b = pending
    dec = pallas_add_layernorm(xp, hp, g, b)                     # last layer norm3
    dec = pallas_layernorm(dec, params["dec_norm_g"], params["dec_norm_b"])

    # TransformerDecoder head: Linear(d_model, output_dim*2). Weight zero-padded to 128 lanes so the
    # kernel stores are lane-dense; real columns sliced back out here.
    y_pad = pallas_linear(dec, params["head_w_pad"], params["head_b_pad"])
    y = y_pad[:, :output_dim * 2].astype(jnp.float32)            # (B*S, out*2)
    # restore PyTorch's (S, B, out*2).view(-1, 2) row ordering (tiny transpose).
    return y.reshape(B, S, output_dim * 2).transpose(1, 0, 2).reshape(-1, 2)


# ------------------------------ params init --------------------------------

def init_params(key, vocab, d_model, nhead, num_layers, dff, output_dim):
    keys = iter(jax.random.split(key, 4096))

    def dense(fan_in, fan_out):
        w = (jax.random.normal(next(keys), (fan_in, fan_out), jnp.float32)
             * (1.0 / (fan_in ** 0.5))).astype(jnp.bfloat16)     # matmul weights stored bf16
        b = jnp.zeros((fan_out,), jnp.float32)
        return w, b

    def self_attn_params():
        w_qkv, b_qkv = dense(d_model, 3 * d_model)
        wo, bo = dense(d_model, d_model)
        return dict(w_qkv=w_qkv, b_qkv=b_qkv, wo=wo, bo=bo)

    def cross_attn_params():
        wq, bq = dense(d_model, d_model)
        w_kv, b_kv = dense(d_model, 2 * d_model)
        wo, bo = dense(d_model, d_model)
        return dict(wq=wq, bq=bq, w_kv=w_kv, b_kv=b_kv, wo=wo, bo=bo)

    def enc_layer():
        w1, b1 = dense(d_model, dff)
        w2, b2 = dense(dff, d_model)
        return dict(self_attn=self_attn_params(), w1=w1, b1=b1, w2=w2, b2=b2,
                    norm1_g=jnp.ones((d_model,)), norm1_b=jnp.zeros((d_model,)),
                    norm2_g=jnp.ones((d_model,)), norm2_b=jnp.zeros((d_model,)))

    def dec_layer():
        w1, b1 = dense(d_model, dff)
        w2, b2 = dense(dff, d_model)
        return dict(self_attn=self_attn_params(), cross_attn=cross_attn_params(),
                    w1=w1, b1=b1, w2=w2, b2=b2,
                    norm1_g=jnp.ones((d_model,)), norm1_b=jnp.zeros((d_model,)),
                    norm2_g=jnp.ones((d_model,)), norm2_b=jnp.zeros((d_model,)),
                    norm3_g=jnp.ones((d_model,)), norm3_b=jnp.zeros((d_model,)))

    # head weight zero-padded from output_dim*2 to 128 columns for lane-dense stores
    head_w, head_b = dense(d_model, output_dim * 2)
    n_pad = 128
    head_w_pad = jnp.zeros((d_model, n_pad), jnp.bfloat16).at[:, :output_dim * 2].set(head_w)
    head_b_pad = jnp.zeros((n_pad,), jnp.float32).at[:output_dim * 2].set(head_b)

    return dict(
        embedding=jax.random.normal(next(keys), (vocab, d_model), jnp.float32) * 0.02,
        enc_layers=[enc_layer() for _ in range(num_layers)],
        dec_layers=[dec_layer() for _ in range(num_layers)],
        enc_norm_g=jnp.ones((d_model,)), enc_norm_b=jnp.zeros((d_model,)),
        dec_norm_g=jnp.ones((d_model,)), dec_norm_b=jnp.zeros((d_model,)),
        head_w_pad=head_w_pad, head_b_pad=head_b_pad,
    )


# ---------------------------------- main ------------------------------------

if __name__ == "__main__":
    # Small, module-consistent hyperparameters (module uses 1000/512/8/6/2; scaled down for the test
    # run but keeping d_model a multiple of 128 and head_dim = 64 so the lane-aligned head-group
    # attention path is exercised exactly as at production shapes).
    INPUT_DIM = 64     # vocab size
    D_MODEL = 256
    NHEAD = 4          # head_dim = 64, two heads per 128-lane group
    NUM_LAYERS = 2
    DFF = 512          # nn.Transformer default is 2048; scaled with d_model
    OUTPUT_DIM = 2
    SEQ = 8
    BATCH = 2

    key = jax.random.PRNGKey(0)
    k_tok, k_par = jax.random.split(key)
    tokens = jax.random.randint(k_tok, (SEQ, BATCH), 0, INPUT_DIM, dtype=jnp.int32)
    params = init_params(k_par, INPUT_DIM, D_MODEL, NHEAD, NUM_LAYERS, DFF, OUTPUT_DIM)

    fwd = jax.jit(functools.partial(transformer_model_forward, nhead=NHEAD, output_dim=OUTPUT_DIM))
    out = fwd(params, tokens)
    out = jax.block_until_ready(out)

    expected_shape = (SEQ * BATCH * OUTPUT_DIM, 2)   # view(-1, 2) on (S, B, output_dim*2)
    assert out.shape == expected_shape, (out.shape, expected_shape)
    assert bool(jnp.all(jnp.isfinite(out)))
    print("KERNEL_OK")
</pallas_src>

<mosaic_0001>
module attributes {stable_mosaic.version = 11 : i64} {
  func.func @_linear_kernel(%arg0: i32, %arg1: memref<16x256xbf16, #tpu.memory_space<vmem>>, %arg2: memref<256x256xbf16, #tpu.memory_space<vmem>>, %arg3: memref<1x256xf32, #tpu.memory_space<vmem>>, %arg4: memref<16x256xbf16, #tpu.memory_space<vmem>>) attributes {dimension_semantics = [#tpu.dimension_semantics<parallel>], iteration_bounds = array<i64: 1>, scalar_prefetch = 0 : i64, scratch_operands = 0 : i64, tpu.core_type = #tpu.core_type<tc>, window_params = [{transform_indices = @transform_0, window_bounds = array<i64: 16, 256>}, {pipeline_mode = #tpu.pipeline_mode<synchronous>, transform_indices = @transform_1, window_bounds = array<i64: 256, 256>}, {pipeline_mode = #tpu.pipeline_mode<synchronous>, transform_indices = @transform_2, window_bounds = array<i64: 1, 256>}, {transform_indices = @transform_3, window_bounds = array<i64: 16, 256>}]} {
    %c0 = arith.constant 0 : index
    %c0_0 = arith.constant 0 : index
    %0 = vector.load %arg1[%c0, %c0_0] : memref<16x256xbf16, #tpu.memory_space<vmem>>, vector<16x256xbf16>
    %c0_1 = arith.constant 0 : index
    %c0_2 = arith.constant 0 : index
    %1 = vector.load %arg2[%c0_1, %c0_2] : memref<256x256xbf16, #tpu.memory_space<vmem>>, vector<256x256xbf16>
    %cst = arith.constant dense<0.000000e+00> : vector<16x256xf32>
    %2 = tpu.matmul %0, %1, %cst {dimension_numbers = #tpu.dot_dimension_numbers<[1], [0], [0], [1], [0, 0, 1, 1], [], []>} : vector<16x256xbf16>, vector<256x256xbf16>, vector<16x256xf32> -> vector<16x256xf32>
    %c0_3 = arith.constant 0 : index
    %c0_4 = arith.constant 0 : index
    %3 = vector.load %arg3[%c0_3, %c0_4] : memref<1x256xf32, #tpu.memory_space<vmem>>, vector<1x256xf32>
    %4 = vector.broadcast %3 : vector<1x256xf32> to vector<16x256xf32>
    %5 = arith.addf %2, %4 : vector<16x256xf32>
    %6 = arith.truncf %5 : vector<16x256xf32> to vector<16x256xbf16>
    %c0_5 = arith.constant 0 : index
    %c0_6 = arith.constant 0 : index
    %7 = vector.load %arg4[%c0_5, %c0_6] : memref<16x256xbf16, #tpu.memory_space<vmem>>, vector<16x256xbf16>
    tpu.vector_store %arg4[%c0_5, %c0_6], %6 {strides = array<i32>} : memref<16x256xbf16, #tpu.memory_space<vmem>>, vector<16x256xbf16>,
    return
  }
  func.func @transform_0(%arg0: i32) -> (i32, i32) {
    %c0_i32 = arith.constant 0 : i32
    %c0_i32_0 = arith.constant 0 : i32
    return %arg0, %c0_i32 : i32, i32
  }
  func.func @transform_1(%arg0: i32) -> (i32, i32) {
    %c0_i32 = arith.constant 0 : i32
    %c0_i32_0 = arith.constant 0 : i32
    %c0_i32_1 = arith.constant 0 : i32
    return %c0_i32, %c0_i32_0 : i32, i32
  }
  func.func @transform_2(%arg0: i32) -> (i32, i32) {
    %c0_i32 = arith.constant 0 : i32
    %c0_i32_0 = arith.constant 0 : i32
    %c0_i32_1 = arith.constant 0 : i32
    return %c0_i32, %c0_i32_0 : i32, i32
  }
  func.func @transform_3(%arg0: i32) -> (i32, i32) {
    %c0_i32 = arith.constant 0 : i32
    %c0_i32_0 = arith.constant 0 : i32
    return %arg0, %c0_i32 : i32, i32
  }
}

module attributes {stable_mosaic.version = 11 : i64} {
  func.func @_ln_ffn_kernel(%arg0: i32, %arg1: memref<16x256xbf16, #tpu.memory_space<vmem>>, %arg2: memref<16x256xbf16, #tpu.memory_space<vmem>>, %arg3: memref<1x256xf32, #tpu.memory_space<vmem>>, %arg4: memref<1x256xf32, #tpu.memory_space<vmem>>, %arg5: memref<256x512xbf16, #tpu.memory_space<vmem>>, %arg6: memref<1x512xf32, #tpu.memory_space<vmem>>, %arg7: memref<512x256xbf16, #tpu.memory_space<vmem>>, %arg8: memref<1x256xf32, #tpu.memory_space<vmem>>, %arg9: memref<16x256xbf16, #tpu.memory_space<vmem>>, %arg10: memref<16x256xbf16, #tpu.memory_space<vmem>>) attributes {dimension_semantics = [#tpu.dimension_semantics<parallel>], iteration_bounds = array<i64: 1>, scalar_prefetch = 0 : i64, scratch_operands = 0 : i64, tpu.core_type = #tpu.core_type<tc>, window_params = [{transform_indices = @transform_0, window_bounds = array<i64: 16, 256>}, {transform_indices = @transform_1, window_bounds = array<i64: 16, 256>}, {pipeline_mode = #tpu.pipeline_mode<synchronous>, transform_indices = @transform_2, window_bounds = array<i64: 1, 256>}, {pipeline_mode = #tpu.pipeline_mode<synchronous>, transform_indices = @transform_3, window_bounds = array<i64: 1, 256>}, {pipeline_mode = #tpu.pipeline_mode<synchronous>, transform_indices = @transform_4, window_bounds = array<i64: 256, 512>}, {pipeline_mode = #tpu.pipeline_mode<synchronous>, transform_indices = @transform_5, window_bounds = array<i64: 1, 512>}, {pipeline_mode = #tpu.pipeline_mode<synchronous>, transform_indices = @transform_6, window_bounds = array<i64: 512, 256>}, {pipeline_mode = #tpu.pipeline_mode<synchronous>, transform_indices = @transform_7, window_bounds = array<i64: 1, 256>}, {transform_indices = @transform_8, window_bounds = array<i64: 16, 256>}, {transform_indices = @transform_9, window_bounds = array<i64: 16, 256>}]} {
    %c0 = arith.constant 0 : index
    %c0_0 = arith.constant 0 : index
    %0 = vector.load %arg1[%c0, %c0_0] : memref<16x256xbf16, #tpu.memory_space<vmem>>, vector<16x256xbf16>
    %1 = arith.extf %0 : vector<16x256xbf16> to vector<16x256xf32>
    %c0_1 = arith.constant 0 : index
    %c0_2 = arith.constant 0 : index
    %2 = vector.load %arg2[%c0_1, %c0_2] : memref<16x256xbf16, #tpu.memory_space<vmem>>, vector<16x256xbf16>
    %3 = arith.extf %2 : vector<16x256xbf16> to vector<16x256xf32>
    %4 = arith.addf %1, %3 : vector<16x256xf32>
    %c0_3 = arith.constant 0 : index
    %c0_4 = arith.constant 0 : index
    %5 = vector.load %arg3[%c0_3, %c0_4] : memref<1x256xf32, #tpu.memory_space<vmem>>, vector<1x256xf32>
    %c0_5 = arith.constant 0 : index
    %c0_6 = arith.constant 0 : index
    %6 = vector.load %arg4[%c0_5, %c0_6] : memref<1x256xf32, #tpu.memory_space<vmem>>, vector<1x256xf32>
    %cst = arith.constant dense<0.000000e+00> : vector<16xf32>
    %7 = vector.multi_reduction <add>, %4, %cst [1] : vector<16x256xf32> to vector<16xf32>
    %8 = vector.shape_cast %7 : vector<16xf32> to vector<16x1xf32>
    %cst_7 = arith.constant 2.560000e+02 : f32
    %9 = vector.broadcast %cst_7 : f32 to vector<16x1xf32>
    %10 = arith.divf %8, %9 : vector<16x1xf32>
    %11 = vector.broadcast %10 : vector<16x1xf32> to vector<16x256xf32>
    %12 = arith.subf %4, %11 : vector<16x256xf32>
    %13 = arith.mulf %12, %12 : vector<16x256xf32>
    %cst_8 = arith.constant dense<0.000000e+00> : vector<16xf32>
    %14 = vector.multi_reduction <add>, %13, %cst_8 [1] : vector<16x256xf32> to vector<16xf32>
    %15 = vector.shape_cast %14 : vector<16xf32> to vector<16x1xf32>
    %cst_9 = arith.constant 2.560000e+02 : f32
    %16 = vector.broadcast %cst_9 : f32 to vector<16x1xf32>
    %17 = arith.divf %15, %16 : vector<16x1xf32>
    %cst_10 = arith.constant 9.99999974E-6 : f32
    %18 = vector.broadcast %cst_10 : f32 to vector<16x1xf32>
    %19 = arith.addf %17, %18 : vector<16x1xf32>
    %20 = math.rsqrt %19 : vector<16x1xf32>
    %21 = vector.broadcast %20 : vector<16x1xf32> to vector<16x256xf32>
    %22 = arith.mulf %12, %21 : vector<16x256xf32>
    %23 = vector.broadcast %5 : vector<1x256xf32> to vector<16x256xf32>
    %24 = arith.mulf %22, %23 : vector<16x256xf32>
    %25 = vector.broadcast %6 : vector<1x256xf32> to vector<16x256xf32>
    %26 = arith.addf %24, %25 : vector<16x256xf32>
    %27 = arith.truncf %26 : vector<16x256xf32> to vector<16x256xbf16>
    %c0_11 = arith.constant 0 : index
    %c0_12 = arith.constant 0 : index
    %28 = vector.load %arg9[%c0_11, %c0_12] : memref<16x256xbf16, #tpu.memory_space<vmem>>, vector<16x256xbf16>
    tpu.vector_store %arg9[%c0_11, %c0_12], %27 {strides = array<i32>} : memref<16x256xbf16, #tpu.memory_space<vmem>>, vector<16x256xbf16>,
    %29 = arith.truncf %26 : vector<16x256xf32> to vector<16x256xbf16>
    %c0_13 = arith.constant 0 : index
    %c0_14 = arith.constant 0 : index
    %30 = vector.load %arg5[%c0_13, %c0_14] : memref<256x512xbf16, #tpu.memory_space<vmem>>, vector<256x512xbf16>
    %cst_15 = arith.constant dense<0.000000e+00> : vector<16x512xf32>
    %31 = tpu.matmul %29, %30, %cst_15 {dimension_numbers = #tpu.dot_dimension_numbers<[1], [0], [0], [1], [0, 0, 1, 1], [], []>} : vector<16x256xbf16>, vector<256x512xbf16>, vector<16x512xf32> -> vector<16x512xf32>
    %c0_16 = arith.constant 0 : index
    %c0_17 = arith.constant 0 : index
    %32 = vector.load %arg6[%c0_16, %c0_17] : memref<1x512xf32, #tpu.memory_space<vmem>>, vector<1x512xf32>
    %33 = vector.broadcast %32 : vector<1x512xf32> to vector<16x512xf32>
    %34 = arith.addf %31, %33 : vector<16x512xf32>
    %cst_18 = arith.constant 0.000000e+00 : f32
    %35 = vector.broadcast %cst_18 : f32 to vector<16x512xf32>
    %36 = arith.maximumf %34, %35 : vector<16x512xf32>
    %37 = arith.truncf %36 : vector<16x512xf32> to vector<16x512xbf16>
    %c0_19 = arith.constant 0 : index
    %c0_20 = arith.constant 0 : index
    %38 = vector.load %arg7[%c0_19, %c0_20] : memref<512x256xbf16, #tpu.memory_space<vmem>>, vector<512x256xbf16>
    %cst_21 = arith.constant dense<0.000000e+00> : vector<16x256xf32>
    %39 = tpu.matmul %37, %38, %cst_21 {dimension_numbers = #tpu.dot_dimension_numbers<[1], [0], [0], [1], [0, 0, 1, 1], [], []>} : vector<16x512xbf16>, vector<512x256xbf16>, vector<16x256xf32> -> vector<16x256xf32>
    %c0_22 = arith.constant 0 : index
    %c0_23 = arith.constant 0 : index
    %40 = vector.load %arg8[%c0_22, %c0_23] : memref<1x256xf32, #tpu.memory_space<vmem>>, vector<1x256xf32>
    %41 = vector.broadcast %40 : vector<1x256xf32> to vector<16x256xf32>
    %42 = arith.addf %39, %41 : vector<16x256xf32>
    %43 = arith.truncf %42 : vector<16x256xf32> to vector<16x256xbf16>
    %c0_24 = arith.constant 0 : index
    %c0_25 = arith.constant 0 : index
    %44 = vector.load %arg10[%c0_24, %c0_25] : memref<16x256xbf16, #tpu.memory_space<vmem>>, vector<16x256xbf16>
    tpu.vector_store %arg10[%c0_24, %c0_25], %43 {strides = array<i32>} : memref<16x256xbf16, #tpu.memory_space<vmem>>, vector<16x256xbf16>,
    return
  }
  func.func @transform_0(%arg0: i32) -> (i32, i32) {
    %c0_i32 = arith.constant 0 : i32
    %c0_i32_0 = arith.constant 0 : i32
    return %arg0, %c0_i32 : i32, i32
  }
  func.func @transform_1(%arg0: i32) -> (i32, i32) {
    %c0_i32 = arith.constant 0 : i32
    %c0_i32_0 = arith.constant 0 : i32
    return %arg0, %c0_i32 : i32, i32
  }
  func.func @transform_2(%arg0: i32) -> (i32, i32) {
    %c0_i32 = arith.constant 0 : i32
    %c0_i32_0 = arith.constant 0 : i32
    %c0_i32_1 = arith.constant 0 : i32
    return %c0_i32, %c0_i32_0 : i32, i32
  }
  func.func @transform_3(%arg0: i32) -> (i32, i32) {
    %c0_i32 = arith.constant 0 : i32
    %c0_i32_0 = arith.constant 0 : i32
    %c0_i32_1 = arith.constant 0 : i32
    return %c0_i32, %c0_i32_0 : i32, i32
  }
  func.func @transform_4(%arg0: i32) -> (i32, i32) {
    %c0_i32 = arith.constant 0 : i32
    %c0_i32_0 = arith.constant 0 : i32
    %c0_i32_1 = arith.constant 0 : i32
    return %c0_i32, %c0_i32_0 : i32, i32
  }
  func.func @transform_5(%arg0: i32) -> (i32, i32) {
    %c0_i32 = arith.constant 0 : i32
    %c0_i32_0 = arith.constant 0 : i32
    %c0_i32_1 = arith.constant 0 : i32
    return %c0_i32, %c0_i32_0 : i32, i32
  }
  func.func @transform_6(%arg0: i32) -> (i32, i32) {
    %c0_i32 = arith.constant 0 : i32
    %c0_i32_0 = arith.constant 0 : i32
    %c0_i32_1 = arith.constant 0 : i32
    return %c0_i32, %c0_i32_0 : i32, i32
  }
  func.func @transform_7(%arg0: i32) -> (i32, i32) {
    %c0_i32 = arith.constant 0 : i32
    %c0_i32_0 = arith.constant 0 : i32
    %c0_i32_1 = arith.constant 0 : i32
    return %c0_i32, %c0_i32_0 : i32, i32
  }
  func.func @transform_8(%arg0: i32) -> (i32, i32) {
    %c0_i32 = arith.constant 0 : i32
    %c0_i32_0 = arith.constant 0 : i32
    return %arg0, %c0_i32 : i32, i32
  }
  func.func @transform_9(%arg0: i32) -> (i32, i32) {
    %c0_i32 = arith.constant 0 : i32
    %c0_i32_0 = arith.constant 0 : i32
    return %arg0, %c0_i32 : i32, i32
  }
}

module attributes {stable_mosaic.version = 11 : i64} {
  func.func @_attn_kernel(%arg0: i32, %arg1: i32, %arg2: i32, %arg3: memref<1x8x128xbf16, #tpu.memory_space<vmem>>, %arg4: memref<1x8x128xbf16, #tpu.memory_space<vmem>>, %arg5: memref<1x8x128xbf16, #tpu.memory_space<vmem>>, %arg6: memref<1x8x128xbf16, #tpu.memory_space<vmem>>) attributes {dimension_semantics = [#tpu.dimension_semantics<parallel>, #tpu.dimension_semantics<parallel>, #tpu.dimension_semantics<parallel>], iteration_bounds = array<i64: 2, 2, 1>, scalar_prefetch = 0 : i64, scratch_operands = 0 : i64, tpu.core_type = #tpu.core_type<tc>, window_params = [{transform_indices = @transform_0, window_bounds = array<i64: 1, 8, 128>}, {transform_indices = @transform_1, window_bounds = array<i64: 1, 8, 128>}, {transform_indices = @transform_2, window_bounds = array<i64: 1, 8, 128>}, {transform_indices = @transform_3, window_bounds = array<i64: 1, 8, 128>}]} {
    %c0 = arith.constant 0 : index
    %c0_0 = arith.constant 0 : index
    %c0_1 = arith.constant 0 : index
    %0 = vector.load %arg3[%c0, %c0_0, %c0_1] : memref<1x8x128xbf16, #tpu.memory_space<vmem>>, vector<1x8x128xbf16>
    %1 = vector.shape_cast %0 : vector<1x8x128xbf16> to vector<8x128xbf16>
    %2 = arith.extf %1 : vector<8x128xbf16> to vector<8x128xf32>
    %cst = arith.constant 1.250000e-01 : f32
    %3 = vector.broadcast %cst : f32 to vector<8x128xf32>
    %4 = arith.mulf %2, %3 : vector<8x128xf32>
    %c0_2 = arith.constant 0 : index
    %c0_3 = arith.constant 0 : index
    %c0_4 = arith.constant 0 : index
    %5 = vector.load %arg4[%c0_2, %c0_3, %c0_4] : memref<1x8x128xbf16, #tpu.memory_space<vmem>>, vector<1x8x128xbf16>
    %6 = vector.shape_cast %5 : vector<1x8x128xbf16> to vector<8x128xbf16>
    %c0_5 = arith.constant 0 : index
    %c0_6 = arith.constant 0 : index
    %c0_7 = arith.constant 0 : index
    %7 = vector.load %arg5[%c0_5, %c0_6, %c0_7] : memref<1x8x128xbf16, #tpu.memory_space<vmem>>, vector<1x8x128xbf16>
    %8 = vector.shape_cast %7 : vector<1x8x128xbf16> to vector<8x128xbf16>
    %9 = vector.extract_strided_slice %4 {offsets = [0, 0], sizes = [8, 64], strides = [1, 1]} : vector<8x128xf32> to vector<8x64xf32>
    %10 = arith.truncf %9 : vector<8x64xf32> to vector<8x64xbf16>
    %11 = vector.extract_strided_slice %6 {offsets = [0, 0], sizes = [8, 64], strides = [1, 1]} : vector<8x128xbf16> to vector<8x64xbf16>
    %12 = vector.extract_strided_slice %8 {offsets = [0, 0], sizes = [8, 64], strides = [1, 1]} : vector<8x128xbf16> to vector<8x64xbf16>
    %cst_8 = arith.constant dense<0.000000e+00> : vector<8x8xf32>
    %13 = tpu.matmul %10, %11, %cst_8 {dimension_numbers = #tpu.dot_dimension_numbers<[1], [1], [0], [0], [0, 0, 1, 0], [], []>} : vector<8x64xbf16>, vector<8x64xbf16>, vector<8x8xf32> -> vector<8x8xf32>
    %cst_9 = arith.constant dense<0xFF800000> : vector<8xf32>
    %14 = vector.multi_reduction <maximumf>, %13, %cst_9 [1] : vector<8x8xf32> to vector<8xf32>
    %15 = vector.shape_cast %14 : vector<8xf32> to vector<8x1xf32>
    %16 = vector.broadcast %15 : vector<8x1xf32> to vector<8x8xf32>
    %17 = arith.subf %13, %16 : vector<8x8xf32>
    %18 = math.exp %17 : vector<8x8xf32>
    %cst_10 = arith.constant dense<0.000000e+00> : vector<8xf32>
    %19 = vector.multi_reduction <add>, %18, %cst_10 [1] : vector<8x8xf32> to vector<8xf32>
    %20 = vector.shape_cast %19 : vector<8xf32> to vector<8x1xf32>
    %21 = arith.truncf %18 : vector<8x8xf32> to vector<8x8xbf16>
    %cst_11 = arith.constant dense<0.000000e+00> : vector<8x64xf32>
    %22 = tpu.matmul %21, %12, %cst_11 {dimension_numbers = #tpu.dot_dimension_numbers<[1], [0], [0], [1], [0, 0, 1, 1], [], []>} : vector<8x8xbf16>, vector<8x64xbf16>, vector<8x64xf32> -> vector<8x64xf32>
    %23 = tpu.reciprocal %20 {approx = true} : vector<8x1xf32> -> vector<8x1xf32>
    %24 = vector.broadcast %23 : vector<8x1xf32> to vector<8x64xf32>
    %25 = arith.mulf %22, %24 : vector<8x64xf32>
    %26 = vector.extract_strided_slice %4 {offsets = [0, 64], sizes = [8, 64], strides = [1, 1]} : vector<8x128xf32> to vector<8x64xf32>
    %27 = arith.truncf %26 : vector<8x64xf32> to vector<8x64xbf16>
    %28 = vector.extract_strided_slice %6 {offsets = [0, 64], sizes = [8, 64], strides = [1, 1]} : vector<8x128xbf16> to vector<8x64xbf16>
    %29 = vector.extract_strided_slice %8 {offsets = [0, 64], sizes = [8, 64], strides = [1, 1]} : vector<8x128xbf16> to vector<8x64xbf16>
    %cst_12 = arith.constant dense<0.000000e+00> : vector<8x8xf32>
    %30 = tpu.matmul %27, %28, %cst_12 {dimension_numbers = #tpu.dot_dimension_numbers<[1], [1], [0], [0], [0, 0, 1, 0], [], []>} : vector<8x64xbf16>, vector<8x64xbf16>, vector<8x8xf32> -> vector<8x8xf32>
    %cst_13 = arith.constant dense<0xFF800000> : vector<8xf32>
    %31 = vector.multi_reduction <maximumf>, %30, %cst_13 [1] : vector<8x8xf32> to vector<8xf32>
    %32 = vector.shape_cast %31 : vector<8xf32> to vector<8x1xf32>
    %33 = vector.broadcast %32 : vector<8x1xf32> to vector<8x8xf32>
    %34 = arith.subf %30, %33 : vector<8x8xf32>
    %35 = math.exp %34 : vector<8x8xf32>
    %cst_14 = arith.constant dense<0.000000e+00> : vector<8xf32>
    %36 = vector.multi_reduction <add>, %35, %cst_14 [1] : vector<8x8xf32> to vector<8xf32>
    %37 = vector.shape_cast %36 : vector<8xf32> to vector<8x1xf32>
    %38 = arith.truncf %35 : vector<8x8xf32> to vector<8x8xbf16>
    %cst_15 = arith.constant dense<0.000000e+00> : vector<8x64xf32>
    %39 = tpu.matmul %38, %29, %cst_15 {dimension_numbers = #tpu.dot_dimension_numbers<[1], [0], [0], [1], [0, 0, 1, 1], [], []>} : vector<8x8xbf16>, vector<8x64xbf16>, vector<8x64xf32> -> vector<8x64xf32>
    %40 = tpu.reciprocal %37 {approx = true} : vector<8x1xf32> -> vector<8x1xf32>
    %41 = vector.broadcast %40 : vector<8x1xf32> to vector<8x64xf32>
    %42 = arith.mulf %39, %41 : vector<8x64xf32>
    %43 = tpu.concatenate %25, %42 in 1 : vector<8x64xf32>, vector<8x64xf32> -> vector<8x128xf32>
    %44 = arith.truncf %43 : vector<8x128xf32> to vector<8x128xbf16>
    %c0_16 = arith.constant 0 : index
    %c0_17 = arith.constant 0 : index
    %c0_18 = arith.constant 0 : index
    %45 = vector.load %arg6[%c0_16, %c0_17, %c0_18] : memref<1x8x128xbf16, #tpu.memory_space<vmem>>, vector<1x8x128xbf16>
    %46 = vector.shape_cast %45 : vector<1x8x128xbf16> to vector<8x128xbf16>
    %47 = vector.shape_cast %44 : vector<8x128xbf16> to vector<1x8x128xbf16>
    tpu.vector_store %arg6[%c0_16, %c0_17, %c0_18], %47 {strides = array<i32>} : memref<1x8x128xbf16, #tpu.memory_space<vmem>>, vector<1x8x128xbf16>,
    return
  }
  func.func @transform_0(%arg0: i32, %arg1: i32, %arg2: i32) -> (i32, i32, i32) {
    %c0_i32 = arith.constant 0 : i32
    return %arg0, %arg2, %arg1 : i32, i32, i32
  }
  func.func @transform_1(%arg0: i32, %arg1: i32, %arg2: i32) -> (i32, i32, i32) {
    %c2_i32 = arith.constant 2 : i32
    %0 = arith.addi %c2_i32, %arg1 : i32
    %c0_i32 = arith.constant 0 : i32
    %c0_i32_0 = arith.constant 0 : i32
    return %arg0, %c0_i32, %0 : i32, i32, i32
  }
  func.func @transform_2(%arg0: i32, %arg1: i32, %arg2: i32) -> (i32, i32, i32) {
    %c4_i32 = arith.constant 4 : i32
    %0 = arith.addi %c4_i32, %arg1 : i32
    %c0_i32 = arith.constant 0 : i32
    %c0_i32_0 = arith.constant 0 : i32
    return %arg0, %c0_i32, %0 : i32, i32, i32
  }
  func.func @transform_3(%arg0: i32, %arg1: i32, %arg2: i32) -> (i32, i32, i32) {
    %c0_i32 = arith.constant 0 : i32
    return %arg0, %arg2, %arg1 : i32, i32, i32
  }
}

module attributes {stable_mosaic.version = 11 : i64} {
  func.func @_linear_kernel(%arg0: i32, %arg1: memref<16x256xbf16, #tpu.memory_space<vmem>>, %arg2: memref<256x768xbf16, #tpu.memory_space<vmem>>, %arg3: memref<1x768xf32, #tpu.memory_space<vmem>>, %arg4: memref<16x768xbf16, #tpu.memory_space<vmem>>) attributes {dimension_semantics = [#tpu.dimension_semantics<parallel>], iteration_bounds = array<i64: 1>, scalar_prefetch = 0 : i64, scratch_operands = 0 : i64, tpu.core_type = #tpu.core_type<tc>, window_params = [{transform_indices = @transform_0, window_bounds = array<i64: 16, 256>}, {pipeline_mode = #tpu.pipeline_mode<synchronous>, transform_indices = @transform_1, window_bounds = array<i64: 256, 768>}, {pipeline_mode = #tpu.pipeline_mode<synchronous>, transform_indices = @transform_2, window_bounds = array<i64: 1, 768>}, {transform_indices = @transform_3, window_bounds = array<i64: 16, 768>}]} {
    %c0 = arith.constant 0 : index
    %c0_0 = arith.constant 0 : index
    %0 = vector.load %arg1[%c0, %c0_0] : memref<16x256xbf16, #tpu.memory_space<vmem>>, vector<16x256xbf16>
    %c0_1 = arith.constant 0 : index
    %c0_2 = arith.constant 0 : index
    %1 = vector.load %arg2[%c0_1, %c0_2] : memref<256x768xbf16, #tpu.memory_space<vmem>>, vector<256x768xbf16>
    %cst = arith.constant dense<0.000000e+00> : vector<16x768xf32>
    %2 = tpu.matmul %0, %1, %cst {dimension_numbers = #tpu.dot_dimension_numbers<[1], [0], [0], [1], [0, 0, 1, 1], [], []>} : vector<16x256xbf16>, vector<256x768xbf16>, vector<16x768xf32> -> vector<16x768xf32>
    %c0_3 = arith.constant 0 : index
    %c0_4 = arith.constant 0 : index
    %3 = vector.load %arg3[%c0_3, %c0_4] : memref<1x768xf32, #tpu.memory_space<vmem>>, vector<1x768xf32>
    %4 = vector.broadcast %3 : vector<1x768xf32> to vector<16x768xf32>
    %5 = arith.addf %2, %4 : vector<16x768xf32>
    %6 = arith.truncf %5 : vector<16x768xf32> to vector<16x768xbf16>
    %c0_5 = arith.constant 0 : index
    %c0_6 = arith.constant 0 : index
    %7 = vector.load %arg4[%c0_5, %c0_6] : memref<16x768xbf16, #tpu.memory_space<vmem>>, vector<16x768xbf16>
    tpu.vector_store %arg4[%c0_5, %c0_6], %6 {strides = array<i32>} : memref<16x768xbf16, #tpu.memory_space<vmem>>, vector<16x768xbf16>,
    return
  }
  func.func @transform_0(%arg0: i32) -> (i32, i32) {
    %c0_i32 = arith.constant 0 : i32
    %c0_i32_0 = arith.constant 0 : i32
    return %arg0, %c0_i32 : i32, i32
  }
  func.func @transform_1(%arg0: i32) -> (i32, i32) {
    %c0_i32 = arith.constant 0 : i32
    %c0_i32_0 = arith.constant 0 : i32
    %c0_i32_1 = arith.constant 0 : i32
    return %c0_i32, %c0_i32_0 : i32, i32
  }
  func.func @transform_2(%arg0: i32) -> (i32, i32) {
    %c0_i32 = arith.constant 0 : i32
    %c0_i32_0 = arith.constant 0 : i32
    %c0_i32_1 = arith.constant 0 : i32
    return %c0_i32, %c0_i32_0 : i32, i32
  }
  func.func @transform_3(%arg0: i32) -> (i32, i32) {
    %c0_i32 = arith.constant 0 : i32
    %c0_i32_0 = arith.constant 0 : i32
    return %arg0, %c0_i32 : i32, i32
  }
}

module attributes {stable_mosaic.version = 11 : i64} {
  func.func @_ln_linear_kernel(%arg0: i32, %arg1: memref<16x256xbf16, #tpu.memory_space<vmem>>, %arg2: memref<16x256xbf16, #tpu.memory_space<vmem>>, %arg3: memref<1x256xf32, #tpu.memory_space<vmem>>, %arg4: memref<1x256xf32, #tpu.memory_space<vmem>>, %arg5: memref<256x768xbf16, #tpu.memory_space<vmem>>, %arg6: memref<1x768xf32, #tpu.memory_space<vmem>>, %arg7: memref<16x256xbf16, #tpu.memory_space<vmem>>, %arg8: memref<16x768xbf16, #tpu.memory_space<vmem>>) attributes {dimension_semantics = [#tpu.dimension_semantics<parallel>], iteration_bounds = array<i64: 1>, scalar_prefetch = 0 : i64, scratch_operands = 0 : i64, tpu.core_type = #tpu.core_type<tc>, window_params = [{transform_indices = @transform_0, window_bounds = array<i64: 16, 256>}, {transform_indices = @transform_1, window_bounds = array<i64: 16, 256>}, {pipeline_mode = #tpu.pipeline_mode<synchronous>, transform_indices = @transform_2, window_bounds = array<i64: 1, 256>}, {pipeline_mode = #tpu.pipeline_mode<synchronous>, transform_indices = @transform_3, window_bounds = array<i64: 1, 256>}, {pipeline_mode = #tpu.pipeline_mode<synchronous>, transform_indices = @transform_4, window_bounds = array<i64: 256, 768>}, {pipeline_mode = #tpu.pipeline_mode<synchronous>, transform_indices = @transform_5, window_bounds = array<i64: 1, 768>}, {transform_indices = @transform_6, window_bounds = array<i64: 16, 256>}, {transform_indices = @transform_7, window_bounds = array<i64: 16, 768>}]} {
    %c0 = arith.constant 0 : index
    %c0_0 = arith.constant 0 : index
    %0 = vector.load %arg1[%c0, %c0_0] : memref<16x256xbf16, #tpu.memory_space<vmem>>, vector<16x256xbf16>
    %1 = arith.extf %0 : vector<16x256xbf16> to vector<16x256xf32>
    %c0_1 = arith.constant 0 : index
    %c0_2 = arith.constant 0 : index
    %2 = vector.load %arg2[%c0_1, %c0_2] : memref<16x256xbf16, #tpu.memory_space<vmem>>, vector<16x256xbf16>
    %3 = arith.extf %2 : vector<16x256xbf16> to vector<16x256xf32>
    %4 = arith.addf %1, %3 : vector<16x256xf32>
    %c0_3 = arith.constant 0 : index
    %c0_4 = arith.constant 0 : index
    %5 = vector.load %arg3[%c0_3, %c0_4] : memref<1x256xf32, #tpu.memory_space<vmem>>, vector<1x256xf32>
    %c0_5 = arith.constant 0 : index
    %c0_6 = arith.constant 0 : index
    %6 = vector.load %arg4[%c0_5, %c0_6] : memref<1x256xf32, #tpu.memory_space<vmem>>, vector<1x256xf32>
    %cst = arith.constant dense<0.000000e+00> : vector<16xf32>
    %7 = vector.multi_reduction <add>, %4, %cst [1] : vector<16x256xf32> to vector<16xf32>
    %8 = vector.shape_cast %7 : vector<16xf32> to vector<16x1xf32>
    %cst_7 = arith.constant 2.560000e+02 : f32
    %9 = vector.broadcast %cst_7 : f32 to vector<16x1xf32>
    %10 = arith.divf %8, %9 : vector<16x1xf32>
    %11 = vector.broadcast %10 : vector<16x1xf32> to vector<16x256xf32>
    %12 = arith.subf %4, %11 : vector<16x256xf32>
    %13 = arith.mulf %12, %12 : vector<16x256xf32>
    %cst_8 = arith.constant dense<0.000000e+00> : vector<16xf32>
    %14 = vector.multi_reduction <add>, %13, %cst_8 [1] : vector<16x256xf32> to vector<16xf32>
    %15 = vector.shape_cast %14 : vector<16xf32> to vector<16x1xf32>
    %cst_9 = arith.constant 2.560000e+02 : f32
    %16 = vector.broadcast %cst_9 : f32 to vector<16x1xf32>
    %17 = arith.divf %15, %16 : vector<16x1xf32>
    %cst_10 = arith.constant 9.99999974E-6 : f32
    %18 = vector.broadcast %cst_10 : f32 to vector<16x1xf32>
    %19 = arith.addf %17, %18 : vector<16x1xf32>
    %20 = math.rsqrt %19 : vector<16x1xf32>
    %21 = vector.broadcast %20 : vector<16x1xf32> to vector<16x256xf32>
    %22 = arith.mulf %12, %21 : vector<16x256xf32>
    %23 = vector.broadcast %5 : vector<1x256xf32> to vector<16x256xf32>
    %24 = arith.mulf %22, %23 : vector<16x256xf32>
    %25 = vector.broadcast %6 : vector<1x256xf32> to vector<16x256xf32>
    %26 = arith.addf %24, %25 : vector<16x256xf32>
    %27 = arith.truncf %26 : vector<16x256xf32> to vector<16x256xbf16>
    %c0_11 = arith.constant 0 : index
    %c0_12 = arith.constant 0 : index
    %28 = vector.load %arg7[%c0_11, %c0_12] : memref<16x256xbf16, #tpu.memory_space<vmem>>, vector<16x256xbf16>
    tpu.vector_store %arg7[%c0_11, %c0_12], %27 {strides = array<i32>} : memref<16x256xbf16, #tpu.memory_space<vmem>>, vector<16x256xbf16>,
    %29 = arith.truncf %26 : vector<16x256xf32> to vector<16x256xbf16>
    %c0_13 = arith.constant 0 : index
    %c0_14 = arith.constant 0 : index
    %30 = vector.load %arg5[%c0_13, %c0_14] : memref<256x768xbf16, #tpu.memory_space<vmem>>, vector<256x768xbf16>
    %cst_15 = arith.constant dense<0.000000e+00> : vector<16x768xf32>
    %31 = tpu.matmul %29, %30, %cst_15 {dimension_numbers = #tpu.dot_dimension_numbers<[1], [0], [0], [1], [0, 0, 1, 1], [], []>} : vector<16x256xbf16>, vector<256x768xbf16>, vector<16x768xf32> -> vector<16x768xf32>
    %c0_16 = arith.constant 0 : index
    %c0_17 = arith.constant 0 : index
    %32 = vector.load %arg6[%c0_16, %c0_17] : memref<1x768xf32, #tpu.memory_space<vmem>>, vector<1x768xf32>
    %33 = vector.broadcast %32 : vector<1x768xf32> to vector<16x768xf32>
    %34 = arith.addf %31, %33 : vector<16x768xf32>
    %35 = arith.truncf %34 : vector<16x768xf32> to vector<16x768xbf16>
    %c0_18 = arith.constant 0 : index
    %c0_19 = arith.constant 0 : index
    %36 = vector.load %arg8[%c0_18, %c0_19] : memref<16x768xbf16, #tpu.memory_space<vmem>>, vector<16x768xbf16>
    tpu.vector_store %arg8[%c0_18, %c0_19], %35 {strides = array<i32>} : memref<16x768xbf16, #tpu.memory_space<vmem>>, vector<16x768xbf16>,
    return
  }
  func.func @transform_0(%arg0: i32) -> (i32, i32) {
    %c0_i32 = arith.constant 0 : i32
    %c0_i32_0 = arith.constant 0 : i32
    return %arg0, %c0_i32 : i32, i32
  }
  func.func @transform_1(%arg0: i32) -> (i32, i32) {
    %c0_i32 = arith.constant 0 : i32
    %c0_i32_0 = arith.constant 0 : i32
    return %arg0, %c0_i32 : i32, i32
  }
  func.func @transform_2(%arg0: i32) -> (i32, i32) {
    %c0_i32 = arith.constant 0 : i32
    %c0_i32_0 = arith.constant 0 : i32
    %c0_i32_1 = arith.constant 0 : i32
    return %c0_i32, %c0_i32_0 : i32, i32
  }
  func.func @transform_3(%arg0: i32) -> (i32, i32) {
    %c0_i32 = arith.constant 0 : i32
    %c0_i32_0 = arith.constant 0 : i32
    %c0_i32_1 = arith.constant 0 : i32
    return %c0_i32, %c0_i32_0 : i32, i32
  }
  func.func @transform_4(%arg0: i32) -> (i32, i32) {
    %c0_i32 = arith.constant 0 : i32
    %c0_i32_0 = arith.constant 0 : i32
    %c0_i32_1 = arith.constant 0 : i32
    return %c0_i32, %c0_i32_0 : i32, i32
  }
  func.func @transform_5(%arg0: i32) -> (i32, i32) {
    %c0_i32 = arith.constant 0 : i32
    %c0_i32_0 = arith.constant 0 : i32
    %c0_i32_1 = arith.constant 0 : i32
    return %c0_i32, %c0_i32_0 : i32, i32
  }
  func.func @transform_6(%arg0: i32) -> (i32, i32) {
    %c0_i32 = arith.constant 0 : i32
    %c0_i32_0 = arith.constant 0 : i32
    return %arg0, %c0_i32 : i32, i32
  }
  func.func @transform_7(%arg0: i32) -> (i32, i32) {
    %c0_i32 = arith.constant 0 : i32
    %c0_i32_0 = arith.constant 0 : i32
    return %arg0, %c0_i32 : i32, i32
  }
}

module attributes {stable_mosaic.version = 11 : i64} {
  func.func @_add_layernorm_kernel(%arg0: i32, %arg1: memref<16x256xbf16, #tpu.memory_space<vmem>>, %arg2: memref<16x256xbf16, #tpu.memory_space<vmem>>, %arg3: memref<1x256xf32, #tpu.memory_space<vmem>>, %arg4: memref<1x256xf32, #tpu.memory_space<vmem>>, %arg5: memref<16x256xbf16, #tpu.memory_space<vmem>>) attributes {dimension_semantics = [#tpu.dimension_semantics<parallel>], iteration_bounds = array<i64: 1>, scalar_prefetch = 0 : i64, scratch_operands = 0 : i64, tpu.core_type = #tpu.core_type<tc>, window_params = [{transform_indices = @transform_0, window_bounds = array<i64: 16, 256>}, {transform_indices = @transform_1, window_bounds = array<i64: 16, 256>}, {pipeline_mode = #tpu.pipeline_mode<synchronous>, transform_indices = @transform_2, window_bounds = array<i64: 1, 256>}, {pipeline_mode = #tpu.pipeline_mode<synchronous>, transform_indices = @transform_3, window_bounds = array<i64: 1, 256>}, {transform_indices = @transform_4, window_bounds = array<i64: 16, 256>}]} {
    %c0 = arith.constant 0 : index
    %c0_0 = arith.constant 0 : index
    %0 = vector.load %arg1[%c0, %c0_0] : memref<16x256xbf16, #tpu.memory_space<vmem>>, vector<16x256xbf16>
    %1 = arith.extf %0 : vector<16x256xbf16> to vector<16x256xf32>
    %c0_1 = arith.constant 0 : index
    %c0_2 = arith.constant 0 : index
    %2 = vector.load %arg2[%c0_1, %c0_2] : memref<16x256xbf16, #tpu.memory_space<vmem>>, vector<16x256xbf16>
    %3 = arith.extf %2 : vector<16x256xbf16> to vector<16x256xf32>
    %4 = arith.addf %1, %3 : vector<16x256xf32>
    %c0_3 = arith.constant 0 : index
    %c0_4 = arith.constant 0 : index
    %5 = vector.load %arg3[%c0_3, %c0_4] : memref<1x256xf32, #tpu.memory_space<vmem>>, vector<1x256xf32>
    %c0_5 = arith.constant 0 : index
    %c0_6 = arith.constant 0 : index
    %6 = vector.load %arg4[%c0_5, %c0_6] : memref<1x256xf32, #tpu.memory_space<vmem>>, vector<1x256xf32>
    %cst = arith.constant dense<0.000000e+00> : vector<16xf32>
    %7 = vector.multi_reduction <add>, %4, %cst [1] : vector<16x256xf32> to vector<16xf32>
    %8 = vector.shape_cast %7 : vector<16xf32> to vector<16x1xf32>
    %cst_7 = arith.constant 2.560000e+02 : f32
    %9 = vector.broadcast %cst_7 : f32 to vector<16x1xf32>
    %10 = arith.divf %8, %9 : vector<16x1xf32>
    %11 = vector.broadcast %10 : vector<16x1xf32> to vector<16x256xf32>
    %12 = arith.subf %4, %11 : vector<16x256xf32>
    %13 = arith.mulf %12, %12 : vector<16x256xf32>
    %cst_8 = arith.constant dense<0.000000e+00> : vector<16xf32>
    %14 = vector.multi_reduction <add>, %13, %cst_8 [1] : vector<16x256xf32> to vector<16xf32>
    %15 = vector.shape_cast %14 : vector<16xf32> to vector<16x1xf32>
    %cst_9 = arith.constant 2.560000e+02 : f32
    %16 = vector.broadcast %cst_9 : f32 to vector<16x1xf32>
    %17 = arith.divf %15, %16 : vector<16x1xf32>
    %cst_10 = arith.constant 9.99999974E-6 : f32
    %18 = vector.broadcast %cst_10 : f32 to vector<16x1xf32>
    %19 = arith.addf %17, %18 : vector<16x1xf32>
    %20 = math.rsqrt %19 : vector<16x1xf32>
    %21 = vector.broadcast %20 : vector<16x1xf32> to vector<16x256xf32>
    %22 = arith.mulf %12, %21 : vector<16x256xf32>
    %23 = vector.broadcast %5 : vector<1x256xf32> to vector<16x256xf32>
    %24 = arith.mulf %22, %23 : vector<16x256xf32>
    %25 = vector.broadcast %6 : vector<1x256xf32> to vector<16x256xf32>
    %26 = arith.addf %24, %25 : vector<16x256xf32>
    %27 = arith.truncf %26 : vector<16x256xf32> to vector<16x256xbf16>
    %c0_11 = arith.constant 0 : index
    %c0_12 = arith.constant 0 : index
    %28 = vector.load %arg5[%c0_11, %c0_12] : memref<16x256xbf16, #tpu.memory_space<vmem>>, vector<16x256xbf16>
    tpu.vector_store %arg5[%c0_11, %c0_12], %27 {strides = array<i32>} : memref<16x256xbf16, #tpu.memory_space<vmem>>, vector<16x256xbf16>,
    return
  }
  func.func @transform_0(%arg0: i32) -> (i32, i32) {
    %c0_i32 = arith.constant 0 : i32
    %c0_i32_0 = arith.constant 0 : i32
    return %arg0, %c0_i32 : i32, i32
  }
  func.func @transform_1(%arg0: i32) -> (i32, i32) {
    %c0_i32 = arith.constant 0 : i32
    %c0_i32_0 = arith.constant 0 : i32
    return %arg0, %c0_i32 : i32, i32
  }
  func.func @transform_2(%arg0: i32) -> (i32, i32) {
    %c0_i32 = arith.constant 0 : i32
    %c0_i32_0 = arith.constant 0 : i32
    %c0_i32_1 = arith.constant 0 : i32
    return %c0_i32, %c0_i32_0 : i32, i32
  }
  func.func @transform_3(%arg0: i32) -> (i32, i32) {
    %c0_i32 = arith.constant 0 : i32
    %c0_i32_0 = arith.constant 0 : i32
    %c0_i32_1 = arith.constant 0 : i32
    return %c0_i32, %c0_i32_0 : i32, i32
  }
  func.func @transform_4(%arg0: i32) -> (i32, i32) {
    %c0_i32 = arith.constant 0 : i32
    %c0_i32_0 = arith.constant 0 : i32
    return %arg0, %c0_i32 : i32, i32
  }
}

module attributes {stable_mosaic.version = 11 : i64} {
  func.func @_layernorm_kernel(%arg0: i32, %arg1: memref<16x256xbf16, #tpu.memory_space<vmem>>, %arg2: memref<1x256xf32, #tpu.memory_space<vmem>>, %arg3: memref<1x256xf32, #tpu.memory_space<vmem>>, %arg4: memref<16x256xbf16, #tpu.memory_space<vmem>>) attributes {dimension_semantics = [#tpu.dimension_semantics<parallel>], iteration_bounds = array<i64: 1>, scalar_prefetch = 0 : i64, scratch_operands = 0 : i64, tpu.core_type = #tpu.core_type<tc>, window_params = [{transform_indices = @transform_0, window_bounds = array<i64: 16, 256>}, {pipeline_mode = #tpu.pipeline_mode<synchronous>, transform_indices = @transform_1, window_bounds = array<i64: 1, 256>}, {pipeline_mode = #tpu.pipeline_mode<synchronous>, transform_indices = @transform_2, window_bounds = array<i64: 1, 256>}, {transform_indices = @transform_3, window_bounds = array<i64: 16, 256>}]} {
    %c0 = arith.constant 0 : index
    %c0_0 = arith.constant 0 : index
    %0 = vector.load %arg1[%c0, %c0_0] : memref<16x256xbf16, #tpu.memory_space<vmem>>, vector<16x256xbf16>
    %1 = arith.extf %0 : vector<16x256xbf16> to vector<16x256xf32>
    %c0_1 = arith.constant 0 : index
    %c0_2 = arith.constant 0 : index
    %2 = vector.load %arg2[%c0_1, %c0_2] : memref<1x256xf32, #tpu.memory_space<vmem>>, vector<1x256xf32>
    %c0_3 = arith.constant 0 : index
    %c0_4 = arith.constant 0 : index
    %3 = vector.load %arg3[%c0_3, %c0_4] : memref<1x256xf32, #tpu.memory_space<vmem>>, vector<1x256xf32>
    %cst = arith.constant dense<0.000000e+00> : vector<16xf32>
    %4 = vector.multi_reduction <add>, %1, %cst [1] : vector<16x256xf32> to vector<16xf32>
    %5 = vector.shape_cast %4 : vector<16xf32> to vector<16x1xf32>
    %cst_5 = arith.constant 2.560000e+02 : f32
    %6 = vector.broadcast %cst_5 : f32 to vector<16x1xf32>
    %7 = arith.divf %5, %6 : vector<16x1xf32>
    %8 = vector.broadcast %7 : vector<16x1xf32> to vector<16x256xf32>
    %9 = arith.subf %1, %8 : vector<16x256xf32>
    %10 = arith.mulf %9, %9 : vector<16x256xf32>
    %cst_6 = arith.constant dense<0.000000e+00> : vector<16xf32>
    %11 = vector.multi_reduction <add>, %10, %cst_6 [1] : vector<16x256xf32> to vector<16xf32>
    %12 = vector.shape_cast %11 : vector<16xf32> to vector<16x1xf32>
    %cst_7 = arith.constant 2.560000e+02 : f32
    %13 = vector.broadcast %cst_7 : f32 to vector<16x1xf32>
    %14 = arith.divf %12, %13 : vector<16x1xf32>
    %cst_8 = arith.constant 9.99999974E-6 : f32
    %15 = vector.broadcast %cst_8 : f32 to vector<16x1xf32>
    %16 = arith.addf %14, %15 : vector<16x1xf32>
    %17 = math.rsqrt %16 : vector<16x1xf32>
    %18 = vector.broadcast %17 : vector<16x1xf32> to vector<16x256xf32>
    %19 = arith.mulf %9, %18 : vector<16x256xf32>
    %20 = vector.broadcast %2 : vector<1x256xf32> to vector<16x256xf32>
    %21 = arith.mulf %19, %20 : vector<16x256xf32>
    %22 = vector.broadcast %3 : vector<1x256xf32> to vector<16x256xf32>
    %23 = arith.addf %21, %22 : vector<16x256xf32>
    %24 = arith.truncf %23 : vector<16x256xf32> to vector<16x256xbf16>
    %c0_9 = arith.constant 0 : index
    %c0_10 = arith.constant 0 : index
    %25 = vector.load %arg4[%c0_9, %c0_10] : memref<16x256xbf16, #tpu.memory_space<vmem>>, vector<16x256xbf16>
    tpu.vector_store %arg4[%c0_9, %c0_10], %24 {strides = array<i32>} : memref<16x256xbf16, #tpu.memory_space<vmem>>, vector<16x256xbf16>,
    return
  }
  func.func @transform_0(%arg0: i32) -> (i32, i32) {
    %c0_i32 = arith.constant 0 : i32
    %c0_i32_0 = arith.constant 0 : i32
    return %arg0, %c0_i32 : i32, i32
  }
  func.func @transform_1(%arg0: i32) -> (i32, i32) {
    %c0_i32 = arith.constant 0 : i32
    %c0_i32_0 = arith.constant 0 : i32
    %c0_i32_1 = arith.constant 0 : i32
    return %c0_i32, %c0_i32_0 : i32, i32
  }
  func.func @transform_2(%arg0: i32) -> (i32, i32) {
    %c0_i32 = arith.constant 0 : i32
    %c0_i32_0 = arith.constant 0 : i32
    %c0_i32_1 = arith.constant 0 : i32
    return %c0_i32, %c0_i32_0 : i32, i32
  }
  func.func @transform_3(%arg0: i32) -> (i32, i32) {
    %c0_i32 = arith.constant 0 : i32
    %c0_i32_0 = arith.constant 0 : i32
    return %arg0, %c0_i32 : i32, i32
  }
}

module attributes {stable_mosaic.version = 11 : i64} {
  func.func @_linear_kernel(%arg0: i32, %arg1: memref<16x256xbf16, #tpu.memory_space<vmem>>, %arg2: memref<256x768xbf16, #tpu.memory_space<vmem>>, %arg3: memref<1x768xf32, #tpu.memory_space<vmem>>, %arg4: memref<16x768xbf16, #tpu.memory_space<vmem>>) attributes {dimension_semantics = [#tpu.dimension_semantics<parallel>], iteration_bounds = array<i64: 1>, scalar_prefetch = 0 : i64, scratch_operands = 0 : i64, tpu.core_type = #tpu.core_type<tc>, window_params = [{transform_indices = @transform_0, window_bounds = array<i64: 16, 256>}, {pipeline_mode = #tpu.pipeline_mode<synchronous>, transform_indices = @transform_1, window_bounds = array<i64: 256, 768>}, {pipeline_mode = #tpu.pipeline_mode<synchronous>, transform_indices = @transform_2, window_bounds = array<i64: 1, 768>}, {transform_indices = @transform_3, window_bounds = array<i64: 16, 768>}]} {
    %c0 = arith.constant 0 : index
    %c0_0 = arith.constant 0 : index
    %0 = vector.load %arg1[%c0, %c0_0] : memref<16x256xbf16, #tpu.memory_space<vmem>>, vector<16x256xbf16>
    %c0_1 = arith.constant 0 : index
    %c0_2 = arith.constant 0 : index
    %1 = vector.load %arg2[%c0_1, %c0_2] : memref<256x768xbf16, #tpu.memory_space<vmem>>, vector<256x768xbf16>
    %cst = arith.constant dense<0.000000e+00> : vector<16x768xf32>
    %2 = tpu.matmul %0, %1, %cst {dimension_numbers = #tpu.dot_dimension_numbers<[1], [0], [0], [1], [0, 0, 1, 1], [], []>} : vector<16x256xbf16>, vector<256x768xbf16>, vector<16x768xf32> -> vector<16x768xf32>
    %c0_3 = arith.constant 0 : index
    %c0_4 = arith.constant 0 : index
    %3 = vector.load %arg3[%c0_3, %c0_4] : memref<1x768xf32, #tpu.memory_space<vmem>>, vector<1x768xf32>
    %4 = vector.broadcast %3 : vector<1x768xf32> to vector<16x768xf32>
    %5 = arith.addf %2, %4 : vector<16x768xf32>
    %6 = arith.truncf %5 : vector<16x768xf32> to vector<16x768xbf16>
    %c0_5 = arith.constant 0 : index
    %c0_6 = arith.constant 0 : index
    %7 = vector.load %arg4[%c0_5, %c0_6] : memref<16x768xbf16, #tpu.memory_space<vmem>>, vector<16x768xbf16>
    tpu.vector_store %arg4[%c0_5, %c0_6], %6 {strides = array<i32>} : memref<16x768xbf16, #tpu.memory_space<vmem>>, vector<16x768xbf16>,
    return
  }
  func.func @transform_0(%arg0: i32) -> (i32, i32) {
    %c0_i32 = arith.constant 0 : i32
    %c0_i32_0 = arith.constant 0 : i32
    return %arg0, %c0_i32 : i32, i32
  }
  func.func @transform_1(%arg0: i32) -> (i32, i32) {
    %c0_i32 = arith.constant 0 : i32
    %c0_i32_0 = arith.constant 0 : i32
    %c0_i32_1 = arith.constant 0 : i32
    return %c0_i32, %c0_i32_0 : i32, i32
  }
  func.func @transform_2(%arg0: i32) -> (i32, i32) {
    %c0_i32 = arith.constant 0 : i32
    %c0_i32_0 = arith.constant 0 : i32
    %c0_i32_1 = arith.constant 0 : i32
    return %c0_i32, %c0_i32_0 : i32, i32
  }
  func.func @transform_3(%arg0: i32) -> (i32, i32) {
    %c0_i32 = arith.constant 0 : i32
    %c0_i32_0 = arith.constant 0 : i32
    return %arg0, %c0_i32 : i32, i32
  }
}

module attributes {stable_mosaic.version = 11 : i64} {
  func.func @_ln_linear_kernel(%arg0: i32, %arg1: memref<16x256xbf16, #tpu.memory_space<vmem>>, %arg2: memref<16x256xbf16, #tpu.memory_space<vmem>>, %arg3: memref<1x256xf32, #tpu.memory_space<vmem>>, %arg4: memref<1x256xf32, #tpu.memory_space<vmem>>, %arg5: memref<256x256xbf16, #tpu.memory_space<vmem>>, %arg6: memref<1x256xf32, #tpu.memory_space<vmem>>, %arg7: memref<16x256xbf16, #tpu.memory_space<vmem>>, %arg8: memref<16x256xbf16, #tpu.memory_space<vmem>>) attributes {dimension_semantics = [#tpu.dimension_semantics<parallel>], iteration_bounds = array<i64: 1>, scalar_prefetch = 0 : i64, scratch_operands = 0 : i64, tpu.core_type = #tpu.core_type<tc>, window_params = [{transform_indices = @transform_0, window_bounds = array<i64: 16, 256>}, {transform_indices = @transform_1, window_bounds = array<i64: 16, 256>}, {pipeline_mode = #tpu.pipeline_mode<synchronous>, transform_indices = @transform_2, window_bounds = array<i64: 1, 256>}, {pipeline_mode = #tpu.pipeline_mode<synchronous>, transform_indices = @transform_3, window_bounds = array<i64: 1, 256>}, {pipeline_mode = #tpu.pipeline_mode<synchronous>, transform_indices = @transform_4, window_bounds = array<i64: 256, 256>}, {pipeline_mode = #tpu.pipeline_mode<synchronous>, transform_indices = @transform_5, window_bounds = array<i64: 1, 256>}, {transform_indices = @transform_6, window_bounds = array<i64: 16, 256>}, {transform_indices = @transform_7, window_bounds = array<i64: 16, 256>}]} {
    %c0 = arith.constant 0 : index
    %c0_0 = arith.constant 0 : index
    %0 = vector.load %arg1[%c0, %c0_0] : memref<16x256xbf16, #tpu.memory_space<vmem>>, vector<16x256xbf16>
    %1 = arith.extf %0 : vector<16x256xbf16> to vector<16x256xf32>
    %c0_1 = arith.constant 0 : index
    %c0_2 = arith.constant 0 : index
    %2 = vector.load %arg2[%c0_1, %c0_2] : memref<16x256xbf16, #tpu.memory_space<vmem>>, vector<16x256xbf16>
    %3 = arith.extf %2 : vector<16x256xbf16> to vector<16x256xf32>
    %4 = arith.addf %1, %3 : vector<16x256xf32>
    %c0_3 = arith.constant 0 : index
    %c0_4 = arith.constant 0 : index
    %5 = vector.load %arg3[%c0_3, %c0_4] : memref<1x256xf32, #tpu.memory_space<vmem>>, vector<1x256xf32>
    %c0_5 = arith.constant 0 : index
    %c0_6 = arith.constant 0 : index
    %6 = vector.load %arg4[%c0_5, %c0_6] : memref<1x256xf32, #tpu.memory_space<vmem>>, vector<1x256xf32>
    %cst = arith.constant dense<0.000000e+00> : vector<16xf32>
    %7 = vector.multi_reduction <add>, %4, %cst [1] : vector<16x256xf32> to vector<16xf32>
    %8 = vector.shape_cast %7 : vector<16xf32> to vector<16x1xf32>
    %cst_7 = arith.constant 2.560000e+02 : f32
    %9 = vector.broadcast %cst_7 : f32 to vector<16x1xf32>
    %10 = arith.divf %8, %9 : vector<16x1xf32>
    %11 = vector.broadcast %10 : vector<16x1xf32> to vector<16x256xf32>
    %12 = arith.subf %4, %11 : vector<16x256xf32>
    %13 = arith.mulf %12, %12 : vector<16x256xf32>
    %cst_8 = arith.constant dense<0.000000e+00> : vector<16xf32>
    %14 = vector.multi_reduction <add>, %13, %cst_8 [1] : vector<16x256xf32> to vector<16xf32>
    %15 = vector.shape_cast %14 : vector<16xf32> to vector<16x1xf32>
    %cst_9 = arith.constant 2.560000e+02 : f32
    %16 = vector.broadcast %cst_9 : f32 to vector<16x1xf32>
    %17 = arith.divf %15, %16 : vector<16x1xf32>
    %cst_10 = arith.constant 9.99999974E-6 : f32
    %18 = vector.broadcast %cst_10 : f32 to vector<16x1xf32>
    %19 = arith.addf %17, %18 : vector<16x1xf32>
    %20 = math.rsqrt %19 : vector<16x1xf32>
    %21 = vector.broadcast %20 : vector<16x1xf32> to vector<16x256xf32>
    %22 = arith.mulf %12, %21 : vector<16x256xf32>
    %23 = vector.broadcast %5 : vector<1x256xf32> to vector<16x256xf32>
    %24 = arith.mulf %22, %23 : vector<16x256xf32>
    %25 = vector.broadcast %6 : vector<1x256xf32> to vector<16x256xf32>
    %26 = arith.addf %24, %25 : vector<16x256xf32>
    %27 = arith.truncf %26 : vector<16x256xf32> to vector<16x256xbf16>
    %c0_11 = arith.constant 0 : index
    %c0_12 = arith.constant 0 : index
    %28 = vector.load %arg7[%c0_11, %c0_12] : memref<16x256xbf16, #tpu.memory_space<vmem>>, vector<16x256xbf16>
    tpu.vector_store %arg7[%c0_11, %c0_12], %27 {strides = array<i32>} : memref<16x256xbf16, #tpu.memory_space<vmem>>, vector<16x256xbf16>,
    %29 = arith.truncf %26 : vector<16x256xf32> to vector<16x256xbf16>
    %c0_13 = arith.constant 0 : index
    %c0_14 = arith.constant 0 : index
    %30 = vector.load %arg5[%c0_13, %c0_14] : memref<256x256xbf16, #tpu.memory_space<vmem>>, vector<256x256xbf16>
    %cst_15 = arith.constant dense<0.000000e+00> : vector<16x256xf32>
    %31 = tpu.matmul %29, %30, %cst_15 {dimension_numbers = #tpu.dot_dimension_numbers<[1], [0], [0], [1], [0, 0, 1, 1], [], []>} : vector<16x256xbf16>, vector<256x256xbf16>, vector<16x256xf32> -> vector<16x256xf32>
    %c0_16 = arith.constant 0 : index
    %c0_17 = arith.constant 0 : index
    %32 = vector.load %arg6[%c0_16, %c0_17] : memref<1x256xf32, #tpu.memory_space<vmem>>, vector<1x256xf32>
    %33 = vector.broadcast %32 : vector<1x256xf32> to vector<16x256xf32>
    %34 = arith.addf %31, %33 : vector<16x256xf32>
    %35 = arith.truncf %34 : vector<16x256xf32> to vector<16x256xbf16>
    %c0_18 = arith.constant 0 : index
    %c0_19 = arith.constant 0 : index
    %36 = vector.load %arg8[%c0_18, %c0_19] : memref<16x256xbf16, #tpu.memory_space<vmem>>, vector<16x256xbf16>
    tpu.vector_store %arg8[%c0_18, %c0_19], %35 {strides = array<i32>} : memref<16x256xbf16, #tpu.memory_space<vmem>>, vector<16x256xbf16>,
    return
  }
  func.func @transform_0(%arg0: i32) -> (i32, i32) {
    %c0_i32 = arith.constant 0 : i32
    %c0_i32_0 = arith.constant 0 : i32
    return %arg0, %c0_i32 : i32, i32
  }
  func.func @transform_1(%arg0: i32) -> (i32, i32) {
    %c0_i32 = arith.constant 0 : i32
    %c0_i32_0 = arith.constant 0 : i32
    return %arg0, %c0_i32 : i32, i32
  }
  func.func @transform_2(%arg0: i32) -> (i32, i32) {
    %c0_i32 = arith.constant 0 : i32
    %c0_i32_0 = arith.constant 0 : i32
    %c0_i32_1 = arith.constant 0 : i32
    return %c0_i32, %c0_i32_0 : i32, i32
  }
  func.func @transform_3(%arg0: i32) -> (i32, i32) {
    %c0_i32 = arith.constant 0 : i32
    %c0_i32_0 = arith.constant 0 : i32
    %c0_i32_1 = arith.constant 0 : i32
    return %c0_i32, %c0_i32_0 : i32, i32
  }
  func.func @transform_4(%arg0: i32) -> (i32, i32) {
    %c0_i32 = arith.constant 0 : i32
    %c0_i32_0 = arith.constant 0 : i32
    %c0_i32_1 = arith.constant 0 : i32
    return %c0_i32, %c0_i32_0 : i32, i32
  }
  func.func @transform_5(%arg0: i32) -> (i32, i32) {
    %c0_i32 = arith.constant 0 : i32
    %c0_i32_0 = arith.constant 0 : i32
    %c0_i32_1 = arith.constant 0 : i32
    return %c0_i32, %c0_i32_0 : i32, i32
  }
  func.func @transform_6(%arg0: i32) -> (i32, i32) {
    %c0_i32 = arith.constant 0 : i32
    %c0_i32_0 = arith.constant 0 : i32
    return %arg0, %c0_i32 : i32, i32
  }
  func.func @transform_7(%arg0: i32) -> (i32, i32) {
    %c0_i32 = arith.constant 0 : i32
    %c0_i32_0 = arith.constant 0 : i32
    return %arg0, %c0_i32 : i32, i32
  }
}

module attributes {stable_mosaic.version = 11 : i64} {
  func.func @_linear_kernel(%arg0: i32, %arg1: memref<16x256xbf16, #tpu.memory_space<vmem>>, %arg2: memref<256x512xbf16, #tpu.memory_space<vmem>>, %arg3: memref<1x512xf32, #tpu.memory_space<vmem>>, %arg4: memref<16x512xbf16, #tpu.memory_space<vmem>>) attributes {dimension_semantics = [#tpu.dimension_semantics<parallel>], iteration_bounds = array<i64: 1>, scalar_prefetch = 0 : i64, scratch_operands = 0 : i64, tpu.core_type = #tpu.core_type<tc>, window_params = [{transform_indices = @transform_0, window_bounds = array<i64: 16, 256>}, {pipeline_mode = #tpu.pipeline_mode<synchronous>, transform_indices = @transform_1, window_bounds = array<i64: 256, 512>}, {pipeline_mode = #tpu.pipeline_mode<synchronous>, transform_indices = @transform_2, window_bounds = array<i64: 1, 512>}, {transform_indices = @transform_3, window_bounds = array<i64: 16, 512>}]} {
    %c0 = arith.constant 0 : index
    %c0_0 = arith.constant 0 : index
    %0 = vector.load %arg1[%c0, %c0_0] : memref<16x256xbf16, #tpu.memory_space<vmem>>, vector<16x256xbf16>
    %c0_1 = arith.constant 0 : index
    %c0_2 = arith.constant 0 : index
    %1 = vector.load %arg2[%c0_1, %c0_2] : memref<256x512xbf16, #tpu.memory_space<vmem>>, vector<256x512xbf16>
    %cst = arith.constant dense<0.000000e+00> : vector<16x512xf32>
    %2 = tpu.matmul %0, %1, %cst {dimension_numbers = #tpu.dot_dimension_numbers<[1], [0], [0], [1], [0, 0, 1, 1], [], []>} : vector<16x256xbf16>, vector<256x512xbf16>, vector<16x512xf32> -> vector<16x512xf32>
    %c0_3 = arith.constant 0 : index
    %c0_4 = arith.constant 0 : index
    %3 = vector.load %arg3[%c0_3, %c0_4] : memref<1x512xf32, #tpu.memory_space<vmem>>, vector<1x512xf32>
    %4 = vector.broadcast %3 : vector<1x512xf32> to vector<16x512xf32>
    %5 = arith.addf %2, %4 : vector<16x512xf32>
    %6 = arith.truncf %5 : vector<16x512xf32> to vector<16x512xbf16>
    %c0_5 = arith.constant 0 : index
    %c0_6 = arith.constant 0 : index
    %7 = vector.load %arg4[%c0_5, %c0_6] : memref<16x512xbf16, #tpu.memory_space<vmem>>, vector<16x512xbf16>
    tpu.vector_store %arg4[%c0_5, %c0_6], %6 {strides = array<i32>} : memref<16x512xbf16, #tpu.memory_space<vmem>>, vector<16x512xbf16>,
    return
  }
  func.func @transform_0(%arg0: i32) -> (i32, i32) {
    %c0_i32 = arith.constant 0 : i32
    %c0_i32_0 = arith.constant 0 : i32
    return %arg0, %c0_i32 : i32, i32
  }
  func.func @transform_1(%arg0: i32) -> (i32, i32) {
    %c0_i32 = arith.constant 0 : i32
    %c0_i32_0 = arith.constant 0 : i32
    %c0_i32_1 = arith.constant 0 : i32
    return %c0_i32, %c0_i32_0 : i32, i32
  }
  func.func @transform_2(%arg0: i32) -> (i32, i32) {
    %c0_i32 = arith.constant 0 : i32
    %c0_i32_0 = arith.constant 0 : i32
    %c0_i32_1 = arith.constant 0 : i32
    return %c0_i32, %c0_i32_0 : i32, i32
  }
  func.func @transform_3(%arg0: i32) -> (i32, i32) {
    %c0_i32 = arith.constant 0 : i32
    %c0_i32_0 = arith.constant 0 : i32
    return %arg0, %c0_i32 : i32, i32
  }
}

module attributes {stable_mosaic.version = 11 : i64} {
  func.func @_attn_kernel(%arg0: i32, %arg1: i32, %arg2: i32, %arg3: memref<1x8x128xbf16, #tpu.memory_space<vmem>>, %arg4: memref<1x8x128xbf16, #tpu.memory_space<vmem>>, %arg5: memref<1x8x128xbf16, #tpu.memory_space<vmem>>, %arg6: memref<1x8x128xbf16, #tpu.memory_space<vmem>>) attributes {dimension_semantics = [#tpu.dimension_semantics<parallel>, #tpu.dimension_semantics<parallel>, #tpu.dimension_semantics<parallel>], iteration_bounds = array<i64: 2, 2, 1>, scalar_prefetch = 0 : i64, scratch_operands = 0 : i64, tpu.core_type = #tpu.core_type<tc>, window_params = [{transform_indices = @transform_0, window_bounds = array<i64: 1, 8, 128>}, {transform_indices = @transform_1, window_bounds = array<i64: 1, 8, 128>}, {transform_indices = @transform_2, window_bounds = array<i64: 1, 8, 128>}, {transform_indices = @transform_3, window_bounds = array<i64: 1, 8, 128>}]} {
    %c0 = arith.constant 0 : index
    %c0_0 = arith.constant 0 : index
    %c0_1 = arith.constant 0 : index
    %0 = vector.load %arg3[%c0, %c0_0, %c0_1] : memref<1x8x128xbf16, #tpu.memory_space<vmem>>, vector<1x8x128xbf16>
    %1 = vector.shape_cast %0 : vector<1x8x128xbf16> to vector<8x128xbf16>
    %2 = arith.extf %1 : vector<8x128xbf16> to vector<8x128xf32>
    %cst = arith.constant 1.250000e-01 : f32
    %3 = vector.broadcast %cst : f32 to vector<8x128xf32>
    %4 = arith.mulf %2, %3 : vector<8x128xf32>
    %c0_2 = arith.constant 0 : index
    %c0_3 = arith.constant 0 : index
    %c0_4 = arith.constant 0 : index
    %5 = vector.load %arg4[%c0_2, %c0_3, %c0_4] : memref<1x8x128xbf16, #tpu.memory_space<vmem>>, vector<1x8x128xbf16>
    %6 = vector.shape_cast %5 : vector<1x8x128xbf16> to vector<8x128xbf16>
    %c0_5 = arith.constant 0 : index
    %c0_6 = arith.constant 0 : index
    %c0_7 = arith.constant 0 : index
    %7 = vector.load %arg5[%c0_5, %c0_6, %c0_7] : memref<1x8x128xbf16, #tpu.memory_space<vmem>>, vector<1x8x128xbf16>
    %8 = vector.shape_cast %7 : vector<1x8x128xbf16> to vector<8x128xbf16>
    %9 = vector.extract_strided_slice %4 {offsets = [0, 0], sizes = [8, 64], strides = [1, 1]} : vector<8x128xf32> to vector<8x64xf32>
    %10 = arith.truncf %9 : vector<8x64xf32> to vector<8x64xbf16>
    %11 = vector.extract_strided_slice %6 {offsets = [0, 0], sizes = [8, 64], strides = [1, 1]} : vector<8x128xbf16> to vector<8x64xbf16>
    %12 = vector.extract_strided_slice %8 {offsets = [0, 0], sizes = [8, 64], strides = [1, 1]} : vector<8x128xbf16> to vector<8x64xbf16>
    %cst_8 = arith.constant dense<0.000000e+00> : vector<8x8xf32>
    %13 = tpu.matmul %10, %11, %cst_8 {dimension_numbers = #tpu.dot_dimension_numbers<[1], [1], [0], [0], [0, 0, 1, 0], [], []>} : vector<8x64xbf16>, vector<8x64xbf16>, vector<8x8xf32> -> vector<8x8xf32>
    %cst_9 = arith.constant dense<0xFF800000> : vector<8xf32>
    %14 = vector.multi_reduction <maximumf>, %13, %cst_9 [1] : vector<8x8xf32> to vector<8xf32>
    %15 = vector.shape_cast %14 : vector<8xf32> to vector<8x1xf32>
    %16 = vector.broadcast %15 : vector<8x1xf32> to vector<8x8xf32>
    %17 = arith.subf %13, %16 : vector<8x8xf32>
    %18 = math.exp %17 : vector<8x8xf32>
    %cst_10 = arith.constant dense<0.000000e+00> : vector<8xf32>
    %19 = vector.multi_reduction <add>, %18, %cst_10 [1] : vector<8x8xf32> to vector<8xf32>
    %20 = vector.shape_cast %19 : vector<8xf32> to vector<8x1xf32>
    %21 = arith.truncf %18 : vector<8x8xf32> to vector<8x8xbf16>
    %cst_11 = arith.constant dense<0.000000e+00> : vector<8x64xf32>
    %22 = tpu.matmul %21, %12, %cst_11 {dimension_numbers = #tpu.dot_dimension_numbers<[1], [0], [0], [1], [0, 0, 1, 1], [], []>} : vector<8x8xbf16>, vector<8x64xbf16>, vector<8x64xf32> -> vector<8x64xf32>
    %23 = tpu.reciprocal %20 {approx = true} : vector<8x1xf32> -> vector<8x1xf32>
    %24 = vector.broadcast %23 : vector<8x1xf32> to vector<8x64xf32>
    %25 = arith.mulf %22, %24 : vector<8x64xf32>
    %26 = vector.extract_strided_slice %4 {offsets = [0, 64], sizes = [8, 64], strides = [1, 1]} : vector<8x128xf32> to vector<8x64xf32>
    %27 = arith.truncf %26 : vector<8x64xf32> to vector<8x64xbf16>
    %28 = vector.extract_strided_slice %6 {offsets = [0, 64], sizes = [8, 64], strides = [1, 1]} : vector<8x128xbf16> to vector<8x64xbf16>
    %29 = vector.extract_strided_slice %8 {offsets = [0, 64], sizes = [8, 64], strides = [1, 1]} : vector<8x128xbf16> to vector<8x64xbf16>
    %cst_12 = arith.constant dense<0.000000e+00> : vector<8x8xf32>
    %30 = tpu.matmul %27, %28, %cst_12 {dimension_numbers = #tpu.dot_dimension_numbers<[1], [1], [0], [0], [0, 0, 1, 0], [], []>} : vector<8x64xbf16>, vector<8x64xbf16>, vector<8x8xf32> -> vector<8x8xf32>
    %cst_13 = arith.constant dense<0xFF800000> : vector<8xf32>
    %31 = vector.multi_reduction <maximumf>, %30, %cst_13 [1] : vector<8x8xf32> to vector<8xf32>
    %32 = vector.shape_cast %31 : vector<8xf32> to vector<8x1xf32>
    %33 = vector.broadcast %32 : vector<8x1xf32> to vector<8x8xf32>
    %34 = arith.subf %30, %33 : vector<8x8xf32>
    %35 = math.exp %34 : vector<8x8xf32>
    %cst_14 = arith.constant dense<0.000000e+00> : vector<8xf32>
    %36 = vector.multi_reduction <add>, %35, %cst_14 [1] : vector<8x8xf32> to vector<8xf32>
    %37 = vector.shape_cast %36 : vector<8xf32> to vector<8x1xf32>
    %38 = arith.truncf %35 : vector<8x8xf32> to vector<8x8xbf16>
    %cst_15 = arith.constant dense<0.000000e+00> : vector<8x64xf32>
    %39 = tpu.matmul %38, %29, %cst_15 {dimension_numbers = #tpu.dot_dimension_numbers<[1], [0], [0], [1], [0, 0, 1, 1], [], []>} : vector<8x8xbf16>, vector<8x64xbf16>, vector<8x64xf32> -> vector<8x64xf32>
    %40 = tpu.reciprocal %37 {approx = true} : vector<8x1xf32> -> vector<8x1xf32>
    %41 = vector.broadcast %40 : vector<8x1xf32> to vector<8x64xf32>
    %42 = arith.mulf %39, %41 : vector<8x64xf32>
    %43 = tpu.concatenate %25, %42 in 1 : vector<8x64xf32>, vector<8x64xf32> -> vector<8x128xf32>
    %44 = arith.truncf %43 : vector<8x128xf32> to vector<8x128xbf16>
    %c0_16 = arith.constant 0 : index
    %c0_17 = arith.constant 0 : index
    %c0_18 = arith.constant 0 : index
    %45 = vector.load %arg6[%c0_16, %c0_17, %c0_18] : memref<1x8x128xbf16, #tpu.memory_space<vmem>>, vector<1x8x128xbf16>
    %46 = vector.shape_cast %45 : vector<1x8x128xbf16> to vector<8x128xbf16>
    %47 = vector.shape_cast %44 : vector<8x128xbf16> to vector<1x8x128xbf16>
    tpu.vector_store %arg6[%c0_16, %c0_17, %c0_18], %47 {strides = array<i32>} : memref<1x8x128xbf16, #tpu.memory_space<vmem>>, vector<1x8x128xbf16>,
    return
  }
  func.func @transform_0(%arg0: i32, %arg1: i32, %arg2: i32) -> (i32, i32, i32) {
    %c0_i32 = arith.constant 0 : i32
    return %arg0, %arg2, %arg1 : i32, i32, i32
  }
  func.func @transform_1(%arg0: i32, %arg1: i32, %arg2: i32) -> (i32, i32, i32) {
    %c0_i32 = arith.constant 0 : i32
    %c0_i32_0 = arith.constant 0 : i32
    return %arg0, %c0_i32, %arg1 : i32, i32, i32
  }
  func.func @transform_2(%arg0: i32, %arg1: i32, %arg2: i32) -> (i32, i32, i32) {
    %c2_i32 = arith.constant 2 : i32
    %0 = arith.addi %c2_i32, %arg1 : i32
    %c0_i32 = arith.constant 0 : i32
    %c0_i32_0 = arith.constant 0 : i32
    return %arg0, %c0_i32, %0 : i32, i32, i32
  }
  func.func @transform_3(%arg0: i32, %arg1: i32, %arg2: i32) -> (i32, i32, i32) {
    %c0_i32 = arith.constant 0 : i32
    return %arg0, %arg2, %arg1 : i32, i32, i32
  }
}

module attributes {stable_mosaic.version = 11 : i64} {
  func.func @_linear_kernel(%arg0: i32, %arg1: memref<16x256xbf16, #tpu.memory_space<vmem>>, %arg2: memref<256x128xbf16, #tpu.memory_space<vmem>>, %arg3: memref<1x128xf32, #tpu.memory_space<vmem>>, %arg4: memref<16x128xbf16, #tpu.memory_space<vmem>>) attributes {dimension_semantics = [#tpu.dimension_semantics<parallel>], iteration_bounds = array<i64: 1>, scalar_prefetch = 0 : i64, scratch_operands = 0 : i64, tpu.core_type = #tpu.core_type<tc>, window_params = [{transform_indices = @transform_0, window_bounds = array<i64: 16, 256>}, {pipeline_mode = #tpu.pipeline_mode<synchronous>, transform_indices = @transform_1, window_bounds = array<i64: 256, 128>}, {pipeline_mode = #tpu.pipeline_mode<synchronous>, transform_indices = @transform_2, window_bounds = array<i64: 1, 128>}, {transform_indices = @transform_3, window_bounds = array<i64: 16, 128>}]} {
    %c0 = arith.constant 0 : index
    %c0_0 = arith.constant 0 : index
    %0 = vector.load %arg1[%c0, %c0_0] : memref<16x256xbf16, #tpu.memory_space<vmem>>, vector<16x256xbf16>
    %c0_1 = arith.constant 0 : index
    %c0_2 = arith.constant 0 : index
    %1 = vector.load %arg2[%c0_1, %c0_2] : memref<256x128xbf16, #tpu.memory_space<vmem>>, vector<256x128xbf16>
    %cst = arith.constant dense<0.000000e+00> : vector<16x128xf32>
    %2 = tpu.matmul %0, %1, %cst {dimension_numbers = #tpu.dot_dimension_numbers<[1], [0], [0], [1], [0, 0, 1, 1], [], []>} : vector<16x256xbf16>, vector<256x128xbf16>, vector<16x128xf32> -> vector<16x128xf32>
    %c0_3 = arith.constant 0 : index
    %c0_4 = arith.constant 0 : index
    %3 = vector.load %arg3[%c0_3, %c0_4] : memref<1x128xf32, #tpu.memory_space<vmem>>, vector<1x128xf32>
    %4 = vector.broadcast %3 : vector<1x128xf32> to vector<16x128xf32>
    %5 = arith.addf %2, %4 : vector<16x128xf32>
    %6 = arith.truncf %5 : vector<16x128xf32> to vector<16x128xbf16>
    %c0_5 = arith.constant 0 : index
    %c0_6 = arith.constant 0 : index
    %7 = vector.load %arg4[%c0_5, %c0_6] : memref<16x128xbf16, #tpu.memory_space<vmem>>, vector<16x128xbf16>
    tpu.vector_store %arg4[%c0_5, %c0_6], %6 {strides = array<i32>} : memref<16x128xbf16, #tpu.memory_space<vmem>>, vector<16x128xbf16>,
    return
  }
  func.func @transform_0(%arg0: i32) -> (i32, i32) {
    %c0_i32 = arith.constant 0 : i32
    %c0_i32_0 = arith.constant 0 : i32
    return %arg0, %c0_i32 : i32, i32
  }
  func.func @transform_1(%arg0: i32) -> (i32, i32) {
    %c0_i32 = arith.constant 0 : i32
    %c0_i32_0 = arith.constant 0 : i32
    %c0_i32_1 = arith.constant 0 : i32
    return %c0_i32, %c0_i32_0 : i32, i32
  }
  func.func @transform_2(%arg0: i32) -> (i32, i32) {
    %c0_i32 = arith.constant 0 : i32
    %c0_i32_0 = arith.constant 0 : i32
    %c0_i32_1 = arith.constant 0 : i32
    return %c0_i32, %c0_i32_0 : i32, i32
  }
  func.func @transform_3(%arg0: i32) -> (i32, i32) {
    %c0_i32 = arith.constant 0 : i32
    %c0_i32_0 = arith.constant 0 : i32
    return %arg0, %c0_i32 : i32, i32
  }
}

</mosaic_0001>

<bundles_post_ra>
// kernel: transformer_model_forward.30
= control target key start
LH: loop header
LB: loop body
LE: loop exit
PB: predicated region body
PF: predicated region fallthrough
CT: control target
= control target key end

     0   :  { %s861_s12 = smov 0   ;;  %s863_s13 = smov 0   ;;  %s964_s0 = inlined_call_operand.vmem [shape: bf16[2,8,768], index: 0, kind: input, shape index: {}, may-alias: {0,1,2}]   ;;  %s965_s1 = inlined_call_operand.vmem [shape: bf16[2,8,768], index: 1, kind: input, shape index: {}, may-alias: {0,1,2}]   ;;  %s966_s2 = inlined_call_operand.vmem [shape: bf16[2,8,768], index: 2, kind: input, shape index: {}, may-alias: {0,1,2}]   ;;  %s967_s3 = inlined_call_operand.vmem [shape: bf16[2,8,256], index: 3, kind: output, shape index: {}]  }
   0x1   :  { %s865_s14 = smov 0   ;;  %s867_s15 = smov 0  }
   0x2   :  { %s869_s16 = smov 0  }
   0x3 LB: > { %s28_s17 = sadd.s32 1, %s828_s14  ;;  %s32_s18 = sadd.s32 1, %s832_s15  ;;  %s836_s16 = sphi %s869_s16, %s13_s16   ;;  %s832_s15 = sphi %s867_s15, %s971_s15   ;;  %s828_s14 = sphi %s865_s14, %s970_s14   ;;  %s824_s13 = sphi %s863_s13, %s969_s13   ;;  %s820_s12 = sphi %s861_s12, %s968_s12  }
   0x4   : > { %p30_p0 = scmp.ge.s32.totalorder %s28_s17, 2  ;;  %p698_p1 = scmp.ge.s32.totalorder %s836_s16, 1 }
   0x5   : > { %p209_p2 = scmp.lt.s32.totalorder %s836_s16, 5 }
   0x6   : > { %s973_s17 = smov (%p30_p0, %s28_s17), 0  ;;  %s975_s18 = smov (!%p30_p0, %s32_s18), %s832_s15 }
   0x7   : > { %p210_p3 = pnand %p698_p1, %p209_p2  ;;  %p34_p4 = scmp.ge.s32.totalorder %s975_s18, 2 }
   0x8   : > { %p265_p5 = scmp.lt.s32.totalorder (!%p210_p3), %s824_s13, 1  ;;  %s277_s19 = sadd.s32 (!%p210_p3), 2, %s820_s12 }
   0x9   : > { %s977_s18 = smov (%p34_p4, %s975_s18), 0  ;;  %213 = sbr.rel (%p210_p3) target bundleno = 1055 (0x41f), region = 32 }
   0xa   : > { %p280_p6 = scmp.lt.s32.totalorder (!%p210_p3), %s277_s19, 5  ;;  %p269_p7 = scmp.lt.s32.totalorder (!%p210_p3), %s820_s12, 5 }
   0xb   : > { %s840_s5 = smov (!%p210_p3), 64   ;;  %s287_s6 = sadd.s32 (!%p210_p3), 4, %s820_s12 }
   0xc   : > { %p290_p8 = scmp.lt.s32.totalorder (!%p210_p3), %s287_s6, 5  ;;  %p301_p9 = scmp.lt.s32.totalorder (!%p210_p3), %s820_s12, 1 }
   0xe   : > { %v838_v0 = vmov 0.0   ;;  %vm839_vm0 = vmmov 0   ;;  %s979_s13 = smov (!%p265_p5, %s824_s13), 1  ;;  %s981_s19 = smov (!%p280_p6, %s277_s19), 5  ;;  %vm316_vm1 = vcmask 523264   ;;  %vm363_vm2 = vcmask 64512  }
   0xf   : > { %720 = vmatprep.subr.bf16.mxu0 %v838_v0  ;;  %722 = vmatprep.mubr.msk.bf16.mxu0 %vm839_vm0, %v838_v0  ;;  %s904_s20 = smul.u32 6, %s979_s13  ;;  %s983_s6 = smov (!%p290_p8, %s287_s6), 5  ;;  %vm377_vm3 = vcmask 1043456  }
  0x10   : > { %726 = vmatprep.subr.bf16.mxu1 %v838_v0  ;;  %728 = vmatprep.mubr.msk.bf16.mxu1 %vm839_vm0, %v838_v0  ;;  %s270_s21 = scalar_select %p269_p7, %s820_s12, 5 }
  0x11   : > { %s283_s22 = sadd.s32 %s904_s20, %s981_s19  ;;  %s293_s7 = sadd.s32 %s904_s20, %s983_s6 }
  0x12   : > { %s700_s23 = sshll.u32 %s283_s22, 2  ;;  %s274_s24 = sadd.s32 %s904_s20, %s270_s21 }
  0x13   : > { %s285_s27 = scalar_lea.vmem %s965_s1, %s700_s23  ;;  %s699_s28 = sshll.u32 %s274_s24, 2 }
  0x14   : > { %v313_v1 = vld [vmem:[%s285_s27] sm:$0xf]  ;;  %s276_s4 = scalar_lea.vmem %s964_s0, %s699_s28  ;;  %s701_s8 = sshll.u32 %s293_s7, 2 }
  0x15   : > { %v321_v2 = vsel %vm316_vm1, %v313_v1, 0  ;;  %v310_v3 = vld [vmem:[%s276_s4] sm:$0xf]  ;;  %v706_v12 = vcombine.low %v313_v1, %v313_v1  ;;  %s295_s11 = scalar_lea.vmem %s966_s2, %s701_s8  ;;  %s985_s12 = smov (!%p301_p9, %s820_s12), 1 }
  0x16   : > { %721 = vmatpush3.bf16.xpose.msra.mxu0 %v321_v2  ;;  %v311_v4 = vunpack.c.l.bf16 %v310_v3  ;;  %v314_v13 = vld [vmem:[%s295_s11] sm:$0xf]  ;;  %s702_s19 = sshll.u32 %s979_s13, 1 }
  0x17   : > { %738 = vmatprep.subr.bf16.mxu0 %v838_v0  ;;  %v379_v14 = vsel %vm377_vm3, %v314_v13, 0  ;;  %v708_v15 = vcombine.low %v314_v13, %v314_v13  ;;  %s306_s20 = sadd.s32 %s702_s19, %s985_s12 }
  0x18   : > { %v312_v5 = vmul.f32 0.125, %v311_v4  ;;  %727 = vmatpush3.bf16.msra.mxu1 %v379_v14  ;;  %s703_s21 = sshll.u32 %s306_s20, 2 }
  0x19   : > { %732 = vmatprep.subr.bf16.mxu1 %v838_v0  ;;  %s308_s24 = scalar_lea.vmem %s967_s3, %s703_s21 }
  0x1a   : > { %v315_v6 = vpack.c.bf16 %v312_v5, %v312_v5 }
  0x1c   : > { %424 = vrot.lane.b32.xlu1 %v315_v6, %s840_s5 }
  0x1d   : > { %723 = vmatmul.mubr.msk.bf16.vlgmr.msra.gmra.mxu0 %vm316_vm1, %v315_v6 }
  0x1e   : > { %740 = vmatprep.mubr.msk.bf16.mxu0 %vm839_vm0, %v838_v0 }
  0x8e   : > { %v425_v23 = vpop.permute.xlu1 %424 }
  0xdd   : > { %v357_v7 = vpop.f32.mrf.mxu0 }
  0xde   : > { %v364_v8 = vsel %vm363_vm2, %v357_v7, -inf }
  0xdf   : > { %365 = vmax.xlane.f32.xlu0 %v364_v8  ;;  %v724_v9 = vpop.f32.mrf.mxu0 }
  0xe1   : > { %v360_v10 = vpop.f32.mrf.mxu0 }
  0xe3   : > { %v725_v11 = vpop.f32.mrf.mxu0 }
  0xf5   : > { %429 = vrot.lane.b32.xlu0 %v706_v12, %s840_s5 }
  0xf9   : > { %490 = vrot.lane.b32.xlu0 %v708_v15, %s840_s5 }
 0x168   : > { %v366_v16 = vpop.xlane.xlu0 %365 }
 0x169   : > { %v367_v17 = vsub.f32 %v357_v7, %v366_v16 }
 0x16b   : > { %v368_v18 = vmul.f32 1.442695, %v367_v17 }
 0x16c   : > { %v430_v19 = vpop.permute.xlu0 %429 }
 0x16d   : > { %790 = vpow2.f32 %v368_v18  ;;  %v435_v21 = vsel %vm316_vm1, %v430_v19, 0 }
 0x170   : > { %v491_v34 = vpop.permute.xlu0 %490 }
 0x171   : > { %v496_v35 = vsel %vm377_vm3, %v491_v34, 0 }
 0x172   : > { %739 = vmatpush3.bf16.msra.mxu0 %v496_v35 }
 0x17a   : > { %v791_v20 = vpop.eup %790 }
 0x17b   : > { %v373_v22 = vpack.c.bf16 %v791_v20, %v791_v20  ;;  %v370_v32 = vsel %vm363_vm2, %v791_v20, 0.0 }
 0x17d   : > { %729 = vmatmul.mubr.msk.bf16.vlgmr.msra.gmra.mxu1 %vm363_vm2, %v373_v22 }
 0x17e   : > { %733 = vmatpush3.bf16.xpose.msra.mxu1 %v435_v21  ;;  %734 = vmatprep.mubr.msk.bf16.mxu1 %vm839_vm0, %v838_v0 }
 0x185   : > { %735 = vmatmul.mubr.msk.bf16.vlgmr.msra.gmra.mxu1 %vm316_vm1, %v425_v23 }
 0x23d   : > { %v415_v24 = vpop.f32.mrf.mxu1 }
 0x23f   : > { %v730_v25 = vpop.f32.mrf.mxu1 }
 0x241   : > { %v418_v26 = vpop.f32.mrf.mxu1 }
 0x243   : > { %v731_v27 = vpop.f32.mrf.mxu1 }
 0x245   : > { %v471_v28 = vpop.f32.mrf.mxu1 }
 0x246   : > { %v477_v29 = vsel %vm363_vm2, %v471_v28, -inf }
 0x247   : > { %478 = vmax.xlane.f32.xlu1 %v477_v29  ;;  %v736_v30 = vpop.f32.mrf.mxu1 }
 0x249   : > { %v474_v31 = vpop.f32.mrf.mxu1 }
 0x24b   : > { %371 = vadd.xlane.f32.xlu1 %v370_v32  ;;  %v737_v33 = vpop.f32.mrf.mxu1 }
 0x2d0   : > { %v479_v36 = vpop.xlane.xlu1 %478 }
 0x2d1   : > { %v480_v37 = vsub.f32 %v471_v28, %v479_v36 }
 0x2d3   : > { %v481_v38 = vmul.f32 1.442695, %v480_v37 }
 0x2d4   : > { %v372_v49 = vpop.xlane.xlu1 %371 }
 0x2d5   : > { %792 = vpow2.f32 %v481_v38 }
 0x2e2   : > { %v793_v39 = vpop.eup %792 }
 0x2e3   : > { %v483_v40 = vsel %vm363_vm2, %v793_v39, 0.0  ;;  %v486_v41 = vpack.c.bf16 %v793_v39, %v793_v39 }
 0x2e4   : > { %484 = vadd.xlane.f32.xlu0 %v483_v40 }
 0x2e5   : > { %741 = vmatmul.mubr.msk.bf16.vlgmr.msra.gmra.mxu0 %vm363_vm2, %v486_v41 }
 0x36d   : > { %v485_v42 = vpop.xlane.xlu0 %484 }
 0x36e   : > { %794 = vrcp.f32 %v485_v42 }
 0x36f   : > { %796 = vrcp.f32 %v372_v49 }
 0x37b   : > { %v795_v43 = vpop.eup %794 }
 0x37c   : > { %v797_v50 = vpop.eup %796 }
 0x37d   : > { %v422_v51 = vmul.f32 %v797_v50, %v415_v24 }
 0x3a5   : > { %v532_v44 = vpop.f32.mrf.mxu0 }
 0x3a6   : > { %v539_v45 = vmul.f32 %v795_v43, %v532_v44 }
 0x3a7   : > { %v742_v46 = vpop.f32.mrf.mxu0 }
 0x3a8   : > { %541 = vrot.lane.b32.xlu1 %v539_v45, %s840_s5 }
 0x3a9   : > { %v535_v47 = vpop.f32.mrf.mxu0 }
 0x3ab   : > { %v743_v48 = vpop.f32.mrf.mxu0 }
 0x41a   : > { %v542_v52 = vpop.permute.xlu1 %541 }
 0x41b   : > { %v544_v53 = vsel %vm316_vm1, %v422_v51, %v542_v52 }
 0x41c   : > { %v545_v54 = vpack.c.bf16 %v544_v53, %v544_v53 }
 0x41e   : > { %546 = vst [vmem:[%s308_s24] sm:$0xf] %v545_v54 }
 0x41f PF: > { %s13_s16 = sadd.s32 1, %s836_s16   ;;  %s968_s12 = smov %s828_s14 }
 0x420   : > { %p10_p10 = scmp.ge.s32.totalorder %s13_s16, 6   ;;  %s969_s13 = smov %s832_s15 }
 0x421   : > { %s970_s14 = smov %s973_s17  ;;  %s971_s15 = smov %s977_s18 }
 0x422   :  { %12 = sbr.rel (!%p10_p10) target bundleno = 3 (0x3), region = 68 }

// kernel: transformer_model_forward.31
= control target key start
LH: loop header
LB: loop body
LE: loop exit
PB: predicated region body
PF: predicated region fallthrough
CT: control target
= control target key end

     0   :  { %v50_v34 = vlaneseq  ;;  %s511_s1 = inlined_call_operand.vmem [shape: bf16[256,256], index: 1, kind: input, shape index: {}]   ;;  %s512_s0 = inlined_call_operand.vmem [shape: bf16[16,256], index: 0, kind: input, shape index: {}]   ;;  %s513_s2 = inlined_call_operand.vmem [shape: f32[1,256], index: 2, kind: input, shape index: {}]   ;;  %s514_s3 = inlined_call_operand.vmem [shape: bf16[16,256], index: 3, kind: output, shape index: {}]  }
   0x1   :  { %v329_v0 = vld [vmem:[%s511_s1 + $0x74] ss:$8 sps:$4 sm:$0xff]   ;;  %v331_v1 = vld [vmem:[%s511_s1 + $0x70] ss:$8 sps:$4 sm:$0xff]   ;;  %v332_v2 = vld [vmem:[%s511_s1 + $0x64] ss:$8 sps:$4 sm:$0xff]  }
   0x2   :  { %230 = vmatprep.subr.bf16.mxu0 %v329_v0  ;;  %v334_v3 = vld [vmem:[%s511_s1 + $0x60] ss:$8 sps:$4 sm:$0xff]   ;;  %v335_v4 = vld [vmem:[%s511_s1 + $0x54] ss:$8 sps:$4 sm:$0xff]   ;;  %v337_v5 = vld [vmem:[%s511_s1 + $0x50] ss:$8 sps:$4 sm:$0xff]  }
   0x3   :  { %231 = vmatpush1.bf16.msra.mxu0 %v331_v1  ;;  %v338_v6 = vld [vmem:[%s511_s1 + $0x44] ss:$8 sps:$4 sm:$0xff]   ;;  %v340_v7 = vld [vmem:[%s511_s1 + $0x40] ss:$8 sps:$4 sm:$0xff]   ;;  %v341_v8 = vld [vmem:[%s511_s1 + $0x34] ss:$8 sps:$4 sm:$0xff]  }
   0x4   :  { %232 = vmatprep.subr.bf16.mxu0 %v332_v2  ;;  %v343_v9 = vld [vmem:[%s511_s1 + $0x30] ss:$8 sps:$4 sm:$0xff]   ;;  %v344_v10 = vld [vmem:[%s511_s1 + $0x24] ss:$8 sps:$4 sm:$0xff]   ;;  %v346_v11 = vld [vmem:[%s511_s1 + $0x20] ss:$8 sps:$4 sm:$0xff]  }
   0x5   :  { %v347_v12 = vld [vmem:[%s511_s1 + $0x14] ss:$8 sps:$4 sm:$0xff]   ;;  %v379_v13 = vld [vmem:[%s512_s0 + $0x4] ss:$8 sps:$4 sm:$0xff]   ;;  %v349_v14 = vld [vmem:[%s511_s1 + $0x10] ss:$8 sps:$4 sm:$0xff]  }
   0x6   :  { %v350_v15 = vld [vmem:[%s511_s1 + $0x4] ss:$8 sps:$4 sm:$0xff]   ;;  %262 = vmatprep.mubr.bf16.mxu0 %v379_v13  ;;  %v352_v16 = vld [vmem:[%s511_s1] ss:$8 sps:$4 sm:$0xff]   ;;  %v353_v17 = vld [vmem:[%s511_s1 + $0xf4] ss:$8 sps:$4 sm:$0xff]  }
   0x7   :  { %233 = vmatpush1.bf16.msra.mxu0 %v334_v3  ;;  %v355_v18 = vld [vmem:[%s511_s1 + $0xf0] ss:$8 sps:$4 sm:$0xff]   ;;  %v356_v19 = vld [vmem:[%s511_s1 + $0xe4] ss:$8 sps:$4 sm:$0xff]   ;;  %v358_v20 = vld [vmem:[%s511_s1 + $0xe0] ss:$8 sps:$4 sm:$0xff]  }
   0x8   :  { %234 = vmatprep.subr.bf16.mxu0 %v335_v4  ;;  %v359_v21 = vld [vmem:[%s511_s1 + $0xd4] ss:$8 sps:$4 sm:$0xff]   ;;  %v361_v22 = vld [vmem:[%s511_s1 + $0xd0] ss:$8 sps:$4 sm:$0xff]   ;;  %v362_v23 = vld [vmem:[%s511_s1 + $0xc4] ss:$8 sps:$4 sm:$0xff]  }
   0x9   :  { %v364_v24 = vld [vmem:[%s511_s1 + $0xc0] ss:$8 sps:$4 sm:$0xff]   ;;  %v365_v25 = vld [vmem:[%s511_s1 + $0xb4] ss:$8 sps:$4 sm:$0xff]   ;;  %v367_v26 = vld [vmem:[%s511_s1 + $0xb0] ss:$8 sps:$4 sm:$0xff]  }
   0xa   :  { %v368_v27 = vld [vmem:[%s511_s1 + $0xa4] ss:$8 sps:$4 sm:$0xff]   ;;  %v370_v28 = vld [vmem:[%s511_s1 + $0xa0] ss:$8 sps:$4 sm:$0xff]   ;;  %v371_v29 = vld [vmem:[%s511_s1 + $0x94] ss:$8 sps:$4 sm:$0xff]  }
   0xb   :  { %235 = vmatpush1.bf16.msra.mxu0 %v337_v5  ;;  %v373_v30 = vld [vmem:[%s511_s1 + $0x90] ss:$8 sps:$4 sm:$0xff]   ;;  %v374_v31 = vld [vmem:[%s511_s1 + $0x84] ss:$8 sps:$4 sm:$0xff]   ;;  %v376_v32 = vld [vmem:[%s511_s1 + $0x80] ss:$8 sps:$4 sm:$0xff]  }
   0xc   :  { %236 = vmatprep.subr.bf16.mxu0 %v338_v6  ;;  %v377_v33 = vld [vmem:[%s512_s0] ss:$8 sps:$4 sm:$0xff]   ;;  %v51_v35 = vshrl.u32 %v50_v34, 7 }
   0xd   :  { %v48_v38 = vld [vmem:[%s513_s2] sm:$0x3] }
   0xe   :  { %v52_v36 = vsub.s32 0, %v51_v35  ;;  %v56_v37 = vsub.s32 1, %v51_v35 }
   0xf   :  { %237 = vmatpush1.bf16.msra.mxu0 %v340_v7 }
  0x10   :  { %238 = vmatprep.subr.bf16.mxu0 %v341_v8  ;;  %v53_v39 = vrot.slane %v48_v38, %v52_v36  ;;  %v57_v40 = vrot.slane %v48_v38, %v56_v37 }
  0x13   :  { %239 = vmatpush1.bf16.msra.mxu0 %v343_v9 }
  0x14   :  { %240 = vmatprep.subr.bf16.mxu0 %v344_v10 }
  0x17   :  { %241 = vmatpush1.bf16.msra.mxu0 %v346_v11 }
  0x18   :  { %242 = vmatprep.subr.bf16.mxu0 %v347_v12 }
  0x1b   :  { %243 = vmatpush1.bf16.msra.mxu0 %v349_v14 }
  0x1c   :  { %244 = vmatprep.subr.bf16.mxu0 %v350_v15 }
  0x1f   :  { %245 = vmatpush1.bf16.msra.mxu0 %v352_v16 }
  0x20   :  { %246 = vmatprep.subr.bf16.mxu0 %v353_v17 }
  0x23   :  { %247 = vmatpush2.bf16.msra.mxu0 %v355_v18 }
  0x24   :  { %248 = vmatprep.subr.bf16.mxu0 %v356_v19 }
  0x27   :  { %249 = vmatpush2.bf16.msra.mxu0 %v358_v20 }
  0x28   :  { %250 = vmatprep.subr.bf16.mxu0 %v359_v21 }
  0x2b   :  { %251 = vmatpush2.bf16.msra.mxu0 %v361_v22 }
  0x2c   :  { %252 = vmatprep.subr.bf16.mxu0 %v362_v23 }
  0x2f   :  { %253 = vmatpush2.bf16.msra.mxu0 %v364_v24 }
  0x30   :  { %254 = vmatprep.subr.bf16.mxu0 %v365_v25 }
  0x33   :  { %255 = vmatpush2.bf16.msra.mxu0 %v367_v26 }
  0x34   :  { %256 = vmatprep.subr.bf16.mxu0 %v368_v27 }
  0x37   :  { %257 = vmatpush2.bf16.msra.mxu0 %v370_v28 }
  0x38   :  { %258 = vmatprep.subr.bf16.mxu0 %v371_v29 }
  0x3b   :  { %259 = vmatpush2.bf16.msra.mxu0 %v373_v30 }
  0x3c   :  { %260 = vmatprep.subr.bf16.mxu0 %v374_v31 }
  0x3f   :  { %261 = vmatpush2.bf16.msra.mxu0 %v376_v32 }
  0x42   :  { %263 = vmatmul.mubr.bf16.vlgmr.msra.gmra.mxu0 %v377_v33 }
 0x102   :  { %v264_v41 = vpop.f32.mrf.mxu0 }
 0x103   :  { %v265_v43 = vadd.f32 %v264_v41, %v53_v39 }
 0x104   :  { %v266_v42 = vpop.f32.mrf.mxu0 }
 0x105   :  { %v267_v44 = vadd.f32 %v266_v42, %v57_v40 }
 0x106   :  { %v268_v45 = vpop.f32.mrf.mxu0 }
 0x107   :  { %v327_v46 = vpack.c.bf16 %v267_v44, %v265_v43  ;;  %v269_v48 = vadd.f32 %v268_v45, %v53_v39 }
 0x108   :  { %v270_v47 = vpop.f32.mrf.mxu0 }
 0x109   :  { %285 = vst [vmem:[%s514_s3] sm:$0xff] %v327_v46  ;;  %v271_v49 = vadd.f32 %v270_v47, %v57_v40 }
 0x10b   :  { %v328_v50 = vpack.c.bf16 %v271_v49, %v269_v48 }
 0x10d   :  { %286 = vst [vmem:[%s514_s3 + $0x8] sm:$0xff] %v328_v50 }

// kernel: transformer_model_forward.32
= control target key start
LH: loop header
LB: loop body
LE: loop exit
PB: predicated region body
PF: predicated region fallthrough
CT: control target
= control target key end

     0   :  { %s1990_s0 = inlined_call_operand.vmem [shape: bf16[16,256], index: 0, kind: input, shape index: {}]   ;;  %s1991_s1 = inlined_call_operand.vmem [shape: bf16[16,256], index: 1, kind: input, shape index: {}]   ;;  %s1992_s4 = inlined_call_operand.vmem [shape: bf16[256,512], index: 4, kind: input, shape index: {}]   ;;  %s1993_s6 = inlined_call_operand.vmem [shape: bf16[512,256], index: 6, kind: input, shape index: {}]   ;;  %s1994_s2 = inlined_call_operand.vmem [shape: f32[1,256], index: 2, kind: input, shape index: {}]   ;;  %s1995_s3 = inlined_call_operand.vmem [shape: f32[1,256], index: 3, kind: input, shape index: {}]   ;;  %s1996_s8 = inlined_call_operand.vmem [shape: bf16[16,256], index: 8, kind: output, shape index: {0}]   ;;  %s1997_s5 = inlined_call_operand.vmem [shape: f32[1,512], index: 5, kind: input, shape index: {}]   ;;  %s1998_s7 = inlined_call_operand.vmem [shape: f32[1,256], index: 7, kind: input, shape index: {}]   ;;  %s1999_s9 = inlined_call_operand.vmem [shape: bf16[16,256], index: 9, kind: output, shape index: {1}]  }
   0x1   :  { %v31_v0 = vld [vmem:[%s1990_s0] sm:$0xff]  ;;  %v32_v2 = vld [vmem:[%s1990_s0 + $0x8] sm:$0xff] }
   0x2   :  { %v37_v1 = vld [vmem:[%s1991_s1] sm:$0xff]  ;;  %v33_v3 = vunpack.c.l.bf16 %v31_v0  ;;  %v34_v4 = vunpack.c.h.bf16 %v31_v0  ;;  %v38_v7 = vld [vmem:[%s1991_s1 + $0x8] sm:$0xff]  ;;  %v35_v8 = vunpack.c.l.bf16 %v32_v2  ;;  %v36_v9 = vunpack.c.h.bf16 %v32_v2 }
   0x3   :  { %v39_v5 = vunpack.c.l.bf16 %v37_v1  ;;  %v40_v6 = vunpack.c.h.bf16 %v37_v1  ;;  %v41_v10 = vunpack.c.l.bf16 %v38_v7  ;;  %v42_v11 = vunpack.c.h.bf16 %v38_v7  ;;  %v1270_v18 = vld [vmem:[%s1992_s4 + $0xe4] ss:$16 sps:$4 sm:$0xff]   ;;  %v1272_v19 = vld [vmem:[%s1992_s4 + $0xec] ss:$16 sps:$4 sm:$0xff]   ;;  %v1274_v20 = vld [vmem:[%s1992_s4 + $0xe0] ss:$16 sps:$4 sm:$0xff]  }
   0x4   :  { %532 = vmatprep.subr.bf16.mxu0 %v1270_v18  ;;  %v1275_v21 = vld [vmem:[%s1992_s4 + $0xe8] ss:$16 sps:$4 sm:$0xff]   ;;  %575 = vmatprep.subr.bf16.mxu1 %v1272_v19  ;;  %v1276_v22 = vld [vmem:[%s1992_s4 + $0xc4] ss:$16 sps:$4 sm:$0xff]   ;;  %v1278_v23 = vld [vmem:[%s1992_s4 + $0xcc] ss:$16 sps:$4 sm:$0xff]  }
   0x5   :  { %v1528_v12 = vadd.f32 %v39_v5, %v33_v3  ;;  %v1530_v13 = vadd.f32 %v40_v6, %v34_v4  ;;  %v1532_v14 = vadd.f32 %v41_v10, %v35_v8  ;;  %v1534_v15 = vadd.f32 %v42_v11, %v36_v9  ;;  %533 = vmatpush1.bf16.msra.mxu0 %v1274_v20  ;;  %v1280_v24 = vld [vmem:[%s1992_s4 + $0xc0] ss:$16 sps:$4 sm:$0xff]   ;;  %v1281_v25 = vld [vmem:[%s1992_s4 + $0xc8] ss:$16 sps:$4 sm:$0xff]   ;;  %v1282_v26 = vld [vmem:[%s1992_s4 + $0xa4] ss:$16 sps:$4 sm:$0xff]  }
   0x6   :  { %576 = vmatpush1.bf16.msra.mxu1 %v1275_v21  ;;  %534 = vmatprep.subr.bf16.mxu0 %v1276_v22  ;;  %v1284_v27 = vld [vmem:[%s1992_s4 + $0xac] ss:$16 sps:$4 sm:$0xff]   ;;  %v1286_v28 = vld [vmem:[%s1992_s4 + $0xa0] ss:$16 sps:$4 sm:$0xff]   ;;  %v1287_v29 = vld [vmem:[%s1992_s4 + $0xa8] ss:$16 sps:$4 sm:$0xff]  }
   0x7   :  { %v49_v16 = vadd.f32 %v1530_v13, %v1528_v12  ;;  %v52_v17 = vadd.f32 %v1534_v15, %v1532_v14  ;;  %577 = vmatprep.subr.bf16.mxu1 %v1278_v23  ;;  %v1288_v30 = vld [vmem:[%s1992_s4 + $0x84] ss:$16 sps:$4 sm:$0xff]   ;;  %v1290_v31 = vld [vmem:[%s1992_s4 + $0x8c] ss:$16 sps:$4 sm:$0xff]   ;;  %v1292_v32 = vld [vmem:[%s1992_s4 + $0x80] ss:$16 sps:$4 sm:$0xff]  }
   0x8   :  { %v1293_v33 = vld [vmem:[%s1992_s4 + $0x88] ss:$16 sps:$4 sm:$0xff]   ;;  %v1294_v34 = vld [vmem:[%s1992_s4 + $0x64] ss:$16 sps:$4 sm:$0xff]   ;;  %v1296_v35 = vld [vmem:[%s1992_s4 + $0x6c] ss:$16 sps:$4 sm:$0xff]  }
   0x9   :  { %50 = vadd.xlane.f32.xlu0 %v49_v16  ;;  %535 = vmatpush1.bf16.msra.mxu0 %v1280_v24  ;;  %v1298_v36 = vld [vmem:[%s1992_s4 + $0x60] ss:$16 sps:$4 sm:$0xff]   ;;  %v1299_v37 = vld [vmem:[%s1992_s4 + $0x68] ss:$16 sps:$4 sm:$0xff]   ;;  %v1300_v38 = vld [vmem:[%s1992_s4 + $0x44] ss:$16 sps:$4 sm:$0xff]  }
   0xa   :  { %578 = vmatpush1.bf16.msra.mxu1 %v1281_v25  ;;  %536 = vmatprep.subr.bf16.mxu0 %v1282_v26  ;;  %v1302_v39 = vld [vmem:[%s1992_s4 + $0x4c] ss:$16 sps:$4 sm:$0xff]   ;;  %v1304_v40 = vld [vmem:[%s1992_s4 + $0x40] ss:$16 sps:$4 sm:$0xff]   ;;  %v1305_v41 = vld [vmem:[%s1992_s4 + $0x48] ss:$16 sps:$4 sm:$0xff]  }
   0xb   :  { %579 = vmatprep.subr.bf16.mxu1 %v1284_v27  ;;  %v1306_v42 = vld [vmem:[%s1992_s4 + $0x24] ss:$16 sps:$4 sm:$0xff]   ;;  %v1308_v43 = vld [vmem:[%s1992_s4 + $0x2c] ss:$16 sps:$4 sm:$0xff]   ;;  %v1310_v44 = vld [vmem:[%s1992_s4 + $0x20] ss:$16 sps:$4 sm:$0xff]  }
   0xc   :  { %v1311_v45 = vld [vmem:[%s1992_s4 + $0x28] ss:$16 sps:$4 sm:$0xff]   ;;  %v1312_v46 = vld [vmem:[%s1992_s4 + $0x4] ss:$16 sps:$4 sm:$0xff]   ;;  %v1314_v47 = vld [vmem:[%s1992_s4 + $0xc] ss:$16 sps:$4 sm:$0xff]  }
   0xd   :  { %53 = vadd.xlane.f32.xlu0 %v52_v17  ;;  %537 = vmatpush1.bf16.msra.mxu0 %v1286_v28  ;;  %v1316_v48 = vld [vmem:[%s1992_s4] ss:$16 sps:$4 sm:$0xff]   ;;  %v1317_v49 = vld [vmem:[%s1992_s4 + $0x8] ss:$16 sps:$4 sm:$0xff]   ;;  %v1318_v50 = vld [vmem:[%s1992_s4 + $0x1e4] ss:$16 sps:$4 sm:$0xff]  }
   0xe   :  { %580 = vmatpush1.bf16.msra.mxu1 %v1287_v29  ;;  %538 = vmatprep.subr.bf16.mxu0 %v1288_v30  ;;  %v1320_v51 = vld [vmem:[%s1992_s4 + $0x1ec] ss:$16 sps:$4 sm:$0xff]   ;;  %v1322_v2 = vld [vmem:[%s1992_s4 + $0x1e0] ss:$16 sps:$4 sm:$0xff]   ;;  %v1323_v3 = vld [vmem:[%s1992_s4 + $0x1e8] ss:$16 sps:$4 sm:$0xff]  }
   0xf   :  { %581 = vmatprep.subr.bf16.mxu1 %v1290_v31  ;;  %v1324_v4 = vld [vmem:[%s1992_s4 + $0x1c4] ss:$16 sps:$4 sm:$0xff]   ;;  %v1326_v5 = vld [vmem:[%s1992_s4 + $0x1cc] ss:$16 sps:$4 sm:$0xff]   ;;  %v1328_v6 = vld [vmem:[%s1992_s4 + $0x1c0] ss:$16 sps:$4 sm:$0xff]  }
  0x10   :  { %v1329_v7 = vld [vmem:[%s1992_s4 + $0x1c8] ss:$16 sps:$4 sm:$0xff]   ;;  %v1330_v8 = vld [vmem:[%s1992_s4 + $0x1a4] ss:$16 sps:$4 sm:$0xff]   ;;  %v1332_v9 = vld [vmem:[%s1992_s4 + $0x1ac] ss:$16 sps:$4 sm:$0xff]  }
  0x11   :  { %539 = vmatpush1.bf16.msra.mxu0 %v1292_v32  ;;  %v1334_v10 = vld [vmem:[%s1992_s4 + $0x1a0] ss:$16 sps:$4 sm:$0xff]   ;;  %v1335_v11 = vld [vmem:[%s1992_s4 + $0x1a8] ss:$16 sps:$4 sm:$0xff]   ;;  %v1342_v16 = vld [vmem:[%s1992_s4 + $0x164] ss:$16 sps:$4 sm:$0xff]  }
  0x12   :  { %582 = vmatpush1.bf16.msra.mxu1 %v1293_v33  ;;  %540 = vmatprep.subr.bf16.mxu0 %v1294_v34  ;;  %v1344_v17 = vld [vmem:[%s1992_s4 + $0x16c] ss:$16 sps:$4 sm:$0xff]   ;;  %v1346_v18 = vld [vmem:[%s1992_s4 + $0x160] ss:$16 sps:$4 sm:$0xff]   ;;  %v1347_v19 = vld [vmem:[%s1992_s4 + $0x168] ss:$16 sps:$4 sm:$0xff]  }
  0x13   :  { %583 = vmatprep.subr.bf16.mxu1 %v1296_v35  ;;  %v1348_v20 = vld [vmem:[%s1992_s4 + $0x144] ss:$16 sps:$4 sm:$0xff]   ;;  %v1350_v21 = vld [vmem:[%s1992_s4 + $0x14c] ss:$16 sps:$4 sm:$0xff]   ;;  %v1352_v22 = vld [vmem:[%s1992_s4 + $0x140] ss:$16 sps:$4 sm:$0xff]  }
  0x14   :  { %v1353_v23 = vld [vmem:[%s1992_s4 + $0x148] ss:$16 sps:$4 sm:$0xff]   ;;  %v1354_v24 = vld [vmem:[%s1992_s4 + $0x124] ss:$16 sps:$4 sm:$0xff]   ;;  %v1356_v25 = vld [vmem:[%s1992_s4 + $0x12c] ss:$16 sps:$4 sm:$0xff]  }
  0x15   :  { %541 = vmatpush1.bf16.msra.mxu0 %v1298_v36  ;;  %v1358_v26 = vld [vmem:[%s1992_s4 + $0x120] ss:$16 sps:$4 sm:$0xff]   ;;  %v1359_v27 = vld [vmem:[%s1992_s4 + $0x128] ss:$16 sps:$4 sm:$0xff]   ;;  %v1360_v28 = vld [vmem:[%s1992_s4 + $0x104] ss:$16 sps:$4 sm:$0xff]  }
  0x16   :  { %584 = vmatpush1.bf16.msra.mxu1 %v1299_v37  ;;  %542 = vmatprep.subr.bf16.mxu0 %v1300_v38  ;;  %v1362_v29 = vld [vmem:[%s1992_s4 + $0x10c] ss:$16 sps:$4 sm:$0xff]   ;;  %v1364_v30 = vld [vmem:[%s1992_s4 + $0x100] ss:$16 sps:$4 sm:$0xff]   ;;  %v1365_v31 = vld [vmem:[%s1992_s4 + $0x108] ss:$16 sps:$4 sm:$0xff]  }
  0x17   :  { %585 = vmatprep.subr.bf16.mxu1 %v1302_v39  ;;  %v1368_v32 = vld [vmem:[%s1993_s6 + $0x74] ss:$8 sps:$4 sm:$0xff]   ;;  %v83_v39 = vlaneseq }
  0x18   :  { %v1371_v33 = vld [vmem:[%s1993_s6 + $0x174] ss:$8 sps:$4 sm:$0xff]  }
  0x19   :  { %543 = vmatpush1.bf16.msra.mxu0 %v1304_v40 }
  0x1a   :  { %586 = vmatpush1.bf16.msra.mxu1 %v1305_v41  ;;  %544 = vmatprep.subr.bf16.mxu0 %v1306_v42  ;;  %v1758_v41 = vshrl.u32 %v83_v39, 7  ;;  %v1425_v39 = vld [vmem:[%s1993_s6 + $0x1e4] ss:$8 sps:$4 sm:$0xff]  }
  0x1b   :  { %587 = vmatprep.subr.bf16.mxu1 %v1308_v43 }
  0x1c   :  { %v1761_v42 = vsub.s32 0, %v1758_v41  ;;  %v1764_v43 = vsub.s32 1, %v1758_v41 }
  0x1d   :  { %545 = vmatpush1.bf16.msra.mxu0 %v1310_v44  ;;  %v47_v44 = vld [vmem:[%s1994_s2] sm:$0x3] }
  0x1e   :  { %588 = vmatpush1.bf16.msra.mxu1 %v1311_v45  ;;  %546 = vmatprep.subr.bf16.mxu0 %v1312_v46  ;;  %v48_v45 = vld [vmem:[%s1995_s3] sm:$0x3]  ;;  %v86_v46 = vrot.slane %v47_v44, %v1761_v42 }
  0x1f   :  { %589 = vmatprep.subr.bf16.mxu1 %v1314_v47  ;;  %v90_v47 = vrot.slane %v47_v44, %v1764_v43  ;;  %v1423_v44 = vld [vmem:[%s1993_s6 + $0x1e0] ss:$8 sps:$4 sm:$0xff]  }
  0x21   :  { %547 = vmatpush1.bf16.msra.mxu0 %v1316_v48 }
  0x22   :  { %590 = vmatpush1.bf16.msra.mxu1 %v1317_v49  ;;  %548 = vmatprep.subr.bf16.mxu0 %v1318_v50 }
  0x23   :  { %591 = vmatprep.subr.bf16.mxu1 %v1320_v51  ;;  %v101_v51 = vrot.slane %v48_v45, %v1761_v42 }
  0x25   :  { %549 = vmatpush2.bf16.msra.mxu0 %v1322_v2 }
  0x26   :  { %592 = vmatpush2.bf16.msra.mxu1 %v1323_v3  ;;  %550 = vmatprep.subr.bf16.mxu0 %v1324_v4 }
  0x27   :  { %593 = vmatprep.subr.bf16.mxu1 %v1326_v5 }
  0x29   :  { %551 = vmatpush2.bf16.msra.mxu0 %v1328_v6  ;;  %v1374_v6 = vld [vmem:[%s1993_s6 + $0x64] ss:$8 sps:$4 sm:$0xff]  }
  0x2a   :  { %594 = vmatpush2.bf16.msra.mxu1 %v1329_v7  ;;  %552 = vmatprep.subr.bf16.mxu0 %v1330_v8  ;;  %v1377_v7 = vld [vmem:[%s1993_s6 + $0x164] ss:$8 sps:$4 sm:$0xff]   ;;  %v1372_v8 = vld [vmem:[%s1993_s6 + $0x60] ss:$8 sps:$4 sm:$0xff]  }
  0x2b   :  { %595 = vmatprep.subr.bf16.mxu1 %v1332_v9  ;;  %v1375_v9 = vld [vmem:[%s1993_s6 + $0x160] ss:$8 sps:$4 sm:$0xff]  }
  0x2d   :  { %553 = vmatpush2.bf16.msra.mxu0 %v1334_v10  ;;  %v1380_v10 = vld [vmem:[%s1993_s6 + $0x54] ss:$8 sps:$4 sm:$0xff]  }
  0x2e   :  { %596 = vmatpush2.bf16.msra.mxu1 %v1335_v11  ;;  %v1383_v11 = vld [vmem:[%s1993_s6 + $0x154] ss:$8 sps:$4 sm:$0xff]  }
  0x92   :  { %v51_v52 = vpop.xlane.xlu0 %50 }
  0x93   :  { %v56_v53 = vmul.f32 0.00390625, %v51_v52  ;;  %v105_v52 = vrot.slane %v48_v45, %v1764_v43  ;;  %v1428_v45 = vld [vmem:[%s1993_s6 + $0xd4] ss:$8 sps:$4 sm:$0xff]  }
  0x95   :  { %v1643_v54 = vsub.f32 %v1528_v12, %v56_v53  ;;  %v1646_v55 = vsub.f32 %v1530_v13, %v56_v53  ;;  %v1336_v12 = vld [vmem:[%s1992_s4 + $0x184] ss:$16 sps:$4 sm:$0xff]   ;;  %v1338_v13 = vld [vmem:[%s1992_s4 + $0x18c] ss:$16 sps:$4 sm:$0xff]  }
  0x96   :  { %v54_v56 = vpop.xlane.xlu0 %53  ;;  %554 = vmatprep.subr.bf16.mxu0 %v1336_v12  ;;  %597 = vmatprep.subr.bf16.mxu1 %v1338_v13  ;;  %v1378_v12 = vld [vmem:[%s1993_s6 + $0x50] ss:$8 sps:$4 sm:$0xff]  }
  0x97   :  { %v57_v57 = vmul.f32 0.00390625, %v54_v56  ;;  %v62_v58 = vmul.f32 %v1643_v54, %v1643_v54  ;;  %v63_v59 = vmul.f32 %v1646_v55, %v1646_v55  ;;  %v1381_v13 = vld [vmem:[%s1993_s6 + $0x150] ss:$8 sps:$4 sm:$0xff]  }
  0x99   :  { %v1653_v60 = vsub.f32 %v1532_v14, %v57_v57  ;;  %v1656_v61 = vsub.f32 %v1534_v15, %v57_v57  ;;  %v66_v62 = vadd.f32 %v63_v59, %v62_v58  ;;  %v1340_v14 = vld [vmem:[%s1992_s4 + $0x180] ss:$16 sps:$4 sm:$0xff]   ;;  %v1341_v15 = vld [vmem:[%s1992_s4 + $0x188] ss:$16 sps:$4 sm:$0xff]  }
  0x9a   :  { %555 = vmatpush2.bf16.msra.mxu0 %v1340_v14  ;;  %598 = vmatpush2.bf16.msra.mxu1 %v1341_v15  ;;  %v1386_v14 = vld [vmem:[%s1993_s6 + $0x44] ss:$8 sps:$4 sm:$0xff]  }
  0x9b   :  { %67 = vadd.xlane.f32.xlu1 %v66_v62  ;;  %v64_v63 = vmul.f32 %v1653_v60, %v1653_v60  ;;  %v65_v0 = vmul.f32 %v1656_v61, %v1656_v61  ;;  %556 = vmatprep.subr.bf16.mxu0 %v1342_v16  ;;  %v1389_v15 = vld [vmem:[%s1993_s6 + $0x144] ss:$8 sps:$4 sm:$0xff]   ;;  %v1384_v16 = vld [vmem:[%s1993_s6 + $0x40] ss:$8 sps:$4 sm:$0xff]  }
  0x9c   :  { %599 = vmatprep.subr.bf16.mxu1 %v1344_v17  ;;  %v1387_v17 = vld [vmem:[%s1993_s6 + $0x140] ss:$8 sps:$4 sm:$0xff]  }
  0x9d   :  { %v69_v1 = vadd.f32 %v65_v0, %v64_v63 }
  0x9e   :  { %557 = vmatpush2.bf16.msra.mxu0 %v1346_v18  ;;  %600 = vmatpush2.bf16.msra.mxu1 %v1347_v19  ;;  %v1392_v18 = vld [vmem:[%s1993_s6 + $0x34] ss:$8 sps:$4 sm:$0xff]  }
  0x9f   :  { %70 = vadd.xlane.f32.xlu1 %v69_v1  ;;  %558 = vmatprep.subr.bf16.mxu0 %v1348_v20  ;;  %v1395_v19 = vld [vmem:[%s1993_s6 + $0x134] ss:$8 sps:$4 sm:$0xff]   ;;  %v1390_v20 = vld [vmem:[%s1993_s6 + $0x30] ss:$8 sps:$4 sm:$0xff]  }
  0xa0   :  { %601 = vmatprep.subr.bf16.mxu1 %v1350_v21  ;;  %v1393_v21 = vld [vmem:[%s1993_s6 + $0x130] ss:$8 sps:$4 sm:$0xff]  }
  0xa2   :  { %559 = vmatpush2.bf16.msra.mxu0 %v1352_v22  ;;  %602 = vmatpush2.bf16.msra.mxu1 %v1353_v23  ;;  %v1398_v22 = vld [vmem:[%s1993_s6 + $0x24] ss:$8 sps:$4 sm:$0xff]  }
  0xa3   :  { %560 = vmatprep.subr.bf16.mxu0 %v1354_v24  ;;  %603 = vmatprep.subr.bf16.mxu1 %v1356_v25  ;;  %v1401_v23 = vld [vmem:[%s1993_s6 + $0x124] ss:$8 sps:$4 sm:$0xff]   ;;  %v1396_v24 = vld [vmem:[%s1993_s6 + $0x20] ss:$8 sps:$4 sm:$0xff]  }
  0xa4   :  { %v1399_v25 = vld [vmem:[%s1993_s6 + $0x120] ss:$8 sps:$4 sm:$0xff]  }
  0xa6   :  { %561 = vmatpush2.bf16.msra.mxu0 %v1358_v26  ;;  %604 = vmatpush2.bf16.msra.mxu1 %v1359_v27  ;;  %v1404_v26 = vld [vmem:[%s1993_s6 + $0x14] ss:$8 sps:$4 sm:$0xff]  }
  0xa7   :  { %562 = vmatprep.subr.bf16.mxu0 %v1360_v28  ;;  %605 = vmatprep.subr.bf16.mxu1 %v1362_v29  ;;  %v1407_v27 = vld [vmem:[%s1993_s6 + $0x114] ss:$8 sps:$4 sm:$0xff]   ;;  %v1402_v28 = vld [vmem:[%s1993_s6 + $0x10] ss:$8 sps:$4 sm:$0xff]  }
  0xa8   :  { %v1405_v29 = vld [vmem:[%s1993_s6 + $0x110] ss:$8 sps:$4 sm:$0xff]  }
  0xaa   :  { %563 = vmatpush2.bf16.msra.mxu0 %v1364_v30  ;;  %606 = vmatpush2.bf16.msra.mxu1 %v1365_v31  ;;  %v1410_v30 = vld [vmem:[%s1993_s6 + $0x4] ss:$8 sps:$4 sm:$0xff]  }
  0xab   :  { %1026 = vmatprep.subr.bf16.mxu0 %v1368_v32  ;;  %1069 = vmatprep.subr.bf16.mxu1 %v1371_v33  ;;  %v1413_v31 = vld [vmem:[%s1993_s6 + $0x104] ss:$8 sps:$4 sm:$0xff]   ;;  %v1408_v32 = vld [vmem:[%s1993_s6] ss:$8 sps:$4 sm:$0xff]  }
  0xac   :  { %v1411_v33 = vld [vmem:[%s1993_s6 + $0x100] ss:$8 sps:$4 sm:$0xff]  }
 0x124   :  { %v68_v34 = vpop.xlane.xlu1 %67 }
 0x125   :  { %v72_v35 = vmul.f32 0.00390625, %v68_v34  ;;  %v1416_v34 = vld [vmem:[%s1993_s6 + $0xf4] ss:$8 sps:$4 sm:$0xff]  }
 0x127   :  { %v74_v36 = vadd.f32 1e-05, %v72_v35  ;;  %v1419_v35 = vld [vmem:[%s1993_s6 + $0x1f4] ss:$8 sps:$4 sm:$0xff]  }
 0x128   :  { %v71_v37 = vpop.xlane.xlu1 %70 }
 0x129   :  { %1462 = vrsqrt.f32 %v74_v36  ;;  %v73_v38 = vmul.f32 0.00390625, %v71_v37  ;;  %v1414_v36 = vld [vmem:[%s1993_s6 + $0xf0] ss:$8 sps:$4 sm:$0xff]  }
 0x12a   :  { %v1417_v37 = vld [vmem:[%s1993_s6 + $0x1f0] ss:$8 sps:$4 sm:$0xff]  }
 0x12b   :  { %v75_v40 = vadd.f32 1e-05, %v73_v38  ;;  %v1422_v38 = vld [vmem:[%s1993_s6 + $0xe4] ss:$8 sps:$4 sm:$0xff]  }
 0x12d   :  { %1464 = vrsqrt.f32 %v75_v40  ;;  %v1420_v40 = vld [vmem:[%s1993_s6 + $0xe0] ss:$8 sps:$4 sm:$0xff]  }
 0x136   :  { %v1463_v48 = vpop.eup %1462 }
 0x137   :  { %v78_v49 = vmul.f32 %v1463_v48, %v1643_v54  ;;  %v79_v50 = vmul.f32 %v1463_v48, %v1646_v55  ;;  %v1429_v48 = vld [vmem:[%s1993_s6 + $0x1d0] ss:$8 sps:$4 sm:$0xff]  }
 0x139   :  { %v93_v53 = vmul.f32 %v86_v46, %v78_v49  ;;  %v94_v56 = vmul.f32 %v90_v47, %v79_v50  ;;  %v1434_v49 = vld [vmem:[%s1993_s6 + $0xc4] ss:$8 sps:$4 sm:$0xff]  }
 0x13a   :  { %v1465_v57 = vpop.eup %1464  ;;  %v1437_v50 = vld [vmem:[%s1993_s6 + $0x1c4] ss:$8 sps:$4 sm:$0xff]  }
 0x13b   :  { %v80_v58 = vmul.f32 %v1465_v57, %v1653_v60  ;;  %v81_v59 = vmul.f32 %v1465_v57, %v1656_v61  ;;  %v108_v62 = vadd.f32 %v101_v51, %v93_v53  ;;  %v109_v63 = vadd.f32 %v105_v52, %v94_v56  ;;  %v1366_v60 = vld [vmem:[%s1993_s6 + $0x70] ss:$8 sps:$4 sm:$0xff]   ;;  %v1440_v53 = vld [vmem:[%s1993_s6 + $0xb4] ss:$8 sps:$4 sm:$0xff]  }
 0x13c   :  { %v1369_v61 = vld [vmem:[%s1993_s6 + $0x170] ss:$8 sps:$4 sm:$0xff]   ;;  %v1443_v56 = vld [vmem:[%s1993_s6 + $0x1b4] ss:$8 sps:$4 sm:$0xff]  }
 0x13d   :  { %v95_v0 = vmul.f32 %v86_v46, %v80_v58  ;;  %v96_v1 = vmul.f32 %v90_v47, %v81_v59  ;;  %v1266_v2 = vpack.c.bf16 %v109_v63, %v108_v62  ;;  %v1431_v46 = vld [vmem:[%s1993_s6 + $0x1d4] ss:$8 sps:$4 sm:$0xff]   ;;  %v1426_v47 = vld [vmem:[%s1993_s6 + $0xd0] ss:$8 sps:$4 sm:$0xff]   ;;  %v1446_v59 = vld [vmem:[%s1993_s6 + $0xa4] ss:$8 sps:$4 sm:$0xff]  }
 0x13e   :  { %v1438_v57 = vld [vmem:[%s1993_s6 + $0xb0] ss:$8 sps:$4 sm:$0xff]  }
 0x13f   :  { %v110_v3 = vadd.f32 %v101_v51, %v95_v0  ;;  %v111_v54 = vadd.f32 %v105_v52, %v96_v1  ;;  %124 = vst [vmem:[%s1996_s8] sm:$0xff] %v1266_v2  ;;  %v1432_v51 = vld [vmem:[%s1993_s6 + $0xc0] ss:$8 sps:$4 sm:$0xff]   ;;  %v1441_v58 = vld [vmem:[%s1993_s6 + $0x1b0] ss:$8 sps:$4 sm:$0xff]   ;;  %v1452_v1 = vld [vmem:[%s1993_s6 + $0x94] ss:$8 sps:$4 sm:$0xff]  }
 0x140   :  { %v1435_v52 = vld [vmem:[%s1993_s6 + $0x1c0] ss:$8 sps:$4 sm:$0xff]   ;;  %v1455_v2 = vld [vmem:[%s1993_s6 + $0x194] ss:$8 sps:$4 sm:$0xff]  }
 0x141   :  { %v113_v55 = vpack.c.bf16 %v111_v54, %v109_v63  ;;  %v1267_v4 = vpack.c.bf16 %v111_v54, %v110_v3  ;;  %v112_v5 = vpack.c.bf16 %v110_v3, %v108_v62  ;;  %v1449_v62 = vld [vmem:[%s1993_s6 + $0x1a4] ss:$8 sps:$4 sm:$0xff]   ;;  %v1444_v63 = vld [vmem:[%s1993_s6 + $0xa0] ss:$8 sps:$4 sm:$0xff]   ;;  %v1450_v3 = vld [vmem:[%s1993_s6 + $0x90] ss:$8 sps:$4 sm:$0xff]  }
 0x142   :  { %v1447_v0 = vld [vmem:[%s1993_s6 + $0x1a0] ss:$8 sps:$4 sm:$0xff]   ;;  %v1453_v54 = vld [vmem:[%s1993_s6 + $0x190] ss:$8 sps:$4 sm:$0xff]  }
 0x143   :  { %125 = vst [vmem:[%s1996_s8 + $0x8] sm:$0xff] %v1267_v4  ;;  %564 = vmatprep.mubr.bf16.mxu0 %v113_v55  ;;  %607 = vmatprep.mubr.bf16.mxu1 %v113_v55  ;;  %v1458_v55 = vld [vmem:[%s1993_s6 + $0x84] ss:$8 sps:$4 sm:$0xff]  }
 0x144   :  { %565 = vmatmul.mubr.bf16.vlgmr.msra.gmra.mxu0 %v112_v5  ;;  %608 = vmatmul.mubr.bf16.vlgmr.msra.gmra.mxu1 %v112_v5  ;;  %v1461_v4 = vld [vmem:[%s1993_s6 + $0x184] ss:$8 sps:$4 sm:$0xff]   ;;  %v1456_v5 = vld [vmem:[%s1993_s6 + $0x80] ss:$8 sps:$4 sm:$0xff]  }
 0x145   :  { %1027 = vmatpush1.bf16.msra.mxu0 %v1366_v60  ;;  %1070 = vmatpush1.bf16.msra.mxu1 %v1369_v61  ;;  %v1459_v60 = vld [vmem:[%s1993_s6 + $0x180] ss:$8 sps:$4 sm:$0xff]   ;;  %v206_v61 = vsub.s32 3, %v1758_v41 }
 0x146   :  { %1028 = vmatprep.subr.bf16.mxu0 %v1374_v6  ;;  %1071 = vmatprep.subr.bf16.mxu1 %v1377_v7  ;;  %v202_v6 = vsub.s32 2, %v1758_v41  ;;  %v190_v7 = vld [vmem:[%s1997_s5] sm:$0xf] }
 0x149   :  { %1029 = vmatpush1.bf16.msra.mxu0 %v1372_v8  ;;  %1072 = vmatpush1.bf16.msra.mxu1 %v1375_v9 }
 0x14a   :  { %1030 = vmatprep.subr.bf16.mxu0 %v1380_v10  ;;  %1073 = vmatprep.subr.bf16.mxu1 %v1383_v11  ;;  %v199_v10 = vrot.slane %v190_v7, %v1764_v43  ;;  %v207_v11 = vrot.slane %v190_v7, %v206_v61 }
 0x14d   :  { %1031 = vmatpush1.bf16.msra.mxu0 %v1378_v12  ;;  %1074 = vmatpush1.bf16.msra.mxu1 %v1381_v13  ;;  %v195_v12 = vrot.slane %v190_v7, %v1761_v42  ;;  %v203_v13 = vrot.slane %v190_v7, %v202_v6 }
 0x14e   :  { %1032 = vmatprep.subr.bf16.mxu0 %v1386_v14  ;;  %1075 = vmatprep.subr.bf16.mxu1 %v1389_v15 }
 0x151   :  { %1033 = vmatpush1.bf16.msra.mxu0 %v1384_v16  ;;  %1076 = vmatpush1.bf16.msra.mxu1 %v1387_v17 }
 0x152   :  { %1034 = vmatprep.subr.bf16.mxu0 %v1392_v18  ;;  %1077 = vmatprep.subr.bf16.mxu1 %v1395_v19 }
 0x155   :  { %1035 = vmatpush1.bf16.msra.mxu0 %v1390_v20  ;;  %1078 = vmatpush1.bf16.msra.mxu1 %v1393_v21 }
 0x156   :  { %1036 = vmatprep.subr.bf16.mxu0 %v1398_v22  ;;  %1079 = vmatprep.subr.bf16.mxu1 %v1401_v23 }
 0x159   :  { %1037 = vmatpush1.bf16.msra.mxu0 %v1396_v24  ;;  %1080 = vmatpush1.bf16.msra.mxu1 %v1399_v25 }
 0x15a   :  { %1038 = vmatprep.subr.bf16.mxu0 %v1404_v26  ;;  %1081 = vmatprep.subr.bf16.mxu1 %v1407_v27 }
 0x15d   :  { %1039 = vmatpush1.bf16.msra.mxu0 %v1402_v28  ;;  %1082 = vmatpush1.bf16.msra.mxu1 %v1405_v29 }
 0x15e   :  { %1040 = vmatprep.subr.bf16.mxu0 %v1410_v30  ;;  %1083 = vmatprep.subr.bf16.mxu1 %v1413_v31 }
 0x161   :  { %1041 = vmatpush1.bf16.msra.mxu0 %v1408_v32  ;;  %1084 = vmatpush1.bf16.msra.mxu1 %v1411_v33 }
 0x162   :  { %1042 = vmatprep.subr.bf16.mxu0 %v1416_v34  ;;  %1085 = vmatprep.subr.bf16.mxu1 %v1419_v35 }
 0x165   :  { %1043 = vmatpush2.bf16.msra.mxu0 %v1414_v36  ;;  %1086 = vmatpush2.bf16.msra.mxu1 %v1417_v37 }
 0x166   :  { %1044 = vmatprep.subr.bf16.mxu0 %v1422_v38  ;;  %1087 = vmatprep.subr.bf16.mxu1 %v1425_v39  ;;  %v694_v39 = vld [vmem:[%s1998_s7] sm:$0x3] }
 0x169   :  { %1045 = vmatpush2.bf16.msra.mxu0 %v1420_v40  ;;  %1088 = vmatpush2.bf16.msra.mxu1 %v1423_v44  ;;  %v699_v40 = vrot.slane %v694_v39, %v1761_v42  ;;  %v703_v44 = vrot.slane %v694_v39, %v1764_v43 }
 0x16a   :  { %1046 = vmatprep.subr.bf16.mxu0 %v1428_v45  ;;  %1089 = vmatprep.subr.bf16.mxu1 %v1431_v46 }
 0x16d   :  { %1047 = vmatpush2.bf16.msra.mxu0 %v1426_v47  ;;  %1090 = vmatpush2.bf16.msra.mxu1 %v1429_v48 }
 0x16e   :  { %1048 = vmatprep.subr.bf16.mxu0 %v1434_v49  ;;  %1091 = vmatprep.subr.bf16.mxu1 %v1437_v50 }
 0x171   :  { %1049 = vmatpush2.bf16.msra.mxu0 %v1432_v51  ;;  %1092 = vmatpush2.bf16.msra.mxu1 %v1435_v52 }
 0x172   :  { %1050 = vmatprep.subr.bf16.mxu0 %v1440_v53  ;;  %1093 = vmatprep.subr.bf16.mxu1 %v1443_v56 }
 0x175   :  { %1051 = vmatpush2.bf16.msra.mxu0 %v1438_v57  ;;  %1094 = vmatpush2.bf16.msra.mxu1 %v1441_v58 }
 0x176   :  { %1052 = vmatprep.subr.bf16.mxu0 %v1446_v59  ;;  %1095 = vmatprep.subr.bf16.mxu1 %v1449_v62 }
 0x179   :  { %1053 = vmatpush2.bf16.msra.mxu0 %v1444_v63  ;;  %1096 = vmatpush2.bf16.msra.mxu1 %v1447_v0 }
 0x17a   :  { %1054 = vmatprep.subr.bf16.mxu0 %v1452_v1  ;;  %1097 = vmatprep.subr.bf16.mxu1 %v1455_v2 }
 0x17d   :  { %1055 = vmatpush2.bf16.msra.mxu0 %v1450_v3  ;;  %1098 = vmatpush2.bf16.msra.mxu1 %v1453_v54 }
 0x17e   :  { %1056 = vmatprep.subr.bf16.mxu0 %v1458_v55  ;;  %1099 = vmatprep.subr.bf16.mxu1 %v1461_v4 }
 0x181   :  { %1057 = vmatpush2.bf16.msra.mxu0 %v1456_v5  ;;  %1100 = vmatpush2.bf16.msra.mxu1 %v1459_v60 }
 0x204   :  { %v566_v8 = vpop.f32.mrf.mxu0  ;;  %v609_v9 = vpop.f32.mrf.mxu1 }
 0x205   :  { %v567_v21 = vadd.f32 %v566_v8, %v195_v12  ;;  %v610_v22 = vadd.f32 %v609_v9, %v203_v13 }
 0x206   :  { %v568_v14 = vpop.f32.mrf.mxu0  ;;  %v611_v15 = vpop.f32.mrf.mxu1 }
 0x207   :  { %v569_v18 = vadd.f32 %v568_v14, %v199_v10  ;;  %v612_v19 = vadd.f32 %v611_v15, %v207_v11  ;;  %v618_v33 = vmax.f32 %v567_v21, 0.0  ;;  %v620_v34 = vmax.f32 %v610_v22, 0.0 }
 0x208   :  { %v570_v16 = vpop.f32.mrf.mxu0  ;;  %v613_v17 = vpop.f32.mrf.mxu1 }
 0x209   :  { %v571_v20 = vadd.f32 %v570_v16, %v195_v12  ;;  %v614_v41 = vadd.f32 %v613_v17, %v203_v13  ;;  %v619_v29 = vmax.f32 %v569_v18, 0.0  ;;  %v621_v30 = vmax.f32 %v612_v19, 0.0 }
 0x20a   :  { %v572_v23 = vpop.f32.mrf.mxu0  ;;  %v615_v24 = vpop.f32.mrf.mxu1 }
 0x20b   :  { %v573_v25 = vadd.f32 %v572_v23, %v199_v10  ;;  %v616_v26 = vadd.f32 %v615_v24, %v207_v11  ;;  %v622_v27 = vmax.f32 %v571_v20, 0.0  ;;  %v624_v28 = vmax.f32 %v614_v41, 0.0 }
 0x20d   :  { %v623_v31 = vmax.f32 %v573_v25, 0.0  ;;  %v625_v32 = vmax.f32 %v616_v26, 0.0  ;;  %v626_v37 = vpack.c.bf16 %v622_v27, %v618_v33  ;;  %v628_v38 = vpack.c.bf16 %v624_v28, %v620_v34 }
 0x20f   :  { %v627_v35 = vpack.c.bf16 %v623_v31, %v619_v29  ;;  %v629_v36 = vpack.c.bf16 %v625_v32, %v621_v30 }
 0x211   :  { %1058 = vmatprep.mubr.bf16.mxu0 %v627_v35  ;;  %1101 = vmatprep.mubr.bf16.mxu1 %v629_v36 }
 0x212   :  { %1059 = vmatmul.mubr.bf16.vlgmr.msra.gmra.mxu0 %v626_v37  ;;  %1102 = vmatmul.mubr.bf16.vlgmr.msra.gmra.mxu1 %v628_v38 }
 0x2d2   :  { %v1060_v45 = vpop.f32.mrf.mxu0  ;;  %v1103_v46 = vpop.f32.mrf.mxu1 }
 0x2d3   :  { %v1061_v47 = vadd.f32 %v1060_v45, %v699_v40 }
 0x2d4   :  { %v1062_v48 = vpop.f32.mrf.mxu0  ;;  %v1105_v49 = vpop.f32.mrf.mxu1 }
 0x2d5   :  { %v1063_v50 = vadd.f32 %v1062_v48, %v703_v44  ;;  %v1104_v53 = vadd.f32 %v1103_v46, %v1061_v47 }
 0x2d6   :  { %v1064_v51 = vpop.f32.mrf.mxu0  ;;  %v1107_v52 = vpop.f32.mrf.mxu1 }
 0x2d7   :  { %v1106_v56 = vadd.f32 %v1105_v49, %v1063_v50  ;;  %v1065_v57 = vadd.f32 %v1064_v51, %v699_v40 }
 0x2d8   :  { %v1066_v58 = vpop.f32.mrf.mxu0  ;;  %v1109_v63 = vpop.f32.mrf.mxu1 }
 0x2d9   :  { %v1268_v59 = vpack.c.bf16 %v1106_v56, %v1104_v53  ;;  %v1067_v62 = vadd.f32 %v1066_v58, %v703_v44  ;;  %v1108_v42 = vadd.f32 %v1107_v52, %v1065_v57 }
 0x2db   :  { %1124 = vst [vmem:[%s1999_s9] sm:$0xff] %v1268_v59  ;;  %v1110_v43 = vadd.f32 %v1109_v63, %v1067_v62 }
 0x2dd   :  { %v1269_v0 = vpack.c.bf16 %v1110_v43, %v1108_v42 }
 0x2df   :  { %1125 = vst [vmem:[%s1999_s9 + $0x8] sm:$0xff] %v1269_v0 }

// kernel: transformer_model_forward.29
= control target key start
LH: loop header
LB: loop body
LE: loop exit
PB: predicated region body
PF: predicated region fallthrough
CT: control target
= control target key end

     0   :  { %8 = vsyncpa [#allocation3], 0  ;;  %s1106_s12 = smov [#allocation2]   ;;  %s1169_s0 = inlined_call_operand.vmem [shape: bf16[16,256], index: 0, kind: input, shape index: {}]   ;;  %s1170_s1 = inlined_call_operand.hbm [shape: bf16[256,768], index: 1, kind: input, shape index: {}]   ;;  %s1171_s2 = inlined_call_operand.vmem [shape: f32[1,768], index: 2, kind: input, shape index: {}]   ;;  %s1172_s3 = inlined_call_operand.vmem [shape: bf16[16,768], index: 3, kind: output, shape index: {}]  }
   0x1   :  { %s16_s13 = sshll.u32 %s1106_s12, 4  ;;  %s17_s13 = int_to_ptr.vmem [resolvable:$true] %s16_s13 }
   0x2   :  { %s1092_s14 = scalar_lea.vmem %s17_s13, 12288  ;;  %p1097_p1 = scmp.lt.s32.totalorder %s17_s13, %s17_s13 }
   0x3   :  { %p1093_p0 = scmp.ne.s32.totalorder %s17_s13, %s1092_s14  ;;  %p1098_p2 = scmp.lt.s32.totalorder %s1092_s14, %s1092_s14 }
   0x5   :  { %p1099_p3 = por %p1098_p2, %p1097_p1 }
   0x7   :  { %p1100_p4 = pnand %p1099_p3, %p1093_p0 }
   0x9   :  { %1103 = shalt.err (!%p1100_p4)
}
   0xa   :  { %s1107_s15 = smov 384   ;;  %s1108_s16 = smov 24  }
   0xb   :  { %22 = dma.hbm_to_vmem [thread:$0]  %s1170_s1, 12288, %s17_s13, [#allocation3], %s1107_s15, %s1107_s15, %s1108_s16  }
   0xc   :  { %1104 = dma.done.wait [#allocation3], 12288  }
   0xd   :  { %1105 = vsyncadd [#allocation3], 4294955008  ;;  %v937_v0 = vld [vmem:[#allocation2 + $0x154] ss:$24 sps:$4 sm:$0xff]   ;;  %v939_v1 = vld [vmem:[#allocation2 + $0x150] ss:$24 sps:$4 sm:$0xff]  }
   0xe   :  { %648 = vmatprep.subr.bf16.mxu0 %v937_v0  ;;  %v940_v2 = vld [vmem:[#allocation2 + $0x124] ss:$24 sps:$4 sm:$0xff]   ;;  %v942_v3 = vld [vmem:[#allocation2 + $0x120] ss:$24 sps:$4 sm:$0xff]   ;;  %v943_v4 = vld [vmem:[#allocation2 + $0xf4] ss:$24 sps:$4 sm:$0xff]  }
   0xf   :  { %649 = vmatpush1.bf16.msra.mxu0 %v939_v1  ;;  %v945_v5 = vld [vmem:[#allocation2 + $0xf0] ss:$24 sps:$4 sm:$0xff]   ;;  %v946_v6 = vld [vmem:[#allocation2 + $0xc4] ss:$24 sps:$4 sm:$0xff]   ;;  %v948_v7 = vld [vmem:[#allocation2 + $0xc0] ss:$24 sps:$4 sm:$0xff]  }
  0x10   :  { %650 = vmatprep.subr.bf16.mxu0 %v940_v2  ;;  %v949_v8 = vld [vmem:[#allocation2 + $0x94] ss:$24 sps:$4 sm:$0xff]   ;;  %v951_v9 = vld [vmem:[#allocation2 + $0x90] ss:$24 sps:$4 sm:$0xff]   ;;  %v952_v10 = vld [vmem:[#allocation2 + $0x64] ss:$24 sps:$4 sm:$0xff]  }
  0x11   :  { %v954_v11 = vld [vmem:[#allocation2 + $0x60] ss:$24 sps:$4 sm:$0xff]   ;;  %v955_v12 = vld [vmem:[#allocation2 + $0x34] ss:$24 sps:$4 sm:$0xff]   ;;  %v957_v15 = vld [vmem:[#allocation2 + $0x30] ss:$24 sps:$4 sm:$0xff]  }
  0x12   :  { %v982_v13 = vld [vmem:[#allocation2 + $0x15c] ss:$24 sps:$4 sm:$0xff]   ;;  %v984_v14 = vld [vmem:[#allocation2 + $0x158] ss:$24 sps:$4 sm:$0xff]   ;;  %v988_v17 = vld [vmem:[#allocation2 + $0x12c] ss:$24 sps:$4 sm:$0xff]  }
  0x13   :  { %651 = vmatpush1.bf16.msra.mxu0 %v942_v3  ;;  %v958_v16 = vld [vmem:[#allocation2 + $0x4] ss:$24 sps:$4 sm:$0xff]   ;;  %691 = vmatprep.subr.bf16.mxu1 %v982_v13  ;;  %v992_v19 = vld [vmem:[#allocation2 + $0x128] ss:$24 sps:$4 sm:$0xff]   ;;  %v999_v22 = vld [vmem:[#allocation2 + $0xf8] ss:$24 sps:$4 sm:$0xff]  }
  0x14   :  { %652 = vmatprep.subr.bf16.mxu0 %v943_v4  ;;  %692 = vmatpush1.bf16.msra.mxu1 %v984_v14  ;;  %v1135_v18 = vld [vmem:[%s1169_s0 + $0x4] ss:$8 sps:$4 sm:$0xff]   ;;  %v960_v20 = vld [vmem:[#allocation2] ss:$24 sps:$4 sm:$0xff]   ;;  %v997_v21 = vld [vmem:[#allocation2 + $0xfc] ss:$24 sps:$4 sm:$0xff]  }
  0x15   :  { %693 = vmatprep.subr.bf16.mxu1 %v988_v17  ;;  %680 = vmatprep.mubr.bf16.mxu0 %v1135_v18  ;;  %v961_v23 = vld [vmem:[#allocation2 + $0x2d4] ss:$24 sps:$4 sm:$0xff]   ;;  %v963_v24 = vld [vmem:[#allocation2 + $0x2d0] ss:$24 sps:$4 sm:$0xff]   ;;  %v964_v26 = vld [vmem:[#allocation2 + $0x2a4] ss:$24 sps:$4 sm:$0xff]  }
  0x16   :  { %723 = vmatprep.mubr.bf16.mxu1 %v1135_v18  ;;  %v1003_v25 = vld [vmem:[#allocation2 + $0xcc] ss:$24 sps:$4 sm:$0xff]   ;;  %v1005_v27 = vld [vmem:[#allocation2 + $0xc8] ss:$24 sps:$4 sm:$0xff]   ;;  %v1009_v28 = vld [vmem:[#allocation2 + $0x9c] ss:$24 sps:$4 sm:$0xff]  }
  0x17   :  { %653 = vmatpush1.bf16.msra.mxu0 %v945_v5  ;;  %v966_v29 = vld [vmem:[#allocation2 + $0x2a0] ss:$24 sps:$4 sm:$0xff]   ;;  %v967_v30 = vld [vmem:[#allocation2 + $0x274] ss:$24 sps:$4 sm:$0xff]   ;;  %v969_v33 = vld [vmem:[#allocation2 + $0x270] ss:$24 sps:$4 sm:$0xff]  }
  0x18   :  { %654 = vmatprep.subr.bf16.mxu0 %v946_v6  ;;  %694 = vmatpush1.bf16.msra.mxu1 %v992_v19  ;;  %v1011_v31 = vld [vmem:[#allocation2 + $0x98] ss:$24 sps:$4 sm:$0xff]   ;;  %v1015_v32 = vld [vmem:[#allocation2 + $0x6c] ss:$24 sps:$4 sm:$0xff]   ;;  %v1017_v35 = vld [vmem:[#allocation2 + $0x68] ss:$24 sps:$4 sm:$0xff]  }
  0x19   :  { %695 = vmatprep.subr.bf16.mxu1 %v997_v21  ;;  %v970_v34 = vld [vmem:[#allocation2 + $0x244] ss:$24 sps:$4 sm:$0xff]   ;;  %v972_v37 = vld [vmem:[#allocation2 + $0x240] ss:$24 sps:$4 sm:$0xff]   ;;  %v973_v38 = vld [vmem:[#allocation2 + $0x214] ss:$24 sps:$4 sm:$0xff]  }
  0x1a   :  { %v1021_v36 = vld [vmem:[#allocation2 + $0x3c] ss:$24 sps:$4 sm:$0xff]   ;;  %v1023_v39 = vld [vmem:[#allocation2 + $0x38] ss:$24 sps:$4 sm:$0xff]   ;;  %v1027_v40 = vld [vmem:[#allocation2 + $0xc] ss:$24 sps:$4 sm:$0xff]  }
  0x1b   :  { %655 = vmatpush1.bf16.msra.mxu0 %v948_v7  ;;  %v975_v41 = vld [vmem:[#allocation2 + $0x210] ss:$24 sps:$4 sm:$0xff]   ;;  %v976_v42 = vld [vmem:[#allocation2 + $0x1e4] ss:$24 sps:$4 sm:$0xff]   ;;  %v978_v45 = vld [vmem:[#allocation2 + $0x1e0] ss:$24 sps:$4 sm:$0xff]  }
  0x1c   :  { %656 = vmatprep.subr.bf16.mxu0 %v949_v8  ;;  %696 = vmatpush1.bf16.msra.mxu1 %v999_v22  ;;  %v1029_v43 = vld [vmem:[#allocation2 + $0x8] ss:$24 sps:$4 sm:$0xff]   ;;  %v1033_v44 = vld [vmem:[#allocation2 + $0x2dc] ss:$24 sps:$4 sm:$0xff]   ;;  %v1035_v47 = vld [vmem:[#allocation2 + $0x2d8] ss:$24 sps:$4 sm:$0xff]  }
  0x1d   :  { %697 = vmatprep.subr.bf16.mxu1 %v1003_v25  ;;  %v979_v46 = vld [vmem:[#allocation2 + $0x1b4] ss:$24 sps:$4 sm:$0xff]   ;;  %v981_v49 = vld [vmem:[#allocation2 + $0x1b0] ss:$24 sps:$4 sm:$0xff]   ;;  %v985_v50 = vld [vmem:[#allocation2 + $0x184] ss:$24 sps:$4 sm:$0xff]  }
  0x1e   :  { %v1039_v48 = vld [vmem:[#allocation2 + $0x2ac] ss:$24 sps:$4 sm:$0xff]   ;;  %v1041_v51 = vld [vmem:[#allocation2 + $0x2a8] ss:$24 sps:$4 sm:$0xff]   ;;  %v1045_v52 = vld [vmem:[#allocation2 + $0x27c] ss:$24 sps:$4 sm:$0xff]  }
  0x1f   :  { %657 = vmatpush1.bf16.msra.mxu0 %v951_v9  ;;  %v987_v53 = vld [vmem:[#allocation2 + $0x180] ss:$24 sps:$4 sm:$0xff]   ;;  %v996_v54 = vld [vmem:[#allocation2 + $0x164] ss:$24 sps:$4 sm:$0xff]   ;;  %v1002_v59 = vld [vmem:[#allocation2 + $0x134] ss:$24 sps:$4 sm:$0xff]  }
  0x20   :  { %658 = vmatprep.subr.bf16.mxu0 %v952_v10  ;;  %698 = vmatpush1.bf16.msra.mxu1 %v1005_v27  ;;  %v1047_v55 = vld [vmem:[#allocation2 + $0x278] ss:$24 sps:$4 sm:$0xff]   ;;  %v1051_v56 = vld [vmem:[#allocation2 + $0x24c] ss:$24 sps:$4 sm:$0xff]   ;;  %v1142_v57 = vld [vmem:[%s1169_s0] ss:$8 sps:$4 sm:$0xff]  }
  0x21   :  { %699 = vmatprep.subr.bf16.mxu1 %v1009_v28  ;;  %v994_v58 = vld [vmem:[#allocation2 + $0x160] ss:$24 sps:$4 sm:$0xff]   ;;  %v1057_v61 = vld [vmem:[#allocation2 + $0x21c] ss:$24 sps:$4 sm:$0xff]   ;;  %v1000_v62 = vld [vmem:[#allocation2 + $0x130] ss:$24 sps:$4 sm:$0xff]  }
  0x22   :  { %v1053_v60 = vld [vmem:[#allocation2 + $0x248] ss:$24 sps:$4 sm:$0xff]   ;;  %v1059_v63 = vld [vmem:[#allocation2 + $0x218] ss:$24 sps:$4 sm:$0xff]   ;;  %v1008_v0 = vld [vmem:[#allocation2 + $0x104] ss:$24 sps:$4 sm:$0xff]  }
  0x23   :  { %659 = vmatpush1.bf16.msra.mxu0 %v954_v11  ;;  %v1063_v1 = vld [vmem:[#allocation2 + $0x1ec] ss:$24 sps:$4 sm:$0xff]   ;;  %v1006_v2 = vld [vmem:[#allocation2 + $0x100] ss:$24 sps:$4 sm:$0xff]   ;;  %v1069_v5 = vld [vmem:[#allocation2 + $0x1bc] ss:$24 sps:$4 sm:$0xff]  }
  0x24   :  { %660 = vmatprep.subr.bf16.mxu0 %v955_v12  ;;  %700 = vmatpush1.bf16.msra.mxu1 %v1011_v31  ;;  %v1065_v3 = vld [vmem:[#allocation2 + $0x1e8] ss:$24 sps:$4 sm:$0xff]   ;;  %v1014_v4 = vld [vmem:[#allocation2 + $0xd4] ss:$24 sps:$4 sm:$0xff]   ;;  %v1071_v7 = vld [vmem:[#allocation2 + $0x1b8] ss:$24 sps:$4 sm:$0xff]  }
  0x25   :  { %701 = vmatprep.subr.bf16.mxu1 %v1015_v32  ;;  %v1012_v6 = vld [vmem:[#allocation2 + $0xd0] ss:$24 sps:$4 sm:$0xff]   ;;  %v1020_v8 = vld [vmem:[#allocation2 + $0xa4] ss:$24 sps:$4 sm:$0xff]   ;;  %v1018_v10 = vld [vmem:[#allocation2 + $0xa0] ss:$24 sps:$4 sm:$0xff]  }
  0x26   :  { %v1075_v9 = vld [vmem:[#allocation2 + $0x18c] ss:$24 sps:$4 sm:$0xff]   ;;  %v1077_v11 = vld [vmem:[#allocation2 + $0x188] ss:$24 sps:$4 sm:$0xff]  }
  0x27   :  { %661 = vmatpush1.bf16.msra.mxu0 %v957_v15  ;;  %v1026_v12 = vld [vmem:[#allocation2 + $0x74] ss:$24 sps:$4 sm:$0xff]   ;;  %v1024_v13 = vld [vmem:[#allocation2 + $0x70] ss:$24 sps:$4 sm:$0xff]   ;;  %v1032_v14 = vld [vmem:[#allocation2 + $0x44] ss:$24 sps:$4 sm:$0xff]  }
  0x28   :  { %662 = vmatprep.subr.bf16.mxu0 %v958_v16  ;;  %702 = vmatpush1.bf16.msra.mxu1 %v1017_v35  ;;  %v1030_v15 = vld [vmem:[#allocation2 + $0x40] ss:$24 sps:$4 sm:$0xff]   ;;  %v1038_v16 = vld [vmem:[#allocation2 + $0x14] ss:$24 sps:$4 sm:$0xff]   ;;  %v1036_v17 = vld [vmem:[#allocation2 + $0x10] ss:$24 sps:$4 sm:$0xff]  }
  0x29   :  { %703 = vmatprep.subr.bf16.mxu1 %v1021_v36  ;;  %v1042_v19 = vld [vmem:[#allocation2 + $0x2e0] ss:$24 sps:$4 sm:$0xff]   ;;  %v1048_v21 = vld [vmem:[#allocation2 + $0x2b0] ss:$24 sps:$4 sm:$0xff]   ;;  %v1056_v22 = vld [vmem:[#allocation2 + $0x284] ss:$24 sps:$4 sm:$0xff]  }
  0x2a   :  { %v1060_v25 = vld [vmem:[#allocation2 + $0x250] ss:$24 sps:$4 sm:$0xff]   ;;  %v1066_v27 = vld [vmem:[#allocation2 + $0x220] ss:$24 sps:$4 sm:$0xff]   ;;  %v1074_v28 = vld [vmem:[#allocation2 + $0x1f4] ss:$24 sps:$4 sm:$0xff]  }
  0x2b   :  { %663 = vmatpush1.bf16.msra.mxu0 %v960_v20  ;;  %v1050_v20 = vld [vmem:[#allocation2 + $0x2b4] ss:$24 sps:$4 sm:$0xff]   ;;  %v1078_v31 = vld [vmem:[#allocation2 + $0x1c0] ss:$24 sps:$4 sm:$0xff]  }
  0x2c   :  { %664 = vmatprep.subr.bf16.mxu0 %v961_v23  ;;  %704 = vmatpush1.bf16.msra.mxu1 %v1023_v39  ;;  %v1054_v23 = vld [vmem:[#allocation2 + $0x280] ss:$24 sps:$4 sm:$0xff]   ;;  %v1083_v32 = vld [vmem:[#allocation2 + $0x194] ss:$24 sps:$4 sm:$0xff]  }
  0x2d   :  { %705 = vmatprep.subr.bf16.mxu1 %v1027_v40 }
  0x2f   :  { %665 = vmatpush2.bf16.msra.mxu0 %v963_v24  ;;  %v1062_v24 = vld [vmem:[#allocation2 + $0x254] ss:$24 sps:$4 sm:$0xff]  }
  0x30   :  { %666 = vmatprep.subr.bf16.mxu0 %v964_v26  ;;  %706 = vmatpush1.bf16.msra.mxu1 %v1029_v43  ;;  %v1068_v26 = vld [vmem:[#allocation2 + $0x224] ss:$24 sps:$4 sm:$0xff]  }
  0x31   :  { %707 = vmatprep.subr.bf16.mxu1 %v1033_v44 }
  0x33   :  { %667 = vmatpush2.bf16.msra.mxu0 %v966_v29  ;;  %v1072_v29 = vld [vmem:[#allocation2 + $0x1f0] ss:$24 sps:$4 sm:$0xff]  }
  0x34   :  { %668 = vmatprep.subr.bf16.mxu0 %v967_v30  ;;  %708 = vmatpush2.bf16.msra.mxu1 %v1035_v47  ;;  %v1080_v30 = vld [vmem:[#allocation2 + $0x1c4] ss:$24 sps:$4 sm:$0xff]  }
  0x35   :  { %709 = vmatprep.subr.bf16.mxu1 %v1039_v48 }
  0x37   :  { %669 = vmatpush2.bf16.msra.mxu0 %v969_v33  ;;  %v1081_v33 = vld [vmem:[#allocation2 + $0x190] ss:$24 sps:$4 sm:$0xff]  }
  0x38   :  { %670 = vmatprep.subr.bf16.mxu0 %v970_v34  ;;  %710 = vmatpush2.bf16.msra.mxu1 %v1041_v51  ;;  %v128_v34 = vlaneseq }
  0x39   :  { %711 = vmatprep.subr.bf16.mxu1 %v1045_v52 }
  0x3a   :  { %v129_v35 = vshrl.u32 %v128_v34, 7 }
  0x3b   :  { %671 = vmatpush2.bf16.msra.mxu0 %v972_v37  ;;  %v126_v37 = vld [vmem:[%s1171_s2] sm:$0x3f] }
  0x3c   :  { %672 = vmatprep.subr.bf16.mxu0 %v973_v38  ;;  %712 = vmatpush2.bf16.msra.mxu1 %v1047_v55  ;;  %v146_v36 = vsub.s32 4, %v129_v35  ;;  %v150_v39 = vsub.s32 5, %v129_v35  ;;  %v138_v55 = vsub.s32 2, %v129_v35 }
  0x3d   :  { %713 = vmatprep.subr.bf16.mxu1 %v1051_v56  ;;  %v142_v56 = vsub.s32 3, %v129_v35 }
  0x3e   :  { %v147_v38 = vrot.slane %v126_v37, %v146_v36  ;;  %v151_v40 = vrot.slane %v126_v37, %v150_v39 }
  0x3f   :  { %673 = vmatpush2.bf16.msra.mxu0 %v975_v41  ;;  %v130_v41 = vsub.s32 0, %v129_v35 }
  0x40   :  { %674 = vmatprep.subr.bf16.mxu0 %v976_v42  ;;  %714 = vmatpush2.bf16.msra.mxu1 %v1053_v60  ;;  %v134_v42 = vsub.s32 1, %v129_v35 }
  0x41   :  { %715 = vmatprep.subr.bf16.mxu1 %v1057_v61  ;;  %v131_v43 = vrot.slane %v126_v37, %v130_v41 }
  0x42   :  { %v135_v44 = vrot.slane %v126_v37, %v134_v42 }
  0x43   :  { %675 = vmatpush2.bf16.msra.mxu0 %v978_v45 }
  0x44   :  { %676 = vmatprep.subr.bf16.mxu0 %v979_v46  ;;  %716 = vmatpush2.bf16.msra.mxu1 %v1059_v63 }
  0x45   :  { %717 = vmatprep.subr.bf16.mxu1 %v1063_v1 }
  0x47   :  { %677 = vmatpush2.bf16.msra.mxu0 %v981_v49 }
  0x48   :  { %678 = vmatprep.subr.bf16.mxu0 %v985_v50  ;;  %718 = vmatpush2.bf16.msra.mxu1 %v1065_v3 }
  0x49   :  { %719 = vmatprep.subr.bf16.mxu1 %v1069_v5 }
  0x4b   :  { %679 = vmatpush2.bf16.msra.mxu0 %v987_v53 }
  0x4c   :  { %734 = vmatprep.subr.bf16.mxu0 %v996_v54  ;;  %720 = vmatpush2.bf16.msra.mxu1 %v1071_v7 }
  0x4d   :  { %721 = vmatprep.subr.bf16.mxu1 %v1075_v9 }
  0x4e   :  { %681 = vmatmul.mubr.bf16.vlgmr.msra.gmra.mxu0 %v1142_v57 }
  0x4f   :  { %735 = vmatpush1.bf16.msra.mxu0 %v994_v58  ;;  %766 = vmatprep.mubr.bf16.mxu0 %v1135_v18  ;;  %v1044_v18 = vld [vmem:[#allocation2 + $0x2e4] ss:$24 sps:$4 sm:$0xff]   ;;  %v143_v58 = vrot.slane %v126_v37, %v142_v56 }
  0x50   :  { %736 = vmatprep.subr.bf16.mxu0 %v1002_v59  ;;  %722 = vmatpush2.bf16.msra.mxu1 %v1077_v11 }
  0x53   :  { %737 = vmatpush1.bf16.msra.mxu0 %v1000_v62  ;;  %724 = vmatmul.mubr.bf16.vlgmr.msra.gmra.mxu1 %v1142_v57 }
  0x54   :  { %738 = vmatprep.subr.bf16.mxu0 %v1008_v0 }
  0x57   :  { %739 = vmatpush1.bf16.msra.mxu0 %v1006_v2 }
  0x58   :  { %740 = vmatprep.subr.bf16.mxu0 %v1014_v4 }
  0x5b   :  { %741 = vmatpush1.bf16.msra.mxu0 %v1012_v6 }
  0x5c   :  { %742 = vmatprep.subr.bf16.mxu0 %v1020_v8 }
  0x5f   :  { %743 = vmatpush1.bf16.msra.mxu0 %v1018_v10 }
  0x60   :  { %744 = vmatprep.subr.bf16.mxu0 %v1026_v12 }
  0x63   :  { %745 = vmatpush1.bf16.msra.mxu0 %v1024_v13 }
  0x64   :  { %746 = vmatprep.subr.bf16.mxu0 %v1032_v14 }
  0x67   :  { %747 = vmatpush1.bf16.msra.mxu0 %v1030_v15 }
  0x68   :  { %748 = vmatprep.subr.bf16.mxu0 %v1038_v16 }
  0x6b   :  { %749 = vmatpush1.bf16.msra.mxu0 %v1036_v17 }
  0x6c   :  { %750 = vmatprep.subr.bf16.mxu0 %v1044_v18 }
  0x6f   :  { %751 = vmatpush2.bf16.msra.mxu0 %v1042_v19 }
  0x70   :  { %752 = vmatprep.subr.bf16.mxu0 %v1050_v20 }
  0x73   :  { %753 = vmatpush2.bf16.msra.mxu0 %v1048_v21 }
  0x74   :  { %754 = vmatprep.subr.bf16.mxu0 %v1056_v22 }
  0x77   :  { %755 = vmatpush2.bf16.msra.mxu0 %v1054_v23 }
  0x78   :  { %756 = vmatprep.subr.bf16.mxu0 %v1062_v24 }
  0x7b   :  { %757 = vmatpush2.bf16.msra.mxu0 %v1060_v25 }
  0x7c   :  { %758 = vmatprep.subr.bf16.mxu0 %v1068_v26 }
  0x7f   :  { %759 = vmatpush2.bf16.msra.mxu0 %v1066_v27 }
  0x80   :  { %760 = vmatprep.subr.bf16.mxu0 %v1074_v28 }
  0x83   :  { %761 = vmatpush2.bf16.msra.mxu0 %v1072_v29 }
  0x84   :  { %762 = vmatprep.subr.bf16.mxu0 %v1080_v30 }
  0x87   :  { %763 = vmatpush2.bf16.msra.mxu0 %v1078_v31 }
  0x88   :  { %764 = vmatprep.subr.bf16.mxu0 %v1083_v32 }
  0x8b   :  { %765 = vmatpush2.bf16.msra.mxu0 %v1081_v33 }
  0x8e   :  { %767 = vmatmul.mubr.bf16.vlgmr.msra.gmra.mxu0 %v1142_v57  ;;  %v139_v57 = vrot.slane %v126_v37, %v138_v55 }
 0x10e   :  { %v682_v45 = vpop.f32.mrf.mxu0 }
 0x10f   :  { %v683_v46 = vadd.f32 %v682_v45, %v131_v43 }
 0x110   :  { %v684_v47 = vpop.f32.mrf.mxu0 }
 0x111   :  { %v685_v48 = vadd.f32 %v684_v47, %v135_v44 }
 0x112   :  { %v686_v49 = vpop.f32.mrf.mxu0 }
 0x113   :  { %v928_v50 = vpack.c.bf16 %v685_v48, %v683_v46  ;;  %v687_v52 = vadd.f32 %v686_v49, %v131_v43  ;;  %v725_v59 = vpop.f32.mrf.mxu1 }
 0x114   :  { %v688_v51 = vpop.f32.mrf.mxu0  ;;  %v726_v60 = vadd.f32 %v725_v59, %v139_v57 }
 0x115   :  { %813 = vst [vmem:[%s1172_s3] sm:$0xff] %v928_v50  ;;  %v689_v53 = vadd.f32 %v688_v51, %v135_v44  ;;  %v727_v61 = vpop.f32.mrf.mxu1 }
 0x116   :  { %v728_v62 = vadd.f32 %v727_v61, %v143_v58 }
 0x117   :  { %v931_v54 = vpack.c.bf16 %v689_v53, %v687_v52  ;;  %v729_v63 = vpop.f32.mrf.mxu1 }
 0x118   :  { %v929_v0 = vpack.c.bf16 %v728_v62, %v726_v60  ;;  %v730_v1 = vadd.f32 %v729_v63, %v139_v57 }
 0x119   :  { %816 = vst [vmem:[%s1172_s3 + $0x18] sm:$0xff] %v931_v54  ;;  %v731_v2 = vpop.f32.mrf.mxu1 }
 0x11a   :  { %814 = vst [vmem:[%s1172_s3 + $0x8] sm:$0xff] %v929_v0  ;;  %v732_v3 = vadd.f32 %v731_v2, %v143_v58 }
 0x11c   :  { %v932_v4 = vpack.c.bf16 %v732_v3, %v730_v1 }
 0x11e   :  { %817 = vst [vmem:[%s1172_s3 + $0x20] sm:$0xff] %v932_v4 }
 0x14e   :  { %v768_v5 = vpop.f32.mrf.mxu0 }
 0x14f   :  { %v769_v7 = vadd.f32 %v768_v5, %v147_v38 }
 0x150   :  { %v770_v6 = vpop.f32.mrf.mxu0 }
 0x151   :  { %v771_v8 = vadd.f32 %v770_v6, %v151_v40 }
 0x152   :  { %v772_v9 = vpop.f32.mrf.mxu0 }
 0x153   :  { %v930_v10 = vpack.c.bf16 %v771_v8, %v769_v7  ;;  %v773_v12 = vadd.f32 %v772_v9, %v147_v38 }
 0x154   :  { %v774_v11 = vpop.f32.mrf.mxu0 }
 0x155   :  { %815 = vst [vmem:[%s1172_s3 + $0x10] sm:$0xff] %v930_v10  ;;  %v775_v13 = vadd.f32 %v774_v11, %v151_v40 }
 0x157   :  { %v933_v14 = vpack.c.bf16 %v775_v13, %v773_v12 }
 0x159   :  { %818 = vst [vmem:[%s1172_s3 + $0x28] sm:$0xff] %v933_v14 }
 0x15a   :  { %823 = vsyncpa [#allocation3], 1 }

// kernel: transformer_model_forward.37
= control target key start
LH: loop header
LB: loop body
LE: loop exit
PB: predicated region body
PF: predicated region fallthrough
CT: control target
= control target key end

     0   :  { %v69_v36 = vlaneseq  ;;  %s173_s0 = inlined_call_operand.vmem [shape: bf16[16,256], index: 0, kind: input, shape index: {}]   ;;  %s174_s1 = inlined_call_operand.vmem [shape: bf16[16,256], index: 1, kind: input, shape index: {}]   ;;  %s175_s2 = inlined_call_operand.vmem [shape: f32[1,256], index: 2, kind: input, shape index: {}]   ;;  %s176_s3 = inlined_call_operand.vmem [shape: f32[1,256], index: 3, kind: input, shape index: {}]   ;;  %s177_s4 = inlined_call_operand.vmem [shape: bf16[16,256], index: 4, kind: output, shape index: {}]  }
   0x1   :  { %v17_v0 = vld [vmem:[%s173_s0] sm:$0xff]  ;;  %v18_v2 = vld [vmem:[%s173_s0 + $0x8] sm:$0xff] }
   0x2   :  { %v23_v1 = vld [vmem:[%s174_s1] sm:$0xff]  ;;  %v19_v3 = vunpack.c.l.bf16 %v17_v0  ;;  %v20_v4 = vunpack.c.h.bf16 %v17_v0  ;;  %v24_v7 = vld [vmem:[%s174_s1 + $0x8] sm:$0xff]  ;;  %v21_v8 = vunpack.c.l.bf16 %v18_v2  ;;  %v22_v9 = vunpack.c.h.bf16 %v18_v2 }
   0x3   :  { %v25_v5 = vunpack.c.l.bf16 %v23_v1  ;;  %v26_v6 = vunpack.c.h.bf16 %v23_v1  ;;  %v27_v10 = vunpack.c.l.bf16 %v24_v7  ;;  %v28_v11 = vunpack.c.h.bf16 %v24_v7  ;;  %v33_v42 = vld [vmem:[%s175_s2] sm:$0x3] }
   0x4   :  { %v70_v39 = vshrl.u32 %v69_v36, 7  ;;  %v34_v43 = vld [vmem:[%s176_s3] sm:$0x3] }
   0x5   :  { %v29_v12 = vadd.f32 %v25_v5, %v19_v3  ;;  %v30_v13 = vadd.f32 %v26_v6, %v20_v4  ;;  %v31_v14 = vadd.f32 %v27_v10, %v21_v8  ;;  %v32_v15 = vadd.f32 %v28_v11, %v22_v9 }
   0x6   :  { %v71_v40 = vsub.s32 0, %v70_v39  ;;  %v75_v41 = vsub.s32 1, %v70_v39 }
   0x7   :  { %v35_v16 = vadd.f32 %v30_v13, %v29_v12  ;;  %v38_v17 = vadd.f32 %v32_v15, %v31_v14 }
   0x8   :  { %v72_v44 = vrot.slane %v33_v42, %v71_v40  ;;  %v76_v45 = vrot.slane %v33_v42, %v75_v41  ;;  %v87_v47 = vrot.slane %v34_v43, %v71_v40  ;;  %v91_v48 = vrot.slane %v34_v43, %v75_v41 }
   0x9   :  { %36 = vadd.xlane.f32.xlu0 %v35_v16 }
   0xd   :  { %39 = vadd.xlane.f32.xlu0 %v38_v17 }
  0x92   :  { %v37_v18 = vpop.xlane.xlu0 %36 }
  0x93   :  { %v42_v19 = vmul.f32 0.00390625, %v37_v18 }
  0x95   :  { %v44_v20 = vsub.f32 %v29_v12, %v42_v19  ;;  %v45_v21 = vsub.f32 %v30_v13, %v42_v19 }
  0x96   :  { %v40_v22 = vpop.xlane.xlu0 %39 }
  0x97   :  { %v43_v23 = vmul.f32 0.00390625, %v40_v22  ;;  %v48_v24 = vmul.f32 %v44_v20, %v44_v20  ;;  %v49_v25 = vmul.f32 %v45_v21, %v45_v21 }
  0x99   :  { %v46_v26 = vsub.f32 %v31_v14, %v43_v23  ;;  %v47_v27 = vsub.f32 %v32_v15, %v43_v23  ;;  %v52_v28 = vadd.f32 %v49_v25, %v48_v24 }
  0x9b   :  { %53 = vadd.xlane.f32.xlu1 %v52_v28  ;;  %v50_v29 = vmul.f32 %v46_v26, %v46_v26  ;;  %v51_v30 = vmul.f32 %v47_v27, %v47_v27 }
  0x9d   :  { %v55_v31 = vadd.f32 %v51_v30, %v50_v29 }
  0x9f   :  { %56 = vadd.xlane.f32.xlu1 %v55_v31 }
 0x124   :  { %v54_v32 = vpop.xlane.xlu1 %53 }
 0x125   :  { %v58_v33 = vmul.f32 0.00390625, %v54_v32 }
 0x127   :  { %v60_v34 = vadd.f32 1e-05, %v58_v33 }
 0x128   :  { %v57_v35 = vpop.xlane.xlu1 %56 }
 0x129   :  { %120 = vrsqrt.f32 %v60_v34  ;;  %v59_v37 = vmul.f32 0.00390625, %v57_v35 }
 0x12b   :  { %v61_v38 = vadd.f32 1e-05, %v59_v37 }
 0x12d   :  { %122 = vrsqrt.f32 %v61_v38 }
 0x136   :  { %v121_v46 = vpop.eup %120 }
 0x137   :  { %v64_v49 = vmul.f32 %v121_v46, %v44_v20  ;;  %v65_v50 = vmul.f32 %v121_v46, %v45_v21 }
 0x139   :  { %v79_v51 = vmul.f32 %v72_v44, %v64_v49  ;;  %v80_v52 = vmul.f32 %v76_v45, %v65_v50 }
 0x13a   :  { %v123_v53 = vpop.eup %122 }
 0x13b   :  { %v94_v54 = vadd.f32 %v87_v47, %v79_v51  ;;  %v95_v55 = vadd.f32 %v91_v48, %v80_v52  ;;  %v66_v56 = vmul.f32 %v123_v53, %v46_v26  ;;  %v67_v57 = vmul.f32 %v123_v53, %v47_v27 }
 0x13d   :  { %v118_v58 = vpack.c.bf16 %v95_v55, %v94_v54  ;;  %v81_v59 = vmul.f32 %v72_v44, %v66_v56  ;;  %v82_v60 = vmul.f32 %v76_v45, %v67_v57 }
 0x13f   :  { %110 = vst [vmem:[%s177_s4] sm:$0xff] %v118_v58  ;;  %v96_v61 = vadd.f32 %v87_v47, %v81_v59  ;;  %v97_v62 = vadd.f32 %v91_v48, %v82_v60 }
 0x141   :  { %v119_v63 = vpack.c.bf16 %v97_v62, %v96_v61 }
 0x143   :  { %111 = vst [vmem:[%s177_s4 + $0x8] sm:$0xff] %v119_v63 }

// kernel: transformer_model_forward.38
= control target key start
LH: loop header
LB: loop body
LE: loop exit
PB: predicated region body
PF: predicated region fallthrough
CT: control target
= control target key end

     0   :  { %v56_v26 = vlaneseq  ;;  %s149_s0 = inlined_call_operand.vmem [shape: bf16[16,256], index: 0, kind: input, shape index: {}]   ;;  %s150_s1 = inlined_call_operand.vmem [shape: f32[1,256], index: 1, kind: input, shape index: {}]   ;;  %s151_s2 = inlined_call_operand.vmem [shape: f32[1,256], index: 2, kind: input, shape index: {}]   ;;  %s152_s3 = inlined_call_operand.vmem [shape: bf16[16,256], index: 3, kind: output, shape index: {}]  }
   0x1   :  { %v14_v0 = vld [vmem:[%s149_s0] sm:$0xff]  ;;  %v15_v1 = vld [vmem:[%s149_s0 + $0x8] sm:$0xff] }
   0x2   :  { %v16_v2 = vunpack.c.l.bf16 %v14_v0  ;;  %v17_v3 = vunpack.c.h.bf16 %v14_v0  ;;  %v18_v4 = vunpack.c.l.bf16 %v15_v1  ;;  %v19_v5 = vunpack.c.h.bf16 %v15_v1  ;;  %v20_v32 = vld [vmem:[%s150_s1] sm:$0x3] }
   0x3   :  { %v57_v29 = vshrl.u32 %v56_v26, 7  ;;  %v21_v33 = vld [vmem:[%s151_s2] sm:$0x3] }
   0x4   :  { %v22_v6 = vadd.f32 %v17_v3, %v16_v2  ;;  %v25_v7 = vadd.f32 %v19_v5, %v18_v4 }
   0x5   :  { %v58_v30 = vsub.s32 0, %v57_v29  ;;  %v62_v31 = vsub.s32 1, %v57_v29 }
   0x6   :  { %23 = vadd.xlane.f32.xlu0 %v22_v6 }
   0x7   :  { %v59_v34 = vrot.slane %v20_v32, %v58_v30  ;;  %v63_v35 = vrot.slane %v20_v32, %v62_v31  ;;  %v74_v37 = vrot.slane %v21_v33, %v58_v30  ;;  %v78_v38 = vrot.slane %v21_v33, %v62_v31 }
   0xa   :  { %26 = vadd.xlane.f32.xlu0 %v25_v7 }
  0x8f   :  { %v24_v8 = vpop.xlane.xlu0 %23 }
  0x90   :  { %v29_v9 = vmul.f32 0.00390625, %v24_v8 }
  0x92   :  { %v31_v10 = vsub.f32 %v16_v2, %v29_v9  ;;  %v32_v11 = vsub.f32 %v17_v3, %v29_v9 }
  0x93   :  { %v27_v12 = vpop.xlane.xlu0 %26 }
  0x94   :  { %v30_v13 = vmul.f32 0.00390625, %v27_v12  ;;  %v35_v14 = vmul.f32 %v31_v10, %v31_v10  ;;  %v36_v15 = vmul.f32 %v32_v11, %v32_v11 }
  0x96   :  { %v33_v16 = vsub.f32 %v18_v4, %v30_v13  ;;  %v34_v17 = vsub.f32 %v19_v5, %v30_v13  ;;  %v39_v18 = vadd.f32 %v36_v15, %v35_v14 }
  0x98   :  { %40 = vadd.xlane.f32.xlu1 %v39_v18  ;;  %v37_v19 = vmul.f32 %v33_v16, %v33_v16  ;;  %v38_v20 = vmul.f32 %v34_v17, %v34_v17 }
  0x9a   :  { %v42_v21 = vadd.f32 %v38_v20, %v37_v19 }
  0x9c   :  { %43 = vadd.xlane.f32.xlu1 %v42_v21 }
 0x121   :  { %v41_v22 = vpop.xlane.xlu1 %40 }
 0x122   :  { %v45_v23 = vmul.f32 0.00390625, %v41_v22 }
 0x124   :  { %v47_v24 = vadd.f32 1e-05, %v45_v23 }
 0x125   :  { %v44_v25 = vpop.xlane.xlu1 %43 }
 0x126   :  { %107 = vrsqrt.f32 %v47_v24  ;;  %v46_v27 = vmul.f32 0.00390625, %v44_v25 }
 0x128   :  { %v48_v28 = vadd.f32 1e-05, %v46_v27 }
 0x12a   :  { %109 = vrsqrt.f32 %v48_v28 }
 0x133   :  { %v108_v36 = vpop.eup %107 }
 0x134   :  { %v51_v39 = vmul.f32 %v108_v36, %v31_v10  ;;  %v52_v40 = vmul.f32 %v108_v36, %v32_v11 }
 0x136   :  { %v66_v41 = vmul.f32 %v59_v34, %v51_v39  ;;  %v67_v42 = vmul.f32 %v63_v35, %v52_v40 }
 0x137   :  { %v110_v43 = vpop.eup %109 }
 0x138   :  { %v81_v44 = vadd.f32 %v74_v37, %v66_v41  ;;  %v82_v45 = vadd.f32 %v78_v38, %v67_v42  ;;  %v53_v46 = vmul.f32 %v110_v43, %v33_v16  ;;  %v54_v47 = vmul.f32 %v110_v43, %v34_v17 }
 0x13a   :  { %v105_v48 = vpack.c.bf16 %v82_v45, %v81_v44  ;;  %v68_v49 = vmul.f32 %v59_v34, %v53_v46  ;;  %v69_v50 = vmul.f32 %v63_v35, %v54_v47 }
 0x13c   :  { %97 = vst [vmem:[%s152_s3] sm:$0xff] %v105_v48  ;;  %v83_v51 = vadd.f32 %v74_v37, %v68_v49  ;;  %v84_v52 = vadd.f32 %v78_v38, %v69_v50 }
 0x13e   :  { %v106_v53 = vpack.c.bf16 %v84_v52, %v83_v51 }
 0x140   :  { %98 = vst [vmem:[%s152_s3 + $0x8] sm:$0xff] %v106_v53 }

// kernel: transformer_model_forward.33
= control target key start
LH: loop header
LB: loop body
LE: loop exit
PB: predicated region body
PF: predicated region fallthrough
CT: control target
= control target key end

     0   :  { %s1599_s0 = inlined_call_operand.vmem [shape: bf16[16,256], index: 0, kind: input, shape index: {}]   ;;  %s1600_s1 = inlined_call_operand.vmem [shape: bf16[16,256], index: 1, kind: input, shape index: {}]   ;;  %s1601_s4 = inlined_call_operand.vmem [shape: bf16[256,768], index: 4, kind: input, shape index: {}]   ;;  %s1602_s2 = inlined_call_operand.vmem [shape: f32[1,256], index: 2, kind: input, shape index: {}]   ;;  %s1603_s3 = inlined_call_operand.vmem [shape: f32[1,256], index: 3, kind: input, shape index: {}]   ;;  %s1604_s6 = inlined_call_operand.vmem [shape: bf16[16,256], index: 6, kind: output, shape index: {0}]   ;;  %s1605_s5 = inlined_call_operand.vmem [shape: f32[1,768], index: 5, kind: input, shape index: {}]   ;;  %s1606_s7 = inlined_call_operand.vmem [shape: bf16[16,768], index: 7, kind: output, shape index: {1}]  }
   0x1   :  { %v25_v0 = vld [vmem:[%s1599_s0] sm:$0xff]  ;;  %v26_v2 = vld [vmem:[%s1599_s0 + $0x8] sm:$0xff]  ;;  %v1022_v20 = vld [vmem:[%s1601_s4 + $0x15c] ss:$24 sps:$4 sm:$0xff]  }
   0x2   :  { %v31_v1 = vld [vmem:[%s1600_s1] sm:$0xff]  ;;  %v27_v3 = vunpack.c.l.bf16 %v25_v0  ;;  %v28_v4 = vunpack.c.h.bf16 %v25_v0  ;;  %v32_v7 = vld [vmem:[%s1600_s1 + $0x8] sm:$0xff]  ;;  %v29_v8 = vunpack.c.l.bf16 %v26_v2  ;;  %v30_v9 = vunpack.c.h.bf16 %v26_v2  ;;  %v1024_v21 = vld [vmem:[%s1601_s4 + $0x158] ss:$24 sps:$4 sm:$0xff]   ;;  %771 = vmatprep.subr.bf16.mxu1 %v1022_v20 }
   0x3   :  { %v33_v5 = vunpack.c.l.bf16 %v31_v1  ;;  %v34_v6 = vunpack.c.h.bf16 %v31_v1  ;;  %v35_v10 = vunpack.c.l.bf16 %v32_v7  ;;  %v36_v11 = vunpack.c.h.bf16 %v32_v7  ;;  %v1019_v18 = vld [vmem:[%s1601_s4 + $0x154] ss:$24 sps:$4 sm:$0xff]   ;;  %v1021_v19 = vld [vmem:[%s1601_s4 + $0x150] ss:$24 sps:$4 sm:$0xff]   ;;  %v1025_v22 = vld [vmem:[%s1601_s4 + $0x124] ss:$24 sps:$4 sm:$0xff]   ;;  %772 = vmatpush1.bf16.msra.mxu1 %v1024_v21 }
   0x4   :  { %728 = vmatprep.subr.bf16.mxu0 %v1019_v18  ;;  %v1027_v23 = vld [vmem:[%s1601_s4 + $0x120] ss:$24 sps:$4 sm:$0xff]   ;;  %v1028_v24 = vld [vmem:[%s1601_s4 + $0x12c] ss:$24 sps:$4 sm:$0xff]   ;;  %v1033_v27 = vld [vmem:[%s1601_s4 + $0xf0] ss:$24 sps:$4 sm:$0xff]  }
   0x5   :  { %v1219_v12 = vadd.f32 %v33_v5, %v27_v3  ;;  %v1221_v13 = vadd.f32 %v34_v6, %v28_v4  ;;  %v1223_v14 = vadd.f32 %v35_v10, %v29_v8  ;;  %v1225_v15 = vadd.f32 %v36_v11, %v30_v9  ;;  %729 = vmatpush1.bf16.msra.mxu0 %v1021_v19  ;;  %v1030_v25 = vld [vmem:[%s1601_s4 + $0x128] ss:$24 sps:$4 sm:$0xff]   ;;  %v1031_v26 = vld [vmem:[%s1601_s4 + $0xf4] ss:$24 sps:$4 sm:$0xff]   ;;  %v1037_v29 = vld [vmem:[%s1601_s4 + $0xc4] ss:$24 sps:$4 sm:$0xff]  }
   0x6   :  { %730 = vmatprep.subr.bf16.mxu0 %v1025_v22  ;;  %773 = vmatprep.subr.bf16.mxu1 %v1028_v24  ;;  %v1034_v28 = vld [vmem:[%s1601_s4 + $0xfc] ss:$24 sps:$4 sm:$0xff]   ;;  %v1036_v30 = vld [vmem:[%s1601_s4 + $0xf8] ss:$24 sps:$4 sm:$0xff]   ;;  %v1040_v31 = vld [vmem:[%s1601_s4 + $0xcc] ss:$24 sps:$4 sm:$0xff]  }
   0x7   :  { %v43_v16 = vadd.f32 %v1221_v13, %v1219_v12  ;;  %v46_v17 = vadd.f32 %v1225_v15, %v1223_v14  ;;  %774 = vmatpush1.bf16.msra.mxu1 %v1030_v25  ;;  %v1039_v32 = vld [vmem:[%s1601_s4 + $0xc0] ss:$24 sps:$4 sm:$0xff]   ;;  %v1043_v33 = vld [vmem:[%s1601_s4 + $0x94] ss:$24 sps:$4 sm:$0xff]   ;;  %v1045_v36 = vld [vmem:[%s1601_s4 + $0x90] ss:$24 sps:$4 sm:$0xff]  }
   0x8   :  { %775 = vmatprep.subr.bf16.mxu1 %v1034_v28  ;;  %v1042_v34 = vld [vmem:[%s1601_s4 + $0xc8] ss:$24 sps:$4 sm:$0xff]   ;;  %v1046_v35 = vld [vmem:[%s1601_s4 + $0x9c] ss:$24 sps:$4 sm:$0xff]   ;;  %v1048_v38 = vld [vmem:[%s1601_s4 + $0x98] ss:$24 sps:$4 sm:$0xff]  }
   0x9   :  { %44 = vadd.xlane.f32.xlu0 %v43_v16  ;;  %731 = vmatpush1.bf16.msra.mxu0 %v1027_v23  ;;  %v1049_v37 = vld [vmem:[%s1601_s4 + $0x64] ss:$24 sps:$4 sm:$0xff]   ;;  %v1051_v40 = vld [vmem:[%s1601_s4 + $0x60] ss:$24 sps:$4 sm:$0xff]   ;;  %v1055_v41 = vld [vmem:[%s1601_s4 + $0x34] ss:$24 sps:$4 sm:$0xff]  }
   0xa   :  { %732 = vmatprep.subr.bf16.mxu0 %v1031_v26  ;;  %v1052_v39 = vld [vmem:[%s1601_s4 + $0x6c] ss:$24 sps:$4 sm:$0xff]   ;;  %v1054_v42 = vld [vmem:[%s1601_s4 + $0x68] ss:$24 sps:$4 sm:$0xff]   ;;  %v1058_v44 = vld [vmem:[%s1601_s4 + $0x3c] ss:$24 sps:$4 sm:$0xff]  }
   0xb   :  { %776 = vmatpush1.bf16.msra.mxu1 %v1036_v30  ;;  %v1057_v43 = vld [vmem:[%s1601_s4 + $0x30] ss:$24 sps:$4 sm:$0xff]   ;;  %v1061_v46 = vld [vmem:[%s1601_s4 + $0x4] ss:$24 sps:$4 sm:$0xff]   ;;  %v1063_v48 = vld [vmem:[%s1601_s4] ss:$24 sps:$4 sm:$0xff]  }
   0xc   :  { %777 = vmatprep.subr.bf16.mxu1 %v1040_v31  ;;  %v1060_v45 = vld [vmem:[%s1601_s4 + $0x38] ss:$24 sps:$4 sm:$0xff]   ;;  %v1064_v47 = vld [vmem:[%s1601_s4 + $0xc] ss:$24 sps:$4 sm:$0xff]   ;;  %v1066_v50 = vld [vmem:[%s1601_s4 + $0x8] ss:$24 sps:$4 sm:$0xff]  }
   0xd   :  { %47 = vadd.xlane.f32.xlu0 %v46_v17  ;;  %733 = vmatpush1.bf16.msra.mxu0 %v1033_v27  ;;  %v1067_v49 = vld [vmem:[%s1601_s4 + $0x2d4] ss:$24 sps:$4 sm:$0xff]   ;;  %v1069_v52 = vld [vmem:[%s1601_s4 + $0x2d0] ss:$24 sps:$4 sm:$0xff]   ;;  %v1073_v4 = vld [vmem:[%s1601_s4 + $0x2a4] ss:$24 sps:$4 sm:$0xff]  }
   0xe   :  { %734 = vmatprep.subr.bf16.mxu0 %v1037_v29  ;;  %v1070_v51 = vld [vmem:[%s1601_s4 + $0x2dc] ss:$24 sps:$4 sm:$0xff]   ;;  %v1072_v3 = vld [vmem:[%s1601_s4 + $0x2d8] ss:$24 sps:$4 sm:$0xff]   ;;  %v1076_v6 = vld [vmem:[%s1601_s4 + $0x2ac] ss:$24 sps:$4 sm:$0xff]  }
   0xf   :  { %778 = vmatpush1.bf16.msra.mxu1 %v1042_v34  ;;  %v1075_v5 = vld [vmem:[%s1601_s4 + $0x2a0] ss:$24 sps:$4 sm:$0xff]   ;;  %v1079_v8 = vld [vmem:[%s1601_s4 + $0x274] ss:$24 sps:$4 sm:$0xff]   ;;  %v1081_v9 = vld [vmem:[%s1601_s4 + $0x270] ss:$24 sps:$4 sm:$0xff]  }
  0x10   :  { %779 = vmatprep.subr.bf16.mxu1 %v1046_v35  ;;  %v1078_v7 = vld [vmem:[%s1601_s4 + $0x2a8] ss:$24 sps:$4 sm:$0xff]   ;;  %v1082_v10 = vld [vmem:[%s1601_s4 + $0x27c] ss:$24 sps:$4 sm:$0xff]   ;;  %v1084_v11 = vld [vmem:[%s1601_s4 + $0x278] ss:$24 sps:$4 sm:$0xff]  }
  0x11   :  { %735 = vmatpush1.bf16.msra.mxu0 %v1039_v32  ;;  %v1091_v16 = vld [vmem:[%s1601_s4 + $0x214] ss:$24 sps:$4 sm:$0xff]   ;;  %v1093_v18 = vld [vmem:[%s1601_s4 + $0x210] ss:$24 sps:$4 sm:$0xff]   ;;  %v1097_v20 = vld [vmem:[%s1601_s4 + $0x1e4] ss:$24 sps:$4 sm:$0xff]  }
  0x12   :  { %736 = vmatprep.subr.bf16.mxu0 %v1043_v33  ;;  %v1094_v17 = vld [vmem:[%s1601_s4 + $0x21c] ss:$24 sps:$4 sm:$0xff]   ;;  %v1096_v19 = vld [vmem:[%s1601_s4 + $0x218] ss:$24 sps:$4 sm:$0xff]   ;;  %v1100_v21 = vld [vmem:[%s1601_s4 + $0x1ec] ss:$24 sps:$4 sm:$0xff]  }
  0x13   :  { %780 = vmatpush1.bf16.msra.mxu1 %v1048_v38  ;;  %v1099_v22 = vld [vmem:[%s1601_s4 + $0x1e0] ss:$24 sps:$4 sm:$0xff]   ;;  %v1103_v24 = vld [vmem:[%s1601_s4 + $0x1b4] ss:$24 sps:$4 sm:$0xff]   ;;  %v1105_v26 = vld [vmem:[%s1601_s4 + $0x1b0] ss:$24 sps:$4 sm:$0xff]   ;;  %v77_v38 = vlaneseq }
  0x14   :  { %781 = vmatprep.subr.bf16.mxu1 %v1052_v39  ;;  %v1102_v23 = vld [vmem:[%s1601_s4 + $0x1e8] ss:$24 sps:$4 sm:$0xff]   ;;  %v1106_v25 = vld [vmem:[%s1601_s4 + $0x1bc] ss:$24 sps:$4 sm:$0xff]   ;;  %v1108_v27 = vld [vmem:[%s1601_s4 + $0x1b8] ss:$24 sps:$4 sm:$0xff]  }
  0x15   :  { %737 = vmatpush1.bf16.msra.mxu0 %v1045_v36  ;;  %v1109_v28 = vld [vmem:[%s1601_s4 + $0x184] ss:$24 sps:$4 sm:$0xff]   ;;  %v1111_v30 = vld [vmem:[%s1601_s4 + $0x180] ss:$24 sps:$4 sm:$0xff]  }
  0x16   :  { %738 = vmatprep.subr.bf16.mxu0 %v1049_v37  ;;  %v1112_v29 = vld [vmem:[%s1601_s4 + $0x18c] ss:$24 sps:$4 sm:$0xff]   ;;  %v1114_v31 = vld [vmem:[%s1601_s4 + $0x188] ss:$24 sps:$4 sm:$0xff]  }
  0x17   :  { %782 = vmatpush1.bf16.msra.mxu1 %v1054_v42  ;;  %v1117_v32 = vld [vmem:[%s1601_s4 + $0x164] ss:$24 sps:$4 sm:$0xff]  }
  0x18   :  { %783 = vmatprep.subr.bf16.mxu1 %v1058_v44  ;;  %v42_v44 = vld [vmem:[%s1603_s3] sm:$0x3] }
  0x19   :  { %739 = vmatpush1.bf16.msra.mxu0 %v1051_v40  ;;  %v1446_v40 = vshrl.u32 %v77_v38, 7 }
  0x1a   :  { %740 = vmatprep.subr.bf16.mxu0 %v1055_v41 }
  0x1b   :  { %784 = vmatpush1.bf16.msra.mxu1 %v1060_v45  ;;  %v1449_v41 = vsub.s32 1, %v1446_v40  ;;  %v1452_v42 = vsub.s32 0, %v1446_v40 }
  0x1c   :  { %785 = vmatprep.subr.bf16.mxu1 %v1064_v47 }
  0x1d   :  { %741 = vmatpush1.bf16.msra.mxu0 %v1057_v43  ;;  %v41_v43 = vld [vmem:[%s1602_s2] sm:$0x3] }
  0x1e   :  { %742 = vmatprep.subr.bf16.mxu0 %v1061_v46  ;;  %v84_v45 = vrot.slane %v41_v43, %v1449_v41  ;;  %v80_v46 = vrot.slane %v41_v43, %v1452_v42 }
  0x1f   :  { %786 = vmatpush1.bf16.msra.mxu1 %v1066_v50 }
  0x20   :  { %787 = vmatprep.subr.bf16.mxu1 %v1070_v51  ;;  %v95_v51 = vrot.slane %v42_v44, %v1452_v42 }
  0x21   :  { %743 = vmatpush1.bf16.msra.mxu0 %v1063_v48 }
  0x22   :  { %744 = vmatprep.subr.bf16.mxu0 %v1067_v49  ;;  %v99_v49 = vrot.slane %v42_v44, %v1449_v41 }
  0x23   :  { %788 = vmatpush2.bf16.msra.mxu1 %v1072_v3  ;;  %v1115_v3 = vld [vmem:[%s1601_s4 + $0x160] ss:$24 sps:$4 sm:$0xff]  }
  0x24   :  { %789 = vmatprep.subr.bf16.mxu1 %v1076_v6  ;;  %v1123_v6 = vld [vmem:[%s1601_s4 + $0x104] ss:$24 sps:$4 sm:$0xff]  }
  0x25   :  { %745 = vmatpush2.bf16.msra.mxu0 %v1069_v52 }
  0x26   :  { %746 = vmatprep.subr.bf16.mxu0 %v1073_v4 }
  0x27   :  { %790 = vmatpush2.bf16.msra.mxu1 %v1078_v7  ;;  %v1121_v7 = vld [vmem:[%s1601_s4 + $0x100] ss:$24 sps:$4 sm:$0xff]  }
  0x28   :  { %791 = vmatprep.subr.bf16.mxu1 %v1082_v10  ;;  %v1129_v10 = vld [vmem:[%s1601_s4 + $0xa4] ss:$24 sps:$4 sm:$0xff]  }
  0x29   :  { %747 = vmatpush2.bf16.msra.mxu0 %v1075_v5  ;;  %v1118_v5 = vld [vmem:[%s1601_s4 + $0x130] ss:$24 sps:$4 sm:$0xff]  }
  0x2a   :  { %748 = vmatprep.subr.bf16.mxu0 %v1079_v8  ;;  %v1126_v8 = vld [vmem:[%s1601_s4 + $0xd4] ss:$24 sps:$4 sm:$0xff]  }
  0x2b   :  { %792 = vmatpush2.bf16.msra.mxu1 %v1084_v11  ;;  %v1127_v11 = vld [vmem:[%s1601_s4 + $0xa0] ss:$24 sps:$4 sm:$0xff]  }
  0x2d   :  { %749 = vmatpush2.bf16.msra.mxu0 %v1081_v9  ;;  %v1124_v9 = vld [vmem:[%s1601_s4 + $0xd0] ss:$24 sps:$4 sm:$0xff]  }
  0x92   :  { %v45_v53 = vpop.xlane.xlu0 %44 }
  0x93   :  { %v50_v54 = vmul.f32 0.00390625, %v45_v53 }
  0x95   :  { %v1337_v55 = vsub.f32 %v1219_v12, %v50_v54  ;;  %v1340_v56 = vsub.f32 %v1221_v13, %v50_v54  ;;  %v1085_v12 = vld [vmem:[%s1601_s4 + $0x244] ss:$24 sps:$4 sm:$0xff]   ;;  %v1087_v13 = vld [vmem:[%s1601_s4 + $0x240] ss:$24 sps:$4 sm:$0xff]  }
  0x96   :  { %v48_v57 = vpop.xlane.xlu0 %47  ;;  %750 = vmatprep.subr.bf16.mxu0 %v1085_v12  ;;  %v1132_v12 = vld [vmem:[%s1601_s4 + $0x74] ss:$24 sps:$4 sm:$0xff]  }
  0x97   :  { %v51_v58 = vmul.f32 0.00390625, %v48_v57  ;;  %v56_v59 = vmul.f32 %v1337_v55, %v1337_v55  ;;  %v57_v60 = vmul.f32 %v1340_v56, %v1340_v56  ;;  %751 = vmatpush2.bf16.msra.mxu0 %v1087_v13  ;;  %v1130_v13 = vld [vmem:[%s1601_s4 + $0x70] ss:$24 sps:$4 sm:$0xff]  }
  0x98   :  { %752 = vmatprep.subr.bf16.mxu0 %v1091_v16  ;;  %v1138_v16 = vld [vmem:[%s1601_s4 + $0x14] ss:$24 sps:$4 sm:$0xff]  }
  0x99   :  { %v1347_v61 = vsub.f32 %v1223_v14, %v51_v58  ;;  %v1350_v62 = vsub.f32 %v1225_v15, %v51_v58  ;;  %v60_v63 = vadd.f32 %v57_v60, %v56_v59  ;;  %v1088_v14 = vld [vmem:[%s1601_s4 + $0x24c] ss:$24 sps:$4 sm:$0xff]   ;;  %v1090_v15 = vld [vmem:[%s1601_s4 + $0x248] ss:$24 sps:$4 sm:$0xff]  }
  0x9a   :  { %793 = vmatprep.subr.bf16.mxu1 %v1088_v14  ;;  %v1135_v14 = vld [vmem:[%s1601_s4 + $0x44] ss:$24 sps:$4 sm:$0xff]  }
  0x9b   :  { %61 = vadd.xlane.f32.xlu1 %v60_v63  ;;  %v58_v0 = vmul.f32 %v1347_v61, %v1347_v61  ;;  %v59_v1 = vmul.f32 %v1350_v62, %v1350_v62  ;;  %794 = vmatpush2.bf16.msra.mxu1 %v1090_v15  ;;  %v1133_v15 = vld [vmem:[%s1601_s4 + $0x40] ss:$24 sps:$4 sm:$0xff]  }
  0x9c   :  { %795 = vmatprep.subr.bf16.mxu1 %v1094_v17  ;;  %753 = vmatpush2.bf16.msra.mxu0 %v1093_v18  ;;  %v1136_v17 = vld [vmem:[%s1601_s4 + $0x10] ss:$24 sps:$4 sm:$0xff]   ;;  %v1141_v18 = vld [vmem:[%s1601_s4 + $0x2e4] ss:$24 sps:$4 sm:$0xff]  }
  0x9d   :  { %v63_v2 = vadd.f32 %v59_v1, %v58_v0  ;;  %754 = vmatprep.subr.bf16.mxu0 %v1097_v20  ;;  %v1144_v20 = vld [vmem:[%s1601_s4 + $0x2b4] ss:$24 sps:$4 sm:$0xff]  }
  0x9f   :  { %64 = vadd.xlane.f32.xlu1 %v63_v2  ;;  %796 = vmatpush2.bf16.msra.mxu1 %v1096_v19  ;;  %v1139_v19 = vld [vmem:[%s1601_s4 + $0x2e0] ss:$24 sps:$4 sm:$0xff]  }
  0xa0   :  { %797 = vmatprep.subr.bf16.mxu1 %v1100_v21  ;;  %755 = vmatpush2.bf16.msra.mxu0 %v1099_v22  ;;  %v1142_v21 = vld [vmem:[%s1601_s4 + $0x2b0] ss:$24 sps:$4 sm:$0xff]   ;;  %v1147_v22 = vld [vmem:[%s1601_s4 + $0x284] ss:$24 sps:$4 sm:$0xff]  }
  0xa1   :  { %756 = vmatprep.subr.bf16.mxu0 %v1103_v24  ;;  %v1150_v24 = vld [vmem:[%s1601_s4 + $0x254] ss:$24 sps:$4 sm:$0xff]  }
  0xa3   :  { %798 = vmatpush2.bf16.msra.mxu1 %v1102_v23  ;;  %v1145_v23 = vld [vmem:[%s1601_s4 + $0x280] ss:$24 sps:$4 sm:$0xff]  }
  0xa4   :  { %799 = vmatprep.subr.bf16.mxu1 %v1106_v25  ;;  %757 = vmatpush2.bf16.msra.mxu0 %v1105_v26  ;;  %v1148_v25 = vld [vmem:[%s1601_s4 + $0x250] ss:$24 sps:$4 sm:$0xff]   ;;  %v1153_v26 = vld [vmem:[%s1601_s4 + $0x224] ss:$24 sps:$4 sm:$0xff]  }
  0xa5   :  { %758 = vmatprep.subr.bf16.mxu0 %v1109_v28  ;;  %v1156_v28 = vld [vmem:[%s1601_s4 + $0x1f4] ss:$24 sps:$4 sm:$0xff]  }
  0xa7   :  { %800 = vmatpush2.bf16.msra.mxu1 %v1108_v27  ;;  %v1151_v27 = vld [vmem:[%s1601_s4 + $0x220] ss:$24 sps:$4 sm:$0xff]  }
  0xa8   :  { %801 = vmatprep.subr.bf16.mxu1 %v1112_v29  ;;  %759 = vmatpush2.bf16.msra.mxu0 %v1111_v30  ;;  %v1154_v29 = vld [vmem:[%s1601_s4 + $0x1f0] ss:$24 sps:$4 sm:$0xff]   ;;  %v1159_v30 = vld [vmem:[%s1601_s4 + $0x1c4] ss:$24 sps:$4 sm:$0xff]  }
  0xa9   :  { %814 = vmatprep.subr.bf16.mxu0 %v1117_v32  ;;  %v1162_v32 = vld [vmem:[%s1601_s4 + $0x194] ss:$24 sps:$4 sm:$0xff]  }
  0xab   :  { %802 = vmatpush2.bf16.msra.mxu1 %v1114_v31  ;;  %v1157_v31 = vld [vmem:[%s1601_s4 + $0x1c0] ss:$24 sps:$4 sm:$0xff]  }
 0x124   :  { %v62_v33 = vpop.xlane.xlu1 %61 }
 0x125   :  { %v66_v34 = vmul.f32 0.00390625, %v62_v33  ;;  %v1160_v33 = vld [vmem:[%s1601_s4 + $0x190] ss:$24 sps:$4 sm:$0xff]  }
 0x127   :  { %v68_v35 = vadd.f32 1e-05, %v66_v34  ;;  %v228_v34 = vsub.s32 2, %v1446_v40 }
 0x128   :  { %v65_v36 = vpop.xlane.xlu1 %64 }
 0x129   :  { %1163 = vrsqrt.f32 %v68_v35  ;;  %v67_v37 = vmul.f32 0.00390625, %v65_v36  ;;  %v232_v35 = vsub.s32 3, %v1446_v40  ;;  %v216_v36 = vld [vmem:[%s1605_s5] sm:$0x3f] }
 0x12a   :  { %v229_v38 = vrot.slane %v216_v36, %v228_v34 }
 0x12b   :  { %v69_v39 = vadd.f32 1e-05, %v67_v37  ;;  %v221_v37 = vrot.slane %v216_v36, %v1452_v42  ;;  %v233_v43 = vrot.slane %v216_v36, %v232_v35 }
 0x12d   :  { %1165 = vrsqrt.f32 %v69_v39  ;;  %v225_v39 = vrot.slane %v216_v36, %v1449_v41 }
 0x136   :  { %v1164_v47 = vpop.eup %1163 }
 0x137   :  { %v73_v48 = vmul.f32 %v1164_v47, %v1340_v56  ;;  %v72_v50 = vmul.f32 %v1164_v47, %v1337_v55 }
 0x139   :  { %v88_v52 = vmul.f32 %v84_v45, %v73_v48  ;;  %v87_v53 = vmul.f32 %v80_v46, %v72_v50 }
 0x13a   :  { %v1166_v54 = vpop.eup %1165 }
 0x13b   :  { %v75_v57 = vmul.f32 %v1166_v54, %v1350_v62  ;;  %v103_v58 = vadd.f32 %v99_v49, %v88_v52  ;;  %v74_v59 = vmul.f32 %v1166_v54, %v1347_v61  ;;  %v102_v60 = vadd.f32 %v95_v51, %v87_v53  ;;  %v1120_v61 = vld [vmem:[%s1601_s4 + $0x134] ss:$24 sps:$4 sm:$0xff]  }
 0x13d   :  { %v90_v63 = vmul.f32 %v84_v45, %v75_v57  ;;  %v89_v0 = vmul.f32 %v80_v46, %v74_v59  ;;  %v1011_v1 = vpack.c.bf16 %v103_v58, %v102_v60 }
 0x13f   :  { %v105_v2 = vadd.f32 %v99_v49, %v90_v63  ;;  %v104_v56 = vadd.f32 %v95_v51, %v89_v0  ;;  %118 = vst [vmem:[%s1604_s6] sm:$0xff] %v1011_v1 }
 0x141   :  { %v107_v55 = vpack.c.bf16 %v105_v2, %v103_v58  ;;  %v1474_v4 = vpack.c.bf16 %v104_v56, %v102_v60  ;;  %v1012_v62 = vpack.c.bf16 %v105_v2, %v104_v56  ;;  %v236_v2 = vsub.s32 4, %v1446_v40 }
 0x142   :  { %v240_v56 = vsub.s32 5, %v1446_v40 }
 0x143   :  { %760 = vmatprep.mubr.bf16.mxu0 %v107_v55  ;;  %803 = vmatprep.mubr.bf16.mxu1 %v107_v55  ;;  %119 = vst [vmem:[%s1604_s6 + $0x8] sm:$0xff] %v1012_v62 }
 0x144   :  { %761 = vmatmul.mubr.bf16.vlgmr.msra.gmra.mxu0 %v1474_v4  ;;  %804 = vmatmul.mubr.bf16.vlgmr.msra.gmra.mxu1 %v1474_v4 }
 0x145   :  { %815 = vmatpush1.bf16.msra.mxu0 %v1115_v3  ;;  %846 = vmatprep.mubr.bf16.mxu0 %v107_v55  ;;  %v237_v55 = vrot.slane %v216_v36, %v236_v2  ;;  %v241_v3 = vrot.slane %v216_v36, %v240_v56 }
 0x146   :  { %816 = vmatprep.subr.bf16.mxu0 %v1120_v61 }
 0x149   :  { %817 = vmatpush1.bf16.msra.mxu0 %v1118_v5 }
 0x14a   :  { %818 = vmatprep.subr.bf16.mxu0 %v1123_v6 }
 0x14d   :  { %819 = vmatpush1.bf16.msra.mxu0 %v1121_v7 }
 0x14e   :  { %820 = vmatprep.subr.bf16.mxu0 %v1126_v8 }
 0x151   :  { %821 = vmatpush1.bf16.msra.mxu0 %v1124_v9 }
 0x152   :  { %822 = vmatprep.subr.bf16.mxu0 %v1129_v10 }
 0x155   :  { %823 = vmatpush1.bf16.msra.mxu0 %v1127_v11 }
 0x156   :  { %824 = vmatprep.subr.bf16.mxu0 %v1132_v12 }
 0x159   :  { %825 = vmatpush1.bf16.msra.mxu0 %v1130_v13 }
 0x15a   :  { %826 = vmatprep.subr.bf16.mxu0 %v1135_v14 }
 0x15d   :  { %827 = vmatpush1.bf16.msra.mxu0 %v1133_v15 }
 0x15e   :  { %828 = vmatprep.subr.bf16.mxu0 %v1138_v16 }
 0x161   :  { %829 = vmatpush1.bf16.msra.mxu0 %v1136_v17 }
 0x162   :  { %830 = vmatprep.subr.bf16.mxu0 %v1141_v18 }
 0x165   :  { %831 = vmatpush2.bf16.msra.mxu0 %v1139_v19 }
 0x166   :  { %832 = vmatprep.subr.bf16.mxu0 %v1144_v20 }
 0x169   :  { %833 = vmatpush2.bf16.msra.mxu0 %v1142_v21 }
 0x16a   :  { %834 = vmatprep.subr.bf16.mxu0 %v1147_v22 }
 0x16d   :  { %835 = vmatpush2.bf16.msra.mxu0 %v1145_v23 }
 0x16e   :  { %836 = vmatprep.subr.bf16.mxu0 %v1150_v24 }
 0x171   :  { %837 = vmatpush2.bf16.msra.mxu0 %v1148_v25 }
 0x172   :  { %838 = vmatprep.subr.bf16.mxu0 %v1153_v26 }
 0x175   :  { %839 = vmatpush2.bf16.msra.mxu0 %v1151_v27 }
 0x176   :  { %840 = vmatprep.subr.bf16.mxu0 %v1156_v28 }
 0x179   :  { %841 = vmatpush2.bf16.msra.mxu0 %v1154_v29 }
 0x17a   :  { %842 = vmatprep.subr.bf16.mxu0 %v1159_v30 }
 0x17d   :  { %843 = vmatpush2.bf16.msra.mxu0 %v1157_v31 }
 0x17e   :  { %844 = vmatprep.subr.bf16.mxu0 %v1162_v32 }
 0x181   :  { %845 = vmatpush2.bf16.msra.mxu0 %v1160_v33 }
 0x184   :  { %847 = vmatmul.mubr.bf16.vlgmr.msra.gmra.mxu0 %v1474_v4 }
 0x204   :  { %v762_v44 = vpop.f32.mrf.mxu0  ;;  %v805_v45 = vpop.f32.mrf.mxu1 }
 0x205   :  { %v763_v48 = vadd.f32 %v762_v44, %v221_v37  ;;  %v806_v49 = vadd.f32 %v805_v45, %v229_v38 }
 0x206   :  { %v764_v46 = vpop.f32.mrf.mxu0  ;;  %v807_v47 = vpop.f32.mrf.mxu1 }
 0x207   :  { %v765_v50 = vadd.f32 %v764_v46, %v225_v39  ;;  %v808_v51 = vadd.f32 %v807_v47, %v233_v43 }
 0x208   :  { %v766_v52 = vpop.f32.mrf.mxu0  ;;  %v809_v53 = vpop.f32.mrf.mxu1 }
 0x209   :  { %v1013_v54 = vpack.c.bf16 %v765_v50, %v763_v48  ;;  %v1014_v57 = vpack.c.bf16 %v808_v51, %v806_v49  ;;  %v767_v41 = vadd.f32 %v766_v52, %v221_v37  ;;  %v810_v42 = vadd.f32 %v809_v53, %v229_v38 }
 0x20a   :  { %v768_v58 = vpop.f32.mrf.mxu0  ;;  %v811_v59 = vpop.f32.mrf.mxu1 }
 0x20b   :  { %893 = vst [vmem:[%s1606_s7] sm:$0xff] %v1013_v54  ;;  %894 = vst [vmem:[%s1606_s7 + $0x8] sm:$0xff] %v1014_v57  ;;  %v769_v60 = vadd.f32 %v768_v58, %v225_v39  ;;  %v812_v63 = vadd.f32 %v811_v59, %v233_v43 }
 0x20d   :  { %v1016_v0 = vpack.c.bf16 %v769_v60, %v767_v41  ;;  %v1017_v1 = vpack.c.bf16 %v812_v63, %v810_v42 }
 0x20f   :  { %896 = vst [vmem:[%s1606_s7 + $0x18] sm:$0xff] %v1016_v0  ;;  %897 = vst [vmem:[%s1606_s7 + $0x20] sm:$0xff] %v1017_v1 }
 0x244   :  { %v848_v4 = vpop.f32.mrf.mxu0 }
 0x245   :  { %v849_v61 = vadd.f32 %v848_v4, %v237_v55 }
 0x246   :  { %v850_v62 = vpop.f32.mrf.mxu0 }
 0x247   :  { %v851_v5 = vadd.f32 %v850_v62, %v241_v3 }
 0x248   :  { %v852_v6 = vpop.f32.mrf.mxu0 }
 0x249   :  { %v1015_v7 = vpack.c.bf16 %v851_v5, %v849_v61  ;;  %v853_v9 = vadd.f32 %v852_v6, %v237_v55 }
 0x24a   :  { %v854_v8 = vpop.f32.mrf.mxu0 }
 0x24b   :  { %895 = vst [vmem:[%s1606_s7 + $0x10] sm:$0xff] %v1015_v7  ;;  %v855_v10 = vadd.f32 %v854_v8, %v241_v3 }
 0x24d   :  { %v1018_v11 = vpack.c.bf16 %v855_v10, %v853_v9 }
 0x24f   :  { %898 = vst [vmem:[%s1606_s7 + $0x28] sm:$0xff] %v1018_v11 }

// kernel: transformer_model_forward.42
= control target key start
LH: loop header
LB: loop body
LE: loop exit
PB: predicated region body
PF: predicated region fallthrough
CT: control target
= control target key end

     0   :  { %s670_s0 = inlined_call_operand.vmem [shape: bf16[16,256], index: 0, kind: input, shape index: {}]   ;;  %s671_s1 = inlined_call_operand.vmem [shape: bf16[16,256], index: 1, kind: input, shape index: {}]   ;;  %s672_s4 = inlined_call_operand.vmem [shape: bf16[256,256], index: 4, kind: input, shape index: {}]   ;;  %s673_s2 = inlined_call_operand.vmem [shape: f32[1,256], index: 2, kind: input, shape index: {}]   ;;  %s674_s3 = inlined_call_operand.vmem [shape: f32[1,256], index: 3, kind: input, shape index: {}]   ;;  %s675_s6 = inlined_call_operand.vmem [shape: bf16[16,256], index: 6, kind: output, shape index: {0}]   ;;  %s676_s5 = inlined_call_operand.vmem [shape: f32[1,256], index: 5, kind: input, shape index: {}]   ;;  %s677_s7 = inlined_call_operand.vmem [shape: bf16[16,256], index: 7, kind: output, shape index: {1}]  }
   0x1   :  { %v25_v0 = vld [vmem:[%s670_s0] sm:$0xff]  ;;  %v26_v2 = vld [vmem:[%s670_s0 + $0x8] sm:$0xff]  ;;  %v429_v18 = vld [vmem:[%s672_s4 + $0x74] ss:$8 sps:$4 sm:$0xff]  }
   0x2   :  { %v31_v1 = vld [vmem:[%s671_s1] sm:$0xff]  ;;  %v27_v3 = vunpack.c.l.bf16 %v25_v0  ;;  %v28_v4 = vunpack.c.h.bf16 %v25_v0  ;;  %v32_v7 = vld [vmem:[%s671_s1 + $0x8] sm:$0xff]  ;;  %v29_v8 = vunpack.c.l.bf16 %v26_v2  ;;  %v30_v9 = vunpack.c.h.bf16 %v26_v2  ;;  %v431_v19 = vld [vmem:[%s672_s4 + $0x70] ss:$8 sps:$4 sm:$0xff]   ;;  %324 = vmatprep.subr.bf16.mxu0 %v429_v18 }
   0x3   :  { %v33_v5 = vunpack.c.l.bf16 %v31_v1  ;;  %v34_v6 = vunpack.c.h.bf16 %v31_v1  ;;  %v35_v10 = vunpack.c.l.bf16 %v32_v7  ;;  %v36_v11 = vunpack.c.h.bf16 %v32_v7  ;;  %v432_v20 = vld [vmem:[%s672_s4 + $0x64] ss:$8 sps:$4 sm:$0xff]   ;;  %325 = vmatpush1.bf16.msra.mxu0 %v431_v19  ;;  %v434_v21 = vld [vmem:[%s672_s4 + $0x60] ss:$8 sps:$4 sm:$0xff]   ;;  %v435_v22 = vld [vmem:[%s672_s4 + $0x54] ss:$8 sps:$4 sm:$0xff]  }
   0x4   :  { %326 = vmatprep.subr.bf16.mxu0 %v432_v20  ;;  %v437_v23 = vld [vmem:[%s672_s4 + $0x50] ss:$8 sps:$4 sm:$0xff]   ;;  %v438_v24 = vld [vmem:[%s672_s4 + $0x44] ss:$8 sps:$4 sm:$0xff]   ;;  %v440_v25 = vld [vmem:[%s672_s4 + $0x40] ss:$8 sps:$4 sm:$0xff]  }
   0x5   :  { %v37_v12 = vadd.f32 %v33_v5, %v27_v3  ;;  %v38_v13 = vadd.f32 %v34_v6, %v28_v4  ;;  %v39_v14 = vadd.f32 %v35_v10, %v29_v8  ;;  %v40_v15 = vadd.f32 %v36_v11, %v30_v9  ;;  %v441_v26 = vld [vmem:[%s672_s4 + $0x34] ss:$8 sps:$4 sm:$0xff]   ;;  %v443_v27 = vld [vmem:[%s672_s4 + $0x30] ss:$8 sps:$4 sm:$0xff]   ;;  %v444_v28 = vld [vmem:[%s672_s4 + $0x24] ss:$8 sps:$4 sm:$0xff]  }
   0x6   :  { %v446_v29 = vld [vmem:[%s672_s4 + $0x20] ss:$8 sps:$4 sm:$0xff]   ;;  %v447_v30 = vld [vmem:[%s672_s4 + $0x14] ss:$8 sps:$4 sm:$0xff]   ;;  %v449_v31 = vld [vmem:[%s672_s4 + $0x10] ss:$8 sps:$4 sm:$0xff]   ;;  %v77_v5 = vlaneseq }
   0x7   :  { %v43_v16 = vadd.f32 %v38_v13, %v37_v12  ;;  %v46_v17 = vadd.f32 %v40_v15, %v39_v14  ;;  %327 = vmatpush1.bf16.msra.mxu0 %v434_v21  ;;  %v450_v32 = vld [vmem:[%s672_s4 + $0x4] ss:$8 sps:$4 sm:$0xff]   ;;  %v452_v33 = vld [vmem:[%s672_s4] ss:$8 sps:$4 sm:$0xff]   ;;  %v453_v34 = vld [vmem:[%s672_s4 + $0xf4] ss:$8 sps:$4 sm:$0xff]  }
   0x8   :  { %328 = vmatprep.subr.bf16.mxu0 %v435_v22  ;;  %v455_v49 = vld [vmem:[%s672_s4 + $0xf0] ss:$8 sps:$4 sm:$0xff]   ;;  %v456_v50 = vld [vmem:[%s672_s4 + $0xe4] ss:$8 sps:$4 sm:$0xff]   ;;  %v458_v51 = vld [vmem:[%s672_s4 + $0xe0] ss:$8 sps:$4 sm:$0xff]  }
   0x9   :  { %44 = vadd.xlane.f32.xlu0 %v43_v16  ;;  %v459_v52 = vld [vmem:[%s672_s4 + $0xd4] ss:$8 sps:$4 sm:$0xff]   ;;  %v461_v53 = vld [vmem:[%s672_s4 + $0xd0] ss:$8 sps:$4 sm:$0xff]   ;;  %v462_v54 = vld [vmem:[%s672_s4 + $0xc4] ss:$8 sps:$4 sm:$0xff]  }
   0xa   :  { %v464_v55 = vld [vmem:[%s672_s4 + $0xc0] ss:$8 sps:$4 sm:$0xff]   ;;  %v465_v56 = vld [vmem:[%s672_s4 + $0xb4] ss:$8 sps:$4 sm:$0xff]   ;;  %v467_v57 = vld [vmem:[%s672_s4 + $0xb0] ss:$8 sps:$4 sm:$0xff]  }
   0xb   :  { %329 = vmatpush1.bf16.msra.mxu0 %v437_v23  ;;  %v468_v58 = vld [vmem:[%s672_s4 + $0xa4] ss:$8 sps:$4 sm:$0xff]   ;;  %v470_v59 = vld [vmem:[%s672_s4 + $0xa0] ss:$8 sps:$4 sm:$0xff]   ;;  %v471_v60 = vld [vmem:[%s672_s4 + $0x94] ss:$8 sps:$4 sm:$0xff]  }
   0xc   :  { %330 = vmatprep.subr.bf16.mxu0 %v438_v24  ;;  %v473_v61 = vld [vmem:[%s672_s4 + $0x90] ss:$8 sps:$4 sm:$0xff]   ;;  %v474_v62 = vld [vmem:[%s672_s4 + $0x84] ss:$8 sps:$4 sm:$0xff]   ;;  %v476_v63 = vld [vmem:[%s672_s4 + $0x80] ss:$8 sps:$4 sm:$0xff]  }
   0xd   :  { %47 = vadd.xlane.f32.xlu0 %v46_v17  ;;  %v78_v7 = vshrl.u32 %v77_v5, 7  ;;  %v41_v10 = vld [vmem:[%s673_s2] sm:$0x3] }
   0xe   :  { %v42_v11 = vld [vmem:[%s674_s3] sm:$0x3] }
   0xf   :  { %331 = vmatpush1.bf16.msra.mxu0 %v440_v25  ;;  %v79_v8 = vsub.s32 0, %v78_v7  ;;  %v83_v9 = vsub.s32 1, %v78_v7 }
  0x10   :  { %332 = vmatprep.subr.bf16.mxu0 %v441_v26 }
  0x11   :  { %v95_v17 = vrot.slane %v42_v11, %v79_v8  ;;  %v99_v18 = vrot.slane %v42_v11, %v83_v9 }
  0x13   :  { %333 = vmatpush1.bf16.msra.mxu0 %v443_v27 }
  0x14   :  { %334 = vmatprep.subr.bf16.mxu0 %v444_v28 }
  0x17   :  { %335 = vmatpush1.bf16.msra.mxu0 %v446_v29 }
  0x18   :  { %336 = vmatprep.subr.bf16.mxu0 %v447_v30 }
  0x1b   :  { %337 = vmatpush1.bf16.msra.mxu0 %v449_v31 }
  0x1c   :  { %338 = vmatprep.subr.bf16.mxu0 %v450_v32 }
  0x1f   :  { %339 = vmatpush1.bf16.msra.mxu0 %v452_v33 }
  0x20   :  { %340 = vmatprep.subr.bf16.mxu0 %v453_v34  ;;  %v152_v34 = vld [vmem:[%s676_s5] sm:$0x3] }
  0x23   :  { %341 = vmatpush2.bf16.msra.mxu0 %v455_v49 }
  0x24   :  { %342 = vmatprep.subr.bf16.mxu0 %v456_v50 }
  0x27   :  { %343 = vmatpush2.bf16.msra.mxu0 %v458_v51 }
  0x28   :  { %344 = vmatprep.subr.bf16.mxu0 %v459_v52 }
  0x2b   :  { %345 = vmatpush2.bf16.msra.mxu0 %v461_v53 }
  0x2c   :  { %346 = vmatprep.subr.bf16.mxu0 %v462_v54 }
  0x2f   :  { %347 = vmatpush2.bf16.msra.mxu0 %v464_v55 }
  0x30   :  { %348 = vmatprep.subr.bf16.mxu0 %v465_v56 }
  0x33   :  { %349 = vmatpush2.bf16.msra.mxu0 %v467_v57 }
  0x34   :  { %350 = vmatprep.subr.bf16.mxu0 %v468_v58 }
  0x37   :  { %351 = vmatpush2.bf16.msra.mxu0 %v470_v59 }
  0x38   :  { %352 = vmatprep.subr.bf16.mxu0 %v471_v60 }
  0x3b   :  { %353 = vmatpush2.bf16.msra.mxu0 %v473_v61 }
  0x3c   :  { %354 = vmatprep.subr.bf16.mxu0 %v474_v62 }
  0x3f   :  { %355 = vmatpush2.bf16.msra.mxu0 %v476_v63 }
  0x92   :  { %v45_v35 = vpop.xlane.xlu0 %44 }
  0x93   :  { %v50_v36 = vmul.f32 0.00390625, %v45_v35  ;;  %v157_v35 = vrot.slane %v152_v34, %v79_v8 }
  0x95   :  { %v584_v37 = vsub.f32 %v37_v12, %v50_v36  ;;  %v586_v38 = vsub.f32 %v38_v13, %v50_v36  ;;  %v80_v12 = vrot.slane %v41_v10, %v79_v8  ;;  %v84_v13 = vrot.slane %v41_v10, %v83_v9 }
  0x96   :  { %v48_v39 = vpop.xlane.xlu0 %47  ;;  %v161_v36 = vrot.slane %v152_v34, %v83_v9 }
  0x97   :  { %v51_v40 = vmul.f32 0.00390625, %v48_v39  ;;  %v56_v41 = vmul.f32 %v584_v37, %v584_v37  ;;  %v57_v42 = vmul.f32 %v586_v38, %v586_v38 }
  0x99   :  { %v592_v43 = vsub.f32 %v39_v14, %v51_v40  ;;  %v594_v44 = vsub.f32 %v40_v15, %v51_v40  ;;  %v60_v45 = vadd.f32 %v57_v42, %v56_v41 }
  0x9b   :  { %61 = vadd.xlane.f32.xlu1 %v60_v45  ;;  %v58_v46 = vmul.f32 %v592_v43, %v592_v43  ;;  %v59_v47 = vmul.f32 %v594_v44, %v594_v44 }
  0x9d   :  { %v63_v48 = vadd.f32 %v59_v47, %v58_v46 }
  0x9f   :  { %64 = vadd.xlane.f32.xlu1 %v63_v48 }
 0x124   :  { %v62_v0 = vpop.xlane.xlu1 %61 }
 0x125   :  { %v66_v1 = vmul.f32 0.00390625, %v62_v0 }
 0x127   :  { %v68_v2 = vadd.f32 1e-05, %v66_v1 }
 0x128   :  { %v65_v3 = vpop.xlane.xlu1 %64 }
 0x129   :  { %477 = vrsqrt.f32 %v68_v2  ;;  %v67_v4 = vmul.f32 0.00390625, %v65_v3 }
 0x12b   :  { %v69_v6 = vadd.f32 1e-05, %v67_v4 }
 0x12d   :  { %479 = vrsqrt.f32 %v69_v6 }
 0x136   :  { %v478_v14 = vpop.eup %477 }
 0x137   :  { %v72_v15 = vmul.f32 %v478_v14, %v584_v37  ;;  %v73_v16 = vmul.f32 %v478_v14, %v586_v38 }
 0x139   :  { %v87_v19 = vmul.f32 %v80_v12, %v72_v15  ;;  %v88_v20 = vmul.f32 %v84_v13, %v73_v16 }
 0x13a   :  { %v480_v21 = vpop.eup %479 }
 0x13b   :  { %v74_v22 = vmul.f32 %v480_v21, %v592_v43  ;;  %v75_v23 = vmul.f32 %v480_v21, %v594_v44  ;;  %v102_v24 = vadd.f32 %v95_v17, %v87_v19  ;;  %v103_v25 = vadd.f32 %v99_v18, %v88_v20 }
 0x13d   :  { %v89_v26 = vmul.f32 %v80_v12, %v74_v22  ;;  %v90_v27 = vmul.f32 %v84_v13, %v75_v23  ;;  %v425_v28 = vpack.c.bf16 %v103_v25, %v102_v24 }
 0x13f   :  { %v104_v29 = vadd.f32 %v95_v17, %v89_v26  ;;  %v105_v30 = vadd.f32 %v99_v18, %v90_v27  ;;  %118 = vst [vmem:[%s675_s6] sm:$0xff] %v425_v28 }
 0x141   :  { %v107_v31 = vpack.c.bf16 %v105_v30, %v103_v25  ;;  %v426_v32 = vpack.c.bf16 %v105_v30, %v104_v29  ;;  %v106_v33 = vpack.c.bf16 %v104_v29, %v102_v24 }
 0x143   :  { %119 = vst [vmem:[%s675_s6 + $0x8] sm:$0xff] %v426_v32  ;;  %356 = vmatprep.mubr.bf16.mxu0 %v107_v31 }
 0x144   :  { %357 = vmatmul.mubr.bf16.vlgmr.msra.gmra.mxu0 %v106_v33 }
 0x204   :  { %v358_v37 = vpop.f32.mrf.mxu0 }
 0x205   :  { %v359_v39 = vadd.f32 %v358_v37, %v157_v35 }
 0x206   :  { %v360_v38 = vpop.f32.mrf.mxu0 }
 0x207   :  { %v361_v40 = vadd.f32 %v360_v38, %v161_v36 }
 0x208   :  { %v362_v41 = vpop.f32.mrf.mxu0 }
 0x209   :  { %v427_v42 = vpack.c.bf16 %v361_v40, %v359_v39  ;;  %v363_v44 = vadd.f32 %v362_v41, %v157_v35 }
 0x20a   :  { %v364_v43 = vpop.f32.mrf.mxu0 }
 0x20b   :  { %379 = vst [vmem:[%s677_s7] sm:$0xff] %v427_v42  ;;  %v365_v45 = vadd.f32 %v364_v43, %v161_v36 }
 0x20d   :  { %v428_v46 = vpack.c.bf16 %v365_v45, %v363_v44 }
 0x20f   :  { %380 = vst [vmem:[%s677_s7 + $0x8] sm:$0xff] %v428_v46 }

// kernel: transformer_model_forward.39
= control target key start
LH: loop header
LB: loop body
LE: loop exit
PB: predicated region body
PF: predicated region fallthrough
CT: control target
= control target key end

     0   :  { %s1411_s1 = inlined_call_operand.vmem [shape: bf16[256,768], index: 1, kind: input, shape index: {}]   ;;  %s1412_s0 = inlined_call_operand.vmem [shape: bf16[16,256], index: 0, kind: input, shape index: {}]   ;;  %s1413_s2 = inlined_call_operand.vmem [shape: f32[1,768], index: 2, kind: input, shape index: {}]   ;;  %s1414_s3 = inlined_call_operand.vmem [shape: bf16[16,768], index: 3, kind: output, shape index: {}]  }
   0x1   :  { %v919_v0 = vld [vmem:[%s1411_s1 + $0x154] ss:$24 sps:$4 sm:$0xff]   ;;  %v921_v1 = vld [vmem:[%s1411_s1 + $0x150] ss:$24 sps:$4 sm:$0xff]   ;;  %v922_v2 = vld [vmem:[%s1411_s1 + $0x124] ss:$24 sps:$4 sm:$0xff]  }
   0x2   :  { %634 = vmatprep.subr.bf16.mxu0 %v919_v0  ;;  %v924_v3 = vld [vmem:[%s1411_s1 + $0x120] ss:$24 sps:$4 sm:$0xff]   ;;  %v925_v4 = vld [vmem:[%s1411_s1 + $0xf4] ss:$24 sps:$4 sm:$0xff]   ;;  %v927_v5 = vld [vmem:[%s1411_s1 + $0xf0] ss:$24 sps:$4 sm:$0xff]  }
   0x3   :  { %635 = vmatpush1.bf16.msra.mxu0 %v921_v1  ;;  %v928_v6 = vld [vmem:[%s1411_s1 + $0xc4] ss:$24 sps:$4 sm:$0xff]   ;;  %v930_v7 = vld [vmem:[%s1411_s1 + $0xc0] ss:$24 sps:$4 sm:$0xff]   ;;  %v931_v8 = vld [vmem:[%s1411_s1 + $0x94] ss:$24 sps:$4 sm:$0xff]  }
   0x4   :  { %636 = vmatprep.subr.bf16.mxu0 %v922_v2  ;;  %v933_v9 = vld [vmem:[%s1411_s1 + $0x90] ss:$24 sps:$4 sm:$0xff]   ;;  %v934_v10 = vld [vmem:[%s1411_s1 + $0x64] ss:$24 sps:$4 sm:$0xff]   ;;  %v936_v11 = vld [vmem:[%s1411_s1 + $0x60] ss:$24 sps:$4 sm:$0xff]  }
   0x5   :  { %v937_v12 = vld [vmem:[%s1411_s1 + $0x34] ss:$24 sps:$4 sm:$0xff]   ;;  %v966_v14 = vld [vmem:[%s1411_s1 + $0x158] ss:$24 sps:$4 sm:$0xff]   ;;  %v940_v16 = vld [vmem:[%s1411_s1 + $0x4] ss:$24 sps:$4 sm:$0xff]  }
   0x6   :  { %v964_v13 = vld [vmem:[%s1411_s1 + $0x15c] ss:$24 sps:$4 sm:$0xff]   ;;  %v939_v15 = vld [vmem:[%s1411_s1 + $0x30] ss:$24 sps:$4 sm:$0xff]   ;;  %v970_v17 = vld [vmem:[%s1411_s1 + $0x12c] ss:$24 sps:$4 sm:$0xff]  }
   0x7   :  { %637 = vmatpush1.bf16.msra.mxu0 %v924_v3  ;;  %677 = vmatprep.subr.bf16.mxu1 %v964_v13  ;;  %v1143_v18 = vld [vmem:[%s1412_s0 + $0x4] ss:$8 sps:$4 sm:$0xff]   ;;  %v974_v19 = vld [vmem:[%s1411_s1 + $0x128] ss:$24 sps:$4 sm:$0xff]   ;;  %v979_v21 = vld [vmem:[%s1411_s1 + $0xfc] ss:$24 sps:$4 sm:$0xff]  }
   0x8   :  { %638 = vmatprep.subr.bf16.mxu0 %v925_v4  ;;  %678 = vmatpush1.bf16.msra.mxu1 %v966_v14  ;;  %v942_v20 = vld [vmem:[%s1411_s1] ss:$24 sps:$4 sm:$0xff]   ;;  %v943_v23 = vld [vmem:[%s1411_s1 + $0x2d4] ss:$24 sps:$4 sm:$0xff]   ;;  %v945_v24 = vld [vmem:[%s1411_s1 + $0x2d0] ss:$24 sps:$4 sm:$0xff]  }
   0x9   :  { %679 = vmatprep.subr.bf16.mxu1 %v970_v17  ;;  %666 = vmatprep.mubr.bf16.mxu0 %v1143_v18  ;;  %v981_v22 = vld [vmem:[%s1411_s1 + $0xf8] ss:$24 sps:$4 sm:$0xff]   ;;  %v985_v25 = vld [vmem:[%s1411_s1 + $0xcc] ss:$24 sps:$4 sm:$0xff]   ;;  %v987_v27 = vld [vmem:[%s1411_s1 + $0xc8] ss:$24 sps:$4 sm:$0xff]  }
   0xa   :  { %709 = vmatprep.mubr.bf16.mxu1 %v1143_v18  ;;  %v946_v26 = vld [vmem:[%s1411_s1 + $0x2a4] ss:$24 sps:$4 sm:$0xff]   ;;  %v948_v29 = vld [vmem:[%s1411_s1 + $0x2a0] ss:$24 sps:$4 sm:$0xff]   ;;  %v949_v30 = vld [vmem:[%s1411_s1 + $0x274] ss:$24 sps:$4 sm:$0xff]  }
   0xb   :  { %639 = vmatpush1.bf16.msra.mxu0 %v927_v5  ;;  %v991_v28 = vld [vmem:[%s1411_s1 + $0x9c] ss:$24 sps:$4 sm:$0xff]   ;;  %v993_v31 = vld [vmem:[%s1411_s1 + $0x98] ss:$24 sps:$4 sm:$0xff]   ;;  %v997_v32 = vld [vmem:[%s1411_s1 + $0x6c] ss:$24 sps:$4 sm:$0xff]  }
   0xc   :  { %640 = vmatprep.subr.bf16.mxu0 %v928_v6  ;;  %680 = vmatpush1.bf16.msra.mxu1 %v974_v19  ;;  %v951_v33 = vld [vmem:[%s1411_s1 + $0x270] ss:$24 sps:$4 sm:$0xff]   ;;  %v952_v34 = vld [vmem:[%s1411_s1 + $0x244] ss:$24 sps:$4 sm:$0xff]   ;;  %v954_v37 = vld [vmem:[%s1411_s1 + $0x240] ss:$24 sps:$4 sm:$0xff]  }
   0xd   :  { %681 = vmatprep.subr.bf16.mxu1 %v979_v21  ;;  %v999_v35 = vld [vmem:[%s1411_s1 + $0x68] ss:$24 sps:$4 sm:$0xff]   ;;  %v1003_v36 = vld [vmem:[%s1411_s1 + $0x3c] ss:$24 sps:$4 sm:$0xff]   ;;  %v1005_v39 = vld [vmem:[%s1411_s1 + $0x38] ss:$24 sps:$4 sm:$0xff]  }
   0xe   :  { %v955_v38 = vld [vmem:[%s1411_s1 + $0x214] ss:$24 sps:$4 sm:$0xff]   ;;  %v957_v41 = vld [vmem:[%s1411_s1 + $0x210] ss:$24 sps:$4 sm:$0xff]   ;;  %v958_v42 = vld [vmem:[%s1411_s1 + $0x1e4] ss:$24 sps:$4 sm:$0xff]  }
   0xf   :  { %641 = vmatpush1.bf16.msra.mxu0 %v930_v7  ;;  %v1009_v40 = vld [vmem:[%s1411_s1 + $0xc] ss:$24 sps:$4 sm:$0xff]   ;;  %v1011_v43 = vld [vmem:[%s1411_s1 + $0x8] ss:$24 sps:$4 sm:$0xff]   ;;  %v1015_v44 = vld [vmem:[%s1411_s1 + $0x2dc] ss:$24 sps:$4 sm:$0xff]  }
  0x10   :  { %642 = vmatprep.subr.bf16.mxu0 %v931_v8  ;;  %682 = vmatpush1.bf16.msra.mxu1 %v981_v22  ;;  %v960_v45 = vld [vmem:[%s1411_s1 + $0x1e0] ss:$24 sps:$4 sm:$0xff]   ;;  %v961_v46 = vld [vmem:[%s1411_s1 + $0x1b4] ss:$24 sps:$4 sm:$0xff]   ;;  %v963_v49 = vld [vmem:[%s1411_s1 + $0x1b0] ss:$24 sps:$4 sm:$0xff]  }
  0x11   :  { %683 = vmatprep.subr.bf16.mxu1 %v985_v25  ;;  %v1017_v47 = vld [vmem:[%s1411_s1 + $0x2d8] ss:$24 sps:$4 sm:$0xff]   ;;  %v1021_v48 = vld [vmem:[%s1411_s1 + $0x2ac] ss:$24 sps:$4 sm:$0xff]   ;;  %v1023_v51 = vld [vmem:[%s1411_s1 + $0x2a8] ss:$24 sps:$4 sm:$0xff]  }
  0x12   :  { %v967_v50 = vld [vmem:[%s1411_s1 + $0x184] ss:$24 sps:$4 sm:$0xff]   ;;  %v969_v53 = vld [vmem:[%s1411_s1 + $0x180] ss:$24 sps:$4 sm:$0xff]   ;;  %v984_v59 = vld [vmem:[%s1411_s1 + $0x134] ss:$24 sps:$4 sm:$0xff]  }
  0x13   :  { %643 = vmatpush1.bf16.msra.mxu0 %v933_v9  ;;  %v1027_v52 = vld [vmem:[%s1411_s1 + $0x27c] ss:$24 sps:$4 sm:$0xff]   ;;  %v1029_v55 = vld [vmem:[%s1411_s1 + $0x278] ss:$24 sps:$4 sm:$0xff]   ;;  %v1033_v56 = vld [vmem:[%s1411_s1 + $0x24c] ss:$24 sps:$4 sm:$0xff]  }
  0x14   :  { %644 = vmatprep.subr.bf16.mxu0 %v934_v10  ;;  %684 = vmatpush1.bf16.msra.mxu1 %v987_v27  ;;  %v978_v54 = vld [vmem:[%s1411_s1 + $0x164] ss:$24 sps:$4 sm:$0xff]   ;;  %v1264_v57 = vld [vmem:[%s1412_s0] ss:$8 sps:$4 sm:$0xff]   ;;  %v1041_v63 = vld [vmem:[%s1411_s1 + $0x218] ss:$24 sps:$4 sm:$0xff]  }
  0x15   :  { %685 = vmatprep.subr.bf16.mxu1 %v991_v28  ;;  %v976_v58 = vld [vmem:[%s1411_s1 + $0x160] ss:$24 sps:$4 sm:$0xff]   ;;  %v1039_v61 = vld [vmem:[%s1411_s1 + $0x21c] ss:$24 sps:$4 sm:$0xff]   ;;  %v982_v62 = vld [vmem:[%s1411_s1 + $0x130] ss:$24 sps:$4 sm:$0xff]  }
  0x16   :  { %v1035_v60 = vld [vmem:[%s1411_s1 + $0x248] ss:$24 sps:$4 sm:$0xff]   ;;  %v990_v0 = vld [vmem:[%s1411_s1 + $0x104] ss:$24 sps:$4 sm:$0xff]   ;;  %v996_v4 = vld [vmem:[%s1411_s1 + $0xd4] ss:$24 sps:$4 sm:$0xff]  }
  0x17   :  { %645 = vmatpush1.bf16.msra.mxu0 %v936_v11  ;;  %v1045_v1 = vld [vmem:[%s1411_s1 + $0x1ec] ss:$24 sps:$4 sm:$0xff]   ;;  %v988_v2 = vld [vmem:[%s1411_s1 + $0x100] ss:$24 sps:$4 sm:$0xff]   ;;  %v1051_v5 = vld [vmem:[%s1411_s1 + $0x1bc] ss:$24 sps:$4 sm:$0xff]  }
  0x18   :  { %646 = vmatprep.subr.bf16.mxu0 %v937_v12  ;;  %686 = vmatpush1.bf16.msra.mxu1 %v993_v31  ;;  %v1047_v3 = vld [vmem:[%s1411_s1 + $0x1e8] ss:$24 sps:$4 sm:$0xff]   ;;  %v1053_v7 = vld [vmem:[%s1411_s1 + $0x1b8] ss:$24 sps:$4 sm:$0xff]   ;;  %v1002_v8 = vld [vmem:[%s1411_s1 + $0xa4] ss:$24 sps:$4 sm:$0xff]  }
  0x19   :  { %687 = vmatprep.subr.bf16.mxu1 %v997_v32  ;;  %v994_v6 = vld [vmem:[%s1411_s1 + $0xd0] ss:$24 sps:$4 sm:$0xff]   ;;  %v1057_v9 = vld [vmem:[%s1411_s1 + $0x18c] ss:$24 sps:$4 sm:$0xff]   ;;  %v1000_v10 = vld [vmem:[%s1411_s1 + $0xa0] ss:$24 sps:$4 sm:$0xff]  }
  0x1a   :  { %v1059_v11 = vld [vmem:[%s1411_s1 + $0x188] ss:$24 sps:$4 sm:$0xff]   ;;  %v1008_v12 = vld [vmem:[%s1411_s1 + $0x74] ss:$24 sps:$4 sm:$0xff]   ;;  %v1014_v14 = vld [vmem:[%s1411_s1 + $0x44] ss:$24 sps:$4 sm:$0xff]  }
  0x1b   :  { %647 = vmatpush1.bf16.msra.mxu0 %v939_v15  ;;  %v1006_v13 = vld [vmem:[%s1411_s1 + $0x70] ss:$24 sps:$4 sm:$0xff]   ;;  %v1012_v15 = vld [vmem:[%s1411_s1 + $0x40] ss:$24 sps:$4 sm:$0xff]   ;;  %v1038_v22 = vld [vmem:[%s1411_s1 + $0x284] ss:$24 sps:$4 sm:$0xff]  }
  0x1c   :  { %648 = vmatprep.subr.bf16.mxu0 %v940_v16  ;;  %688 = vmatpush1.bf16.msra.mxu1 %v999_v35  ;;  %v1020_v16 = vld [vmem:[%s1411_s1 + $0x14] ss:$24 sps:$4 sm:$0xff]   ;;  %v1018_v17 = vld [vmem:[%s1411_s1 + $0x10] ss:$24 sps:$4 sm:$0xff]   ;;  %v1024_v19 = vld [vmem:[%s1411_s1 + $0x2e0] ss:$24 sps:$4 sm:$0xff]  }
  0x1d   :  { %689 = vmatprep.subr.bf16.mxu1 %v1003_v36  ;;  %v1030_v21 = vld [vmem:[%s1411_s1 + $0x2b0] ss:$24 sps:$4 sm:$0xff]   ;;  %v1048_v27 = vld [vmem:[%s1411_s1 + $0x220] ss:$24 sps:$4 sm:$0xff]   ;;  %v1056_v28 = vld [vmem:[%s1411_s1 + $0x1f4] ss:$24 sps:$4 sm:$0xff]  }
  0x1e   :  { %v1042_v25 = vld [vmem:[%s1411_s1 + $0x250] ss:$24 sps:$4 sm:$0xff]   ;;  %v1060_v31 = vld [vmem:[%s1411_s1 + $0x1c0] ss:$24 sps:$4 sm:$0xff]   ;;  %v1065_v32 = vld [vmem:[%s1411_s1 + $0x194] ss:$24 sps:$4 sm:$0xff]  }
  0x1f   :  { %649 = vmatpush1.bf16.msra.mxu0 %v942_v20  ;;  %v1032_v20 = vld [vmem:[%s1411_s1 + $0x2b4] ss:$24 sps:$4 sm:$0xff]  }
  0x20   :  { %650 = vmatprep.subr.bf16.mxu0 %v943_v23  ;;  %690 = vmatpush1.bf16.msra.mxu1 %v1005_v39  ;;  %v1036_v23 = vld [vmem:[%s1411_s1 + $0x280] ss:$24 sps:$4 sm:$0xff]  }
  0x21   :  { %691 = vmatprep.subr.bf16.mxu1 %v1009_v40 }
  0x23   :  { %651 = vmatpush2.bf16.msra.mxu0 %v945_v24  ;;  %v1044_v24 = vld [vmem:[%s1411_s1 + $0x254] ss:$24 sps:$4 sm:$0xff]  }
  0x24   :  { %652 = vmatprep.subr.bf16.mxu0 %v946_v26  ;;  %692 = vmatpush1.bf16.msra.mxu1 %v1011_v43  ;;  %v1050_v26 = vld [vmem:[%s1411_s1 + $0x224] ss:$24 sps:$4 sm:$0xff]  }
  0x25   :  { %693 = vmatprep.subr.bf16.mxu1 %v1015_v44 }
  0x27   :  { %653 = vmatpush2.bf16.msra.mxu0 %v948_v29  ;;  %v1054_v29 = vld [vmem:[%s1411_s1 + $0x1f0] ss:$24 sps:$4 sm:$0xff]  }
  0x28   :  { %654 = vmatprep.subr.bf16.mxu0 %v949_v30  ;;  %694 = vmatpush2.bf16.msra.mxu1 %v1017_v47  ;;  %v1062_v30 = vld [vmem:[%s1411_s1 + $0x1c4] ss:$24 sps:$4 sm:$0xff]  }
  0x29   :  { %695 = vmatprep.subr.bf16.mxu1 %v1021_v48 }
  0x2b   :  { %655 = vmatpush2.bf16.msra.mxu0 %v951_v33  ;;  %v1063_v33 = vld [vmem:[%s1411_s1 + $0x190] ss:$24 sps:$4 sm:$0xff]  }
  0x2c   :  { %656 = vmatprep.subr.bf16.mxu0 %v952_v34  ;;  %696 = vmatpush2.bf16.msra.mxu1 %v1023_v51  ;;  %v114_v34 = vlaneseq }
  0x2d   :  { %697 = vmatprep.subr.bf16.mxu1 %v1027_v52 }
  0x2e   :  { %v115_v35 = vshrl.u32 %v114_v34, 7 }
  0x2f   :  { %657 = vmatpush2.bf16.msra.mxu0 %v954_v37  ;;  %v112_v37 = vld [vmem:[%s1413_s2] sm:$0x3f] }
  0x30   :  { %658 = vmatprep.subr.bf16.mxu0 %v955_v38  ;;  %698 = vmatpush2.bf16.msra.mxu1 %v1029_v55  ;;  %v132_v36 = vsub.s32 4, %v115_v35  ;;  %v136_v39 = vsub.s32 5, %v115_v35  ;;  %v124_v55 = vsub.s32 2, %v115_v35 }
  0x31   :  { %699 = vmatprep.subr.bf16.mxu1 %v1033_v56  ;;  %v128_v56 = vsub.s32 3, %v115_v35 }
  0x32   :  { %v133_v38 = vrot.slane %v112_v37, %v132_v36  ;;  %v137_v40 = vrot.slane %v112_v37, %v136_v39 }
  0x33   :  { %659 = vmatpush2.bf16.msra.mxu0 %v957_v41  ;;  %v116_v41 = vsub.s32 0, %v115_v35 }
  0x34   :  { %660 = vmatprep.subr.bf16.mxu0 %v958_v42  ;;  %700 = vmatpush2.bf16.msra.mxu1 %v1035_v60  ;;  %v120_v42 = vsub.s32 1, %v115_v35 }
  0x35   :  { %701 = vmatprep.subr.bf16.mxu1 %v1039_v61  ;;  %v117_v43 = vrot.slane %v112_v37, %v116_v41 }
  0x36   :  { %v121_v44 = vrot.slane %v112_v37, %v120_v42 }
  0x37   :  { %661 = vmatpush2.bf16.msra.mxu0 %v960_v45 }
  0x38   :  { %662 = vmatprep.subr.bf16.mxu0 %v961_v46  ;;  %702 = vmatpush2.bf16.msra.mxu1 %v1041_v63 }
  0x39   :  { %703 = vmatprep.subr.bf16.mxu1 %v1045_v1 }
  0x3b   :  { %663 = vmatpush2.bf16.msra.mxu0 %v963_v49 }
  0x3c   :  { %664 = vmatprep.subr.bf16.mxu0 %v967_v50  ;;  %704 = vmatpush2.bf16.msra.mxu1 %v1047_v3 }
  0x3d   :  { %705 = vmatprep.subr.bf16.mxu1 %v1051_v5 }
  0x3f   :  { %665 = vmatpush2.bf16.msra.mxu0 %v969_v53 }
  0x40   :  { %720 = vmatprep.subr.bf16.mxu0 %v978_v54  ;;  %706 = vmatpush2.bf16.msra.mxu1 %v1053_v7 }
  0x41   :  { %707 = vmatprep.subr.bf16.mxu1 %v1057_v9 }
  0x42   :  { %667 = vmatmul.mubr.bf16.vlgmr.msra.gmra.mxu0 %v1264_v57 }
  0x43   :  { %721 = vmatpush1.bf16.msra.mxu0 %v976_v58  ;;  %752 = vmatprep.mubr.bf16.mxu0 %v1143_v18  ;;  %v1026_v18 = vld [vmem:[%s1411_s1 + $0x2e4] ss:$24 sps:$4 sm:$0xff]   ;;  %v129_v58 = vrot.slane %v112_v37, %v128_v56 }
  0x44   :  { %722 = vmatprep.subr.bf16.mxu0 %v984_v59  ;;  %708 = vmatpush2.bf16.msra.mxu1 %v1059_v11 }
  0x47   :  { %723 = vmatpush1.bf16.msra.mxu0 %v982_v62  ;;  %710 = vmatmul.mubr.bf16.vlgmr.msra.gmra.mxu1 %v1264_v57 }
  0x48   :  { %724 = vmatprep.subr.bf16.mxu0 %v990_v0 }
  0x4b   :  { %725 = vmatpush1.bf16.msra.mxu0 %v988_v2 }
  0x4c   :  { %726 = vmatprep.subr.bf16.mxu0 %v996_v4 }
  0x4f   :  { %727 = vmatpush1.bf16.msra.mxu0 %v994_v6 }
  0x50   :  { %728 = vmatprep.subr.bf16.mxu0 %v1002_v8 }
  0x53   :  { %729 = vmatpush1.bf16.msra.mxu0 %v1000_v10 }
  0x54   :  { %730 = vmatprep.subr.bf16.mxu0 %v1008_v12 }
  0x57   :  { %731 = vmatpush1.bf16.msra.mxu0 %v1006_v13 }
  0x58   :  { %732 = vmatprep.subr.bf16.mxu0 %v1014_v14 }
  0x5b   :  { %733 = vmatpush1.bf16.msra.mxu0 %v1012_v15 }
  0x5c   :  { %734 = vmatprep.subr.bf16.mxu0 %v1020_v16 }
  0x5f   :  { %735 = vmatpush1.bf16.msra.mxu0 %v1018_v17 }
  0x60   :  { %736 = vmatprep.subr.bf16.mxu0 %v1026_v18 }
  0x63   :  { %737 = vmatpush2.bf16.msra.mxu0 %v1024_v19 }
  0x64   :  { %738 = vmatprep.subr.bf16.mxu0 %v1032_v20 }
  0x67   :  { %739 = vmatpush2.bf16.msra.mxu0 %v1030_v21 }
  0x68   :  { %740 = vmatprep.subr.bf16.mxu0 %v1038_v22 }
  0x6b   :  { %741 = vmatpush2.bf16.msra.mxu0 %v1036_v23 }
  0x6c   :  { %742 = vmatprep.subr.bf16.mxu0 %v1044_v24 }
  0x6f   :  { %743 = vmatpush2.bf16.msra.mxu0 %v1042_v25 }
  0x70   :  { %744 = vmatprep.subr.bf16.mxu0 %v1050_v26 }
  0x73   :  { %745 = vmatpush2.bf16.msra.mxu0 %v1048_v27 }
  0x74   :  { %746 = vmatprep.subr.bf16.mxu0 %v1056_v28 }
  0x77   :  { %747 = vmatpush2.bf16.msra.mxu0 %v1054_v29 }
  0x78   :  { %748 = vmatprep.subr.bf16.mxu0 %v1062_v30 }
  0x7b   :  { %749 = vmatpush2.bf16.msra.mxu0 %v1060_v31 }
  0x7c   :  { %750 = vmatprep.subr.bf16.mxu0 %v1065_v32 }
  0x7f   :  { %751 = vmatpush2.bf16.msra.mxu0 %v1063_v33 }
  0x82   :  { %753 = vmatmul.mubr.bf16.vlgmr.msra.gmra.mxu0 %v1264_v57  ;;  %v125_v57 = vrot.slane %v112_v37, %v124_v55 }
 0x102   :  { %v668_v45 = vpop.f32.mrf.mxu0 }
 0x103   :  { %v669_v46 = vadd.f32 %v668_v45, %v117_v43 }
 0x104   :  { %v670_v47 = vpop.f32.mrf.mxu0 }
 0x105   :  { %v671_v48 = vadd.f32 %v670_v47, %v121_v44 }
 0x106   :  { %v672_v49 = vpop.f32.mrf.mxu0 }
 0x107   :  { %v913_v50 = vpack.c.bf16 %v671_v48, %v669_v46  ;;  %v673_v52 = vadd.f32 %v672_v49, %v117_v43  ;;  %v711_v59 = vpop.f32.mrf.mxu1 }
 0x108   :  { %v674_v51 = vpop.f32.mrf.mxu0  ;;  %v712_v60 = vadd.f32 %v711_v59, %v125_v57 }
 0x109   :  { %799 = vst [vmem:[%s1414_s3] sm:$0xff] %v913_v50  ;;  %v675_v53 = vadd.f32 %v674_v51, %v121_v44  ;;  %v713_v61 = vpop.f32.mrf.mxu1 }
 0x10a   :  { %v714_v62 = vadd.f32 %v713_v61, %v129_v58 }
 0x10b   :  { %v916_v54 = vpack.c.bf16 %v675_v53, %v673_v52  ;;  %v715_v63 = vpop.f32.mrf.mxu1 }
 0x10c   :  { %v914_v0 = vpack.c.bf16 %v714_v62, %v712_v60  ;;  %v716_v1 = vadd.f32 %v715_v63, %v125_v57 }
 0x10d   :  { %802 = vst [vmem:[%s1414_s3 + $0x18] sm:$0xff] %v916_v54  ;;  %v717_v2 = vpop.f32.mrf.mxu1 }
 0x10e   :  { %800 = vst [vmem:[%s1414_s3 + $0x8] sm:$0xff] %v914_v0  ;;  %v718_v3 = vadd.f32 %v717_v2, %v129_v58 }
 0x110   :  { %v917_v4 = vpack.c.bf16 %v718_v3, %v716_v1 }
 0x112   :  { %803 = vst [vmem:[%s1414_s3 + $0x20] sm:$0xff] %v917_v4 }
 0x142   :  { %v754_v5 = vpop.f32.mrf.mxu0 }
 0x143   :  { %v755_v7 = vadd.f32 %v754_v5, %v133_v38 }
 0x144   :  { %v756_v6 = vpop.f32.mrf.mxu0 }
 0x145   :  { %v757_v8 = vadd.f32 %v756_v6, %v137_v40 }
 0x146   :  { %v758_v9 = vpop.f32.mrf.mxu0 }
 0x147   :  { %v915_v10 = vpack.c.bf16 %v757_v8, %v755_v7  ;;  %v759_v12 = vadd.f32 %v758_v9, %v133_v38 }
 0x148   :  { %v760_v11 = vpop.f32.mrf.mxu0 }
 0x149   :  { %801 = vst [vmem:[%s1414_s3 + $0x10] sm:$0xff] %v915_v10  ;;  %v761_v13 = vadd.f32 %v760_v11, %v137_v40 }
 0x14b   :  { %v918_v14 = vpack.c.bf16 %v761_v13, %v759_v12 }
 0x14d   :  { %804 = vst [vmem:[%s1414_s3 + $0x28] sm:$0xff] %v918_v14 }

// kernel: transformer_model_forward.43
= control target key start
LH: loop header
LB: loop body
LE: loop exit
PB: predicated region body
PF: predicated region fallthrough
CT: control target
= control target key end

     0   :  { %s956_s1 = inlined_call_operand.vmem [shape: bf16[256,512], index: 1, kind: input, shape index: {}]   ;;  %s957_s0 = inlined_call_operand.vmem [shape: bf16[16,256], index: 0, kind: input, shape index: {}]   ;;  %s958_s2 = inlined_call_operand.vmem [shape: f32[1,512], index: 2, kind: input, shape index: {}]   ;;  %s959_s3 = inlined_call_operand.vmem [shape: bf16[16,512], index: 3, kind: output, shape index: {}]  }
   0x1   :  { %v624_v0 = vld [vmem:[%s956_s1 + $0xe4] ss:$16 sps:$4 sm:$0xff]   ;;  %v626_v1 = vld [vmem:[%s956_s1 + $0xec] ss:$16 sps:$4 sm:$0xff]   ;;  %v628_v2 = vld [vmem:[%s956_s1 + $0xe0] ss:$16 sps:$4 sm:$0xff]  }
   0x2   :  { %432 = vmatprep.subr.bf16.mxu0 %v624_v0  ;;  %v629_v3 = vld [vmem:[%s956_s1 + $0xe8] ss:$16 sps:$4 sm:$0xff]   ;;  %475 = vmatprep.subr.bf16.mxu1 %v626_v1  ;;  %v630_v4 = vld [vmem:[%s956_s1 + $0xc4] ss:$16 sps:$4 sm:$0xff]   ;;  %v632_v5 = vld [vmem:[%s956_s1 + $0xcc] ss:$16 sps:$4 sm:$0xff]  }
   0x3   :  { %433 = vmatpush1.bf16.msra.mxu0 %v628_v2  ;;  %476 = vmatpush1.bf16.msra.mxu1 %v629_v3  ;;  %v634_v6 = vld [vmem:[%s956_s1 + $0xc0] ss:$16 sps:$4 sm:$0xff]   ;;  %v635_v7 = vld [vmem:[%s956_s1 + $0xc8] ss:$16 sps:$4 sm:$0xff]   ;;  %v636_v8 = vld [vmem:[%s956_s1 + $0xa4] ss:$16 sps:$4 sm:$0xff]   ;;  %v82_v2 = vlaneseq }
   0x4   :  { %434 = vmatprep.subr.bf16.mxu0 %v630_v4  ;;  %477 = vmatprep.subr.bf16.mxu1 %v632_v5  ;;  %v638_v9 = vld [vmem:[%s956_s1 + $0xac] ss:$16 sps:$4 sm:$0xff]   ;;  %v640_v10 = vld [vmem:[%s956_s1 + $0xa0] ss:$16 sps:$4 sm:$0xff]   ;;  %v641_v11 = vld [vmem:[%s956_s1 + $0xa8] ss:$16 sps:$4 sm:$0xff]  }
   0x5   :  { %v642_v12 = vld [vmem:[%s956_s1 + $0x84] ss:$16 sps:$4 sm:$0xff]   ;;  %v644_v13 = vld [vmem:[%s956_s1 + $0x8c] ss:$16 sps:$4 sm:$0xff]   ;;  %v646_v14 = vld [vmem:[%s956_s1 + $0x80] ss:$16 sps:$4 sm:$0xff]  }
   0x6   :  { %v647_v15 = vld [vmem:[%s956_s1 + $0x88] ss:$16 sps:$4 sm:$0xff]   ;;  %v648_v16 = vld [vmem:[%s956_s1 + $0x64] ss:$16 sps:$4 sm:$0xff]   ;;  %v650_v17 = vld [vmem:[%s956_s1 + $0x6c] ss:$16 sps:$4 sm:$0xff]  }
   0x7   :  { %435 = vmatpush1.bf16.msra.mxu0 %v634_v6  ;;  %478 = vmatpush1.bf16.msra.mxu1 %v635_v7  ;;  %v652_v18 = vld [vmem:[%s956_s1 + $0x60] ss:$16 sps:$4 sm:$0xff]   ;;  %v653_v19 = vld [vmem:[%s956_s1 + $0x68] ss:$16 sps:$4 sm:$0xff]   ;;  %v654_v20 = vld [vmem:[%s956_s1 + $0x44] ss:$16 sps:$4 sm:$0xff]  }
   0x8   :  { %436 = vmatprep.subr.bf16.mxu0 %v636_v8  ;;  %479 = vmatprep.subr.bf16.mxu1 %v638_v9  ;;  %v656_v21 = vld [vmem:[%s956_s1 + $0x4c] ss:$16 sps:$4 sm:$0xff]   ;;  %v658_v22 = vld [vmem:[%s956_s1 + $0x40] ss:$16 sps:$4 sm:$0xff]   ;;  %v659_v23 = vld [vmem:[%s956_s1 + $0x48] ss:$16 sps:$4 sm:$0xff]  }
   0x9   :  { %v660_v24 = vld [vmem:[%s956_s1 + $0x24] ss:$16 sps:$4 sm:$0xff]   ;;  %v662_v25 = vld [vmem:[%s956_s1 + $0x2c] ss:$16 sps:$4 sm:$0xff]   ;;  %v664_v26 = vld [vmem:[%s956_s1 + $0x20] ss:$16 sps:$4 sm:$0xff]  }
   0xa   :  { %v665_v27 = vld [vmem:[%s956_s1 + $0x28] ss:$16 sps:$4 sm:$0xff]   ;;  %v666_v28 = vld [vmem:[%s956_s1 + $0x4] ss:$16 sps:$4 sm:$0xff]   ;;  %v668_v29 = vld [vmem:[%s956_s1 + $0xc] ss:$16 sps:$4 sm:$0xff]  }
   0xb   :  { %437 = vmatpush1.bf16.msra.mxu0 %v640_v10  ;;  %480 = vmatpush1.bf16.msra.mxu1 %v641_v11  ;;  %v670_v30 = vld [vmem:[%s956_s1] ss:$16 sps:$4 sm:$0xff]   ;;  %v671_v31 = vld [vmem:[%s956_s1 + $0x8] ss:$16 sps:$4 sm:$0xff]   ;;  %v672_v32 = vld [vmem:[%s956_s1 + $0x1e4] ss:$16 sps:$4 sm:$0xff]  }
   0xc   :  { %438 = vmatprep.subr.bf16.mxu0 %v642_v12  ;;  %481 = vmatprep.subr.bf16.mxu1 %v644_v13  ;;  %v674_v33 = vld [vmem:[%s956_s1 + $0x1ec] ss:$16 sps:$4 sm:$0xff]   ;;  %v676_v34 = vld [vmem:[%s956_s1 + $0x1e0] ss:$16 sps:$4 sm:$0xff]   ;;  %v677_v35 = vld [vmem:[%s956_s1 + $0x1e8] ss:$16 sps:$4 sm:$0xff]  }
   0xd   :  { %v678_v36 = vld [vmem:[%s956_s1 + $0x1c4] ss:$16 sps:$4 sm:$0xff]   ;;  %v680_v37 = vld [vmem:[%s956_s1 + $0x1cc] ss:$16 sps:$4 sm:$0xff]   ;;  %v682_v38 = vld [vmem:[%s956_s1 + $0x1c0] ss:$16 sps:$4 sm:$0xff]  }
   0xe   :  { %v683_v39 = vld [vmem:[%s956_s1 + $0x1c8] ss:$16 sps:$4 sm:$0xff]   ;;  %v684_v40 = vld [vmem:[%s956_s1 + $0x1a4] ss:$16 sps:$4 sm:$0xff]   ;;  %v686_v41 = vld [vmem:[%s956_s1 + $0x1ac] ss:$16 sps:$4 sm:$0xff]  }
   0xf   :  { %439 = vmatpush1.bf16.msra.mxu0 %v646_v14  ;;  %482 = vmatpush1.bf16.msra.mxu1 %v647_v15  ;;  %v688_v42 = vld [vmem:[%s956_s1 + $0x1a0] ss:$16 sps:$4 sm:$0xff]   ;;  %v689_v43 = vld [vmem:[%s956_s1 + $0x1a8] ss:$16 sps:$4 sm:$0xff]   ;;  %v690_v44 = vld [vmem:[%s956_s1 + $0x184] ss:$16 sps:$4 sm:$0xff]  }
  0x10   :  { %440 = vmatprep.subr.bf16.mxu0 %v648_v16  ;;  %483 = vmatprep.subr.bf16.mxu1 %v650_v17  ;;  %v692_v45 = vld [vmem:[%s956_s1 + $0x18c] ss:$16 sps:$4 sm:$0xff]   ;;  %v694_v47 = vld [vmem:[%s956_s1 + $0x180] ss:$16 sps:$4 sm:$0xff]   ;;  %v695_v48 = vld [vmem:[%s956_s1 + $0x188] ss:$16 sps:$4 sm:$0xff]  }
  0x11   :  { %v722_v46 = vld [vmem:[%s957_s0 + $0x4] ss:$8 sps:$4 sm:$0xff]   ;;  %v700_v51 = vld [vmem:[%s956_s1 + $0x160] ss:$16 sps:$4 sm:$0xff]   ;;  %v701_v52 = vld [vmem:[%s956_s1 + $0x168] ss:$16 sps:$4 sm:$0xff]  }
  0x12   :  { %v696_v49 = vld [vmem:[%s956_s1 + $0x164] ss:$16 sps:$4 sm:$0xff]   ;;  %v698_v50 = vld [vmem:[%s956_s1 + $0x16c] ss:$16 sps:$4 sm:$0xff]   ;;  %464 = vmatprep.mubr.bf16.mxu0 %v722_v46  ;;  %507 = vmatprep.mubr.bf16.mxu1 %v722_v46  ;;  %v706_v55 = vld [vmem:[%s956_s1 + $0x140] ss:$16 sps:$4 sm:$0xff]  }
  0x13   :  { %441 = vmatpush1.bf16.msra.mxu0 %v652_v18  ;;  %484 = vmatpush1.bf16.msra.mxu1 %v653_v19  ;;  %v702_v53 = vld [vmem:[%s956_s1 + $0x144] ss:$16 sps:$4 sm:$0xff]   ;;  %v704_v54 = vld [vmem:[%s956_s1 + $0x14c] ss:$16 sps:$4 sm:$0xff]   ;;  %v707_v56 = vld [vmem:[%s956_s1 + $0x148] ss:$16 sps:$4 sm:$0xff]  }
  0x14   :  { %442 = vmatprep.subr.bf16.mxu0 %v654_v20  ;;  %485 = vmatprep.subr.bf16.mxu1 %v656_v21  ;;  %v708_v57 = vld [vmem:[%s956_s1 + $0x124] ss:$16 sps:$4 sm:$0xff]   ;;  %v710_v58 = vld [vmem:[%s956_s1 + $0x12c] ss:$16 sps:$4 sm:$0xff]   ;;  %v712_v59 = vld [vmem:[%s956_s1 + $0x120] ss:$16 sps:$4 sm:$0xff]  }
  0x15   :  { %v713_v60 = vld [vmem:[%s956_s1 + $0x128] ss:$16 sps:$4 sm:$0xff]   ;;  %v714_v61 = vld [vmem:[%s956_s1 + $0x104] ss:$16 sps:$4 sm:$0xff]   ;;  %v716_v62 = vld [vmem:[%s956_s1 + $0x10c] ss:$16 sps:$4 sm:$0xff]  }
  0x16   :  { %v718_v63 = vld [vmem:[%s956_s1 + $0x100] ss:$16 sps:$4 sm:$0xff]   ;;  %v719_v0 = vld [vmem:[%s956_s1 + $0x108] ss:$16 sps:$4 sm:$0xff]   ;;  %v83_v3 = vshrl.u32 %v82_v2, 7 }
  0x17   :  { %443 = vmatpush1.bf16.msra.mxu0 %v658_v22  ;;  %486 = vmatpush1.bf16.msra.mxu1 %v659_v23  ;;  %v720_v1 = vld [vmem:[%s957_s0] ss:$8 sps:$4 sm:$0xff]  }
  0x18   :  { %444 = vmatprep.subr.bf16.mxu0 %v660_v24  ;;  %487 = vmatprep.subr.bf16.mxu1 %v662_v25  ;;  %v84_v4 = vsub.s32 0, %v83_v3  ;;  %v92_v5 = vsub.s32 2, %v83_v3  ;;  %v88_v6 = vsub.s32 1, %v83_v3  ;;  %v96_v7 = vsub.s32 3, %v83_v3  ;;  %v80_v8 = vld [vmem:[%s958_s2] sm:$0xf] }
  0x1a   :  { %v85_v9 = vrot.slane %v80_v8, %v84_v4  ;;  %v93_v10 = vrot.slane %v80_v8, %v92_v5  ;;  %v89_v11 = vrot.slane %v80_v8, %v88_v6  ;;  %v97_v12 = vrot.slane %v80_v8, %v96_v7 }
  0x1b   :  { %445 = vmatpush1.bf16.msra.mxu0 %v664_v26  ;;  %488 = vmatpush1.bf16.msra.mxu1 %v665_v27 }
  0x1c   :  { %446 = vmatprep.subr.bf16.mxu0 %v666_v28  ;;  %489 = vmatprep.subr.bf16.mxu1 %v668_v29 }
  0x1f   :  { %447 = vmatpush1.bf16.msra.mxu0 %v670_v30  ;;  %490 = vmatpush1.bf16.msra.mxu1 %v671_v31 }
  0x20   :  { %448 = vmatprep.subr.bf16.mxu0 %v672_v32  ;;  %491 = vmatprep.subr.bf16.mxu1 %v674_v33 }
  0x23   :  { %449 = vmatpush2.bf16.msra.mxu0 %v676_v34  ;;  %492 = vmatpush2.bf16.msra.mxu1 %v677_v35 }
  0x24   :  { %450 = vmatprep.subr.bf16.mxu0 %v678_v36  ;;  %493 = vmatprep.subr.bf16.mxu1 %v680_v37 }
  0x27   :  { %451 = vmatpush2.bf16.msra.mxu0 %v682_v38  ;;  %494 = vmatpush2.bf16.msra.mxu1 %v683_v39 }
  0x28   :  { %452 = vmatprep.subr.bf16.mxu0 %v684_v40  ;;  %495 = vmatprep.subr.bf16.mxu1 %v686_v41 }
  0x2b   :  { %453 = vmatpush2.bf16.msra.mxu0 %v688_v42  ;;  %496 = vmatpush2.bf16.msra.mxu1 %v689_v43 }
  0x2c   :  { %454 = vmatprep.subr.bf16.mxu0 %v690_v44  ;;  %497 = vmatprep.subr.bf16.mxu1 %v692_v45 }
  0x2f   :  { %455 = vmatpush2.bf16.msra.mxu0 %v694_v47  ;;  %498 = vmatpush2.bf16.msra.mxu1 %v695_v48 }
  0x30   :  { %456 = vmatprep.subr.bf16.mxu0 %v696_v49  ;;  %499 = vmatprep.subr.bf16.mxu1 %v698_v50 }
  0x33   :  { %457 = vmatpush2.bf16.msra.mxu0 %v700_v51  ;;  %500 = vmatpush2.bf16.msra.mxu1 %v701_v52 }
  0x34   :  { %458 = vmatprep.subr.bf16.mxu0 %v702_v53  ;;  %501 = vmatprep.subr.bf16.mxu1 %v704_v54 }
  0x37   :  { %459 = vmatpush2.bf16.msra.mxu0 %v706_v55  ;;  %502 = vmatpush2.bf16.msra.mxu1 %v707_v56 }
  0x38   :  { %460 = vmatprep.subr.bf16.mxu0 %v708_v57  ;;  %503 = vmatprep.subr.bf16.mxu1 %v710_v58 }
  0x3b   :  { %461 = vmatpush2.bf16.msra.mxu0 %v712_v59  ;;  %504 = vmatpush2.bf16.msra.mxu1 %v713_v60 }
  0x3c   :  { %462 = vmatprep.subr.bf16.mxu0 %v714_v61  ;;  %505 = vmatprep.subr.bf16.mxu1 %v716_v62 }
  0x3f   :  { %463 = vmatpush2.bf16.msra.mxu0 %v718_v63  ;;  %506 = vmatpush2.bf16.msra.mxu1 %v719_v0 }
  0x42   :  { %465 = vmatmul.mubr.bf16.vlgmr.msra.gmra.mxu0 %v720_v1  ;;  %508 = vmatmul.mubr.bf16.vlgmr.msra.gmra.mxu1 %v720_v1 }
 0x102   :  { %v466_v13 = vpop.f32.mrf.mxu0  ;;  %v509_v14 = vpop.f32.mrf.mxu1 }
 0x103   :  { %v467_v17 = vadd.f32 %v466_v13, %v85_v9  ;;  %v510_v18 = vadd.f32 %v509_v14, %v93_v10 }
 0x104   :  { %v468_v15 = vpop.f32.mrf.mxu0  ;;  %v511_v16 = vpop.f32.mrf.mxu1 }
 0x105   :  { %v469_v19 = vadd.f32 %v468_v15, %v89_v11  ;;  %v512_v20 = vadd.f32 %v511_v16, %v97_v12 }
 0x106   :  { %v470_v21 = vpop.f32.mrf.mxu0  ;;  %v513_v22 = vpop.f32.mrf.mxu1 }
 0x107   :  { %v620_v23 = vpack.c.bf16 %v469_v19, %v467_v17  ;;  %v621_v24 = vpack.c.bf16 %v512_v20, %v510_v18  ;;  %v471_v27 = vadd.f32 %v470_v21, %v85_v9  ;;  %v514_v28 = vadd.f32 %v513_v22, %v93_v10 }
 0x108   :  { %v472_v25 = vpop.f32.mrf.mxu0  ;;  %v515_v26 = vpop.f32.mrf.mxu1 }
 0x109   :  { %542 = vst [vmem:[%s959_s3] sm:$0xff] %v620_v23  ;;  %543 = vst [vmem:[%s959_s3 + $0x8] sm:$0xff] %v621_v24  ;;  %v473_v29 = vadd.f32 %v472_v25, %v89_v11  ;;  %v516_v30 = vadd.f32 %v515_v26, %v97_v12 }
 0x10b   :  { %v622_v31 = vpack.c.bf16 %v473_v29, %v471_v27  ;;  %v623_v32 = vpack.c.bf16 %v516_v30, %v514_v28 }
 0x10d   :  { %544 = vst [vmem:[%s959_s3 + $0x10] sm:$0xff] %v622_v31  ;;  %545 = vst [vmem:[%s959_s3 + $0x18] sm:$0xff] %v623_v32 }

// kernel: transformer_model_forward.44
= control target key start
LH: loop header
LB: loop body
LE: loop exit
PB: predicated region body
PF: predicated region fallthrough
CT: control target
= control target key end

     0   :  { %s856_s12 = smov 0   ;;  %s858_s13 = smov 0   ;;  %s964_s0 = inlined_call_operand.vmem [shape: bf16[2,8,256], index: 0, kind: input, shape index: {}]   ;;  %s965_s1 = inlined_call_operand.vmem [shape: bf16[2,8,512], index: 1, kind: input, shape index: {}, may-alias: {1,2}]   ;;  %s966_s2 = inlined_call_operand.vmem [shape: bf16[2,8,512], index: 2, kind: input, shape index: {}, may-alias: {1,2}]   ;;  %s967_s3 = inlined_call_operand.vmem [shape: bf16[2,8,256], index: 3, kind: output, shape index: {}]  }
   0x1   :  { %s860_s14 = smov 0   ;;  %s862_s15 = smov 0  }
   0x2   :  { %s864_s16 = smov 0  }
   0x3 LB: > { %s28_s17 = sadd.s32 1, %s823_s14  ;;  %s32_s18 = sadd.s32 1, %s827_s15  ;;  %s831_s16 = sphi %s864_s16, %s13_s16   ;;  %s827_s15 = sphi %s862_s15, %s971_s15   ;;  %s823_s14 = sphi %s860_s14, %s970_s14   ;;  %s819_s13 = sphi %s858_s13, %s969_s13   ;;  %s815_s12 = sphi %s856_s12, %s968_s12  }
   0x4   : > { %p30_p0 = scmp.ge.s32.totalorder %s28_s17, 2  ;;  %p691_p1 = scmp.ge.s32.totalorder %s831_s16, 1 }
   0x5   : > { %p205_p2 = scmp.lt.s32.totalorder %s831_s16, 5 }
   0x6   : > { %s973_s17 = smov (%p30_p0, %s28_s17), 0  ;;  %s975_s18 = smov (!%p30_p0, %s32_s18), %s827_s15 }
   0x7   : > { %p206_p3 = pnand %p691_p1, %p205_p2  ;;  %p34_p4 = scmp.ge.s32.totalorder %s975_s18, 2 }
   0x8   : > { %p260_p5 = scmp.lt.s32.totalorder (!%p206_p3), %s819_s13, 1  ;;  %p264_p6 = scmp.lt.s32.totalorder (!%p206_p3), %s815_s12, 1 }
   0x9   : > { %s977_s18 = smov (%p34_p4, %s975_s18), 0  ;;  %209 = sbr.rel (%p206_p3) target bundleno = 1059 (0x423), region = 32 }
   0xa   : > { %p274_p7 = scmp.lt.s32.totalorder (!%p206_p3), %s815_s12, 3  ;;  %s835_s6 = smov (!%p206_p3), 64  }
   0xb   : > { %s280_s7 = sadd.s32 (!%p206_p3), 2, %s815_s12 }
   0xc   : > { %p283_p8 = scmp.lt.s32.totalorder (!%p206_p3), %s280_s7, 3 }
   0xe   : > { %v833_v0 = vmov 0.0   ;;  %vm834_vm0 = vmmov 0   ;;  %s979_s13 = smov (!%p260_p5, %s819_s13), 1  ;;  %vm309_vm1 = vcmask 523264   ;;  %vm356_vm2 = vcmask 64512   ;;  %s981_s7 = smov (!%p283_p8, %s280_s7), 3 }
   0xf   : > { %716 = vmatprep.subr.bf16.mxu0 %v833_v0  ;;  %718 = vmatprep.mubr.msk.bf16.mxu0 %vm834_vm0, %v833_v0  ;;  %s265_s19 = scalar_select %p264_p6, %s815_s12, 1  ;;  %vm370_vm3 = vcmask 1043456  }
  0x10   : > { %722 = vmatprep.subr.bf16.mxu1 %v833_v0  ;;  %724 = vmatprep.mubr.msk.bf16.mxu1 %vm834_vm0, %v833_v0  ;;  %s692_s20 = sshll.u32 %s979_s13, 1  ;;  %s694_s23 = sshll.u32 %s979_s13, 2 }
  0x11   : > { %s900_s21 = sadd.s32 %s692_s20, %s265_s19  ;;  %s286_s8 = sadd.s32 %s694_s23, %s981_s7 }
  0x12   : > { %s693_s22 = sshll.u32 %s900_s21, 2  ;;  %s697_s9 = sshll.u32 %s286_s8, 2 }
  0x13   : > { %s275_s24 = scalar_select %p274_p7, %s815_s12, 3 }
  0x14   : > { %s271_s27 = scalar_lea.vmem %s964_s0, %s693_s22  ;;  %s288_s19 = scalar_lea.vmem %s966_s2, %s697_s9 }
  0x15   : > { %s277_s28 = sadd.s32 %s694_s23, %s275_s24  ;;  %v303_v1 = vld [vmem:[%s271_s27] sm:$0xf]  ;;  %s301_s20 = scalar_lea.vmem %s967_s3, %s693_s22 }
  0x16   : > { %s695_s29 = sshll.u32 %s277_s28, 2  ;;  %v304_v2 = vunpack.c.l.bf16 %v303_v1  ;;  %v307_v13 = vld [vmem:[%s288_s19] sm:$0xf] }
  0x17   : > { %s279_s5 = scalar_lea.vmem %s965_s1, %s695_s29  ;;  %v372_v14 = vsel %vm370_vm3, %v307_v13, 0  ;;  %v704_v15 = vcombine.low %v307_v13, %v307_v13 }
  0x18   : > { %v306_v3 = vld [vmem:[%s279_s5] sm:$0xf]  ;;  %v305_v5 = vmul.f32 0.125, %v304_v2  ;;  %723 = vmatpush3.bf16.msra.mxu1 %v372_v14 }
  0x19   : > { %v314_v4 = vsel %vm309_vm1, %v306_v3, 0  ;;  %v702_v12 = vcombine.low %v306_v3, %v306_v3  ;;  %728 = vmatprep.subr.bf16.mxu1 %v833_v0 }
  0x1a   : > { %717 = vmatpush3.bf16.xpose.msra.mxu0 %v314_v4  ;;  %v308_v6 = vpack.c.bf16 %v305_v5, %v305_v5 }
  0x1b   : > { %734 = vmatprep.subr.bf16.mxu0 %v833_v0 }
  0x1c   : > { %417 = vrot.lane.b32.xlu1 %v308_v6, %s835_s6 }
  0x21   : > { %719 = vmatmul.mubr.msk.bf16.vlgmr.msra.gmra.mxu0 %vm309_vm1, %v308_v6 }
  0x22   : > { %736 = vmatprep.mubr.msk.bf16.mxu0 %vm834_vm0, %v833_v0 }
  0x8e   : > { %v418_v23 = vpop.permute.xlu1 %417 }
  0xe1   : > { %v350_v7 = vpop.f32.mrf.mxu0 }
  0xe2   : > { %v357_v8 = vsel %vm356_vm2, %v350_v7, -inf }
  0xe3   : > { %358 = vmax.xlane.f32.xlu0 %v357_v8  ;;  %v720_v9 = vpop.f32.mrf.mxu0 }
  0xe5   : > { %v353_v10 = vpop.f32.mrf.mxu0 }
  0xe7   : > { %v721_v11 = vpop.f32.mrf.mxu0 }
  0xf9   : > { %422 = vrot.lane.b32.xlu0 %v702_v12, %s835_s6 }
  0xfd   : > { %483 = vrot.lane.b32.xlu0 %v704_v15, %s835_s6 }
 0x16c   : > { %v359_v16 = vpop.xlane.xlu0 %358 }
 0x16d   : > { %v360_v17 = vsub.f32 %v350_v7, %v359_v16 }
 0x16f   : > { %v361_v18 = vmul.f32 1.442695, %v360_v17 }
 0x170   : > { %v423_v19 = vpop.permute.xlu0 %422 }
 0x171   : > { %785 = vpow2.f32 %v361_v18  ;;  %v428_v21 = vsel %vm309_vm1, %v423_v19, 0 }
 0x174   : > { %v484_v34 = vpop.permute.xlu0 %483 }
 0x175   : > { %v489_v35 = vsel %vm370_vm3, %v484_v34, 0 }
 0x176   : > { %735 = vmatpush3.bf16.msra.mxu0 %v489_v35 }
 0x17e   : > { %v786_v20 = vpop.eup %785 }
 0x17f   : > { %v366_v22 = vpack.c.bf16 %v786_v20, %v786_v20  ;;  %v363_v32 = vsel %vm356_vm2, %v786_v20, 0.0 }
 0x181   : > { %725 = vmatmul.mubr.msk.bf16.vlgmr.msra.gmra.mxu1 %vm356_vm2, %v366_v22 }
 0x182   : > { %729 = vmatpush3.bf16.xpose.msra.mxu1 %v428_v21  ;;  %730 = vmatprep.mubr.msk.bf16.mxu1 %vm834_vm0, %v833_v0 }
 0x189   : > { %731 = vmatmul.mubr.msk.bf16.vlgmr.msra.gmra.mxu1 %vm309_vm1, %v418_v23 }
 0x241   : > { %v408_v24 = vpop.f32.mrf.mxu1 }
 0x243   : > { %v726_v25 = vpop.f32.mrf.mxu1 }
 0x245   : > { %v411_v26 = vpop.f32.mrf.mxu1 }
 0x247   : > { %v727_v27 = vpop.f32.mrf.mxu1 }
 0x249   : > { %v464_v28 = vpop.f32.mrf.mxu1 }
 0x24a   : > { %v470_v29 = vsel %vm356_vm2, %v464_v28, -inf }
 0x24b   : > { %471 = vmax.xlane.f32.xlu1 %v470_v29  ;;  %v732_v30 = vpop.f32.mrf.mxu1 }
 0x24d   : > { %v467_v31 = vpop.f32.mrf.mxu1 }
 0x24f   : > { %364 = vadd.xlane.f32.xlu1 %v363_v32  ;;  %v733_v33 = vpop.f32.mrf.mxu1 }
 0x2d4   : > { %v472_v36 = vpop.xlane.xlu1 %471 }
 0x2d5   : > { %v473_v37 = vsub.f32 %v464_v28, %v472_v36 }
 0x2d7   : > { %v474_v38 = vmul.f32 1.442695, %v473_v37 }
 0x2d8   : > { %v365_v49 = vpop.xlane.xlu1 %364 }
 0x2d9   : > { %787 = vpow2.f32 %v474_v38 }
 0x2e6   : > { %v788_v39 = vpop.eup %787 }
 0x2e7   : > { %v476_v40 = vsel %vm356_vm2, %v788_v39, 0.0  ;;  %v479_v41 = vpack.c.bf16 %v788_v39, %v788_v39 }
 0x2e8   : > { %477 = vadd.xlane.f32.xlu0 %v476_v40 }
 0x2e9   : > { %737 = vmatmul.mubr.msk.bf16.vlgmr.msra.gmra.mxu0 %vm356_vm2, %v479_v41 }
 0x371   : > { %v478_v42 = vpop.xlane.xlu0 %477 }
 0x372   : > { %789 = vrcp.f32 %v478_v42 }
 0x373   : > { %791 = vrcp.f32 %v365_v49 }
 0x37f   : > { %v790_v43 = vpop.eup %789 }
 0x380   : > { %v792_v50 = vpop.eup %791 }
 0x381   : > { %v415_v51 = vmul.f32 %v792_v50, %v408_v24 }
 0x3a9   : > { %v525_v44 = vpop.f32.mrf.mxu0 }
 0x3aa   : > { %v532_v45 = vmul.f32 %v790_v43, %v525_v44 }
 0x3ab   : > { %v738_v46 = vpop.f32.mrf.mxu0 }
 0x3ac   : > { %534 = vrot.lane.b32.xlu1 %v532_v45, %s835_s6 }
 0x3ad   : > { %v528_v47 = vpop.f32.mrf.mxu0 }
 0x3af   : > { %v739_v48 = vpop.f32.mrf.mxu0 }
 0x41e   : > { %v535_v52 = vpop.permute.xlu1 %534 }
 0x41f   : > { %v537_v53 = vsel %vm309_vm1, %v415_v51, %v535_v52 }
 0x420   : > { %v538_v54 = vpack.c.bf16 %v537_v53, %v537_v53 }
 0x422   : > { %539 = vst [vmem:[%s301_s20] sm:$0xf] %v538_v54 }
 0x423 PF: > { %s13_s16 = sadd.s32 1, %s831_s16   ;;  %s968_s12 = smov %s823_s14 }
 0x424   : > { %p10_p9 = scmp.ge.s32.totalorder %s13_s16, 6   ;;  %s969_s13 = smov %s827_s15 }
 0x425   : > { %s970_s14 = smov %s973_s17  ;;  %s971_s15 = smov %s977_s18 }
 0x426   :  { %12 = sbr.rel (!%p10_p9) target bundleno = 3 (0x3), region = 68 }

// kernel: transformer_model_forward.57
= control target key start
LH: loop header
LB: loop body
LE: loop exit
PB: predicated region body
PF: predicated region fallthrough
CT: control target
= control target key end

     0   :  { %s366_s1 = inlined_call_operand.vmem [shape: bf16[256,128], index: 1, kind: input, shape index: {}]   ;;  %s367_s0 = inlined_call_operand.vmem [shape: bf16[16,256], index: 0, kind: input, shape index: {}]   ;;  %s368_s2 = inlined_call_operand.vmem [shape: f32[1,128], index: 2, kind: input, shape index: {}]   ;;  %s369_s3 = inlined_call_operand.vmem [shape: bf16[16,128], index: 3, kind: output, shape index: {}]  }
   0x1   :  { %v267_v0 = vld [vmem:[%s366_s1 + $0x78] sm:$0xff]   ;;  %v269_v2 = vld [vmem:[%s366_s1 + $0x70] sm:$0xff]   ;;  %v271_v4 = vld [vmem:[%s366_s1 + $0x68] sm:$0xff]  }
   0x2   :  { %v268_v1 = vld [vmem:[%s366_s1 + $0x38] sm:$0xff]   ;;  %245 = vmatprep.subr.bf16.mxu0 %v267_v0  ;;  %v270_v3 = vld [vmem:[%s366_s1 + $0x30] sm:$0xff]   ;;  %v272_v5 = vld [vmem:[%s366_s1 + $0x28] sm:$0xff]  }
   0x3   :  { %246 = vmatpush3.bf16.msra.mxu0 %v268_v1  ;;  %v273_v6 = vld [vmem:[%s366_s1 + $0x60] sm:$0xff]   ;;  %v275_v8 = vld [vmem:[%s366_s1 + $0x58] sm:$0xff]   ;;  %v277_v10 = vld [vmem:[%s366_s1 + $0x50] sm:$0xff]  }
   0x4   :  { %247 = vmatprep.subr.bf16.mxu0 %v269_v2  ;;  %v274_v7 = vld [vmem:[%s366_s1 + $0x20] sm:$0xff]   ;;  %v276_v9 = vld [vmem:[%s366_s1 + $0x18] sm:$0xff]   ;;  %v278_v12 = vld [vmem:[%s366_s1 + $0x10] sm:$0xff]  }
   0x5   :  { %v285_v11 = vld [vmem:[%s367_s0 + $0x4] ss:$8 sps:$4 sm:$0xff]   ;;  %v283_v17 = vld [vmem:[%s367_s0] ss:$8 sps:$4 sm:$0xff]  }
   0x6   :  { %194 = vmatprep.mubr.bf16.mxu0 %v285_v11  ;;  %v279_v13 = vld [vmem:[%s366_s1 + $0x48] sm:$0xff]   ;;  %v281_v15 = vld [vmem:[%s366_s1 + $0x40] sm:$0xff]  }
   0x7   :  { %248 = vmatpush3.bf16.msra.mxu0 %v270_v3  ;;  %v280_v14 = vld [vmem:[%s366_s1 + $0x8] sm:$0xff]   ;;  %v282_v16 = vld [vmem:[%s366_s1] sm:$0xff]  }
   0x8   :  { %249 = vmatprep.subr.bf16.mxu0 %v271_v4  ;;  %v217_v22 = vld [vmem:[%s368_s2] ss:$0 sm:$0xff] }
   0xb   :  { %250 = vmatpush3.bf16.msra.mxu0 %v272_v5 }
   0xc   :  { %251 = vmatprep.subr.bf16.mxu0 %v273_v6 }
   0xf   :  { %252 = vmatpush3.bf16.msra.mxu0 %v274_v7 }
  0x10   :  { %253 = vmatprep.subr.bf16.mxu0 %v275_v8 }
  0x13   :  { %254 = vmatpush3.bf16.msra.mxu0 %v276_v9 }
  0x14   :  { %255 = vmatprep.subr.bf16.mxu0 %v277_v10 }
  0x17   :  { %256 = vmatpush3.bf16.msra.mxu0 %v278_v12 }
  0x18   :  { %257 = vmatprep.subr.bf16.mxu0 %v279_v13 }
  0x1b   :  { %258 = vmatpush3.bf16.msra.mxu0 %v280_v14 }
  0x1c   :  { %259 = vmatprep.subr.bf16.mxu0 %v281_v15 }
  0x1f   :  { %260 = vmatpush3.bf16.msra.mxu0 %v282_v16 }
  0x22   :  { %195 = vmatmul.mubr.bf16.vlgmr.msra.gmra.mxu0 %v283_v17 }
  0xe2   :  { %v261_v18 = vpop.f32.mrf.mxu0 }
  0xe4   :  { %v262_v19 = vpop.f32.mrf.mxu0 }
  0xe5   :  { %v263_v21 = vadd.f32 %v262_v19, %v261_v18 }
  0xe6   :  { %v264_v20 = vpop.f32.mrf.mxu0 }
  0xe7   :  { %v197_v25 = vadd.f32 %v263_v21, %v217_v22 }
  0xe8   :  { %v265_v23 = vpop.f32.mrf.mxu0 }
  0xe9   :  { %v266_v24 = vadd.f32 %v265_v23, %v264_v20 }
  0xeb   :  { %v200_v26 = vadd.f32 %v266_v24, %v217_v22 }
  0xed   :  { %v243_v27 = vpack.c.bf16 %v200_v26, %v197_v25 }
  0xef   :  { %244 = vst [vmem:[%s369_s3] sm:$0xff] %v243_v27  }

</bundles_post_ra>
